<compile_context>
chip_gen: v5e
topology: v5e:2x2
jax: 0.10.0
libtpu: 0.0.40
codegen_flags: <defaults>
</compile_context>

<pallas_src>
import math
import numpy as np
import jax
import jax.numpy as jnp
from jax.experimental import pallas as pl
from jax.experimental.pallas import tpu as pltpu

EPS = 0.0        # `eps = 0` in the reference module
_TOP = 8         # 8-aligned top padding rows inside the H-padded VMEM scratch


def _vmem_spec(shape):
    nd = len(shape)
    return pl.BlockSpec(shape, lambda *_: (0,) * nd)


# ----------------------------- fused Pallas kernel ---------------------------

def _fused_forward_kernel(x_ref, wconv_ref, wfc_ref, pmat_ref, o_ref, xpad_ref):
    """Whole v2PreResNet forward on VMEM-resident data.

    x_ref    : (N, H, W*C)            input, channels zero-padded to C, lane-dense
    wconv_ref: (n_convs, 3, W*C, W*C) banded conv weights (one band per dy)
    wfc_ref  : (W*C, num_classes)     fc weight with the 1/W pooling folded in
    pmat_ref : (W*C, W*C)             channel-averaging projection (kron/W)
    o_ref    : (N, num_classes)
    xpad_ref : (N, H + 16, W*C)       VMEM scratch for height zero-padding
    """
    N, H, WC = x_ref.shape
    NH = N * H
    n_convs = wconv_ref.shape[0]
    n_blocks = (n_convs - 1) // 2

    # Zero the padding scratch once; rows outside [_TOP, _TOP + H) are never
    # written again, so they stay zero for every conv.
    xpad_ref[...] = jnp.zeros_like(xpad_ref)
    pmat = pmat_ref[...]

    def conv3x3(a2, widx):
        # a2: (N*H, W*C).  Height padding via the scratch; width padding and
        # the three dx taps live in the banded weights -> 3 matmuls with
        # K = W*C (=128) instead of 9 matmuls with K = C (=16).
        xpad_ref[:, _TOP:_TOP + H, :] = a2.reshape(N, H, WC)
        xp = xpad_ref[...]
        acc = None
        for dy in range(3):
            slab = xp[:, _TOP - 1 + dy:_TOP - 1 + dy + H, :].reshape(NH, WC)
            part = jnp.dot(slab, wconv_ref[widx, dy],
                           preferred_element_type=jnp.float32)
            acc = part if acc is None else acc + part
        return acc

    def bn_relu(a2):
        # Training-mode BatchNorm (eps=0, weight=1, bias=0) + ReLU in the
        # lane-dense layout: per-channel stats = per-lane stats averaged over
        # the W replicas of each channel via the projection matmul.
        m_lane = jnp.mean(a2, axis=0, keepdims=True)                   # (1, W*C)
        mean_c = jnp.dot(m_lane, pmat, preferred_element_type=jnp.float32)
        d = a2 - mean_c
        v_lane = jnp.mean(d * d, axis=0, keepdims=True)
        var_c = jnp.dot(v_lane, pmat, preferred_element_type=jnp.float32)
        return jnp.maximum(d * jax.lax.rsqrt(var_c + EPS), 0.0)

    x = x_ref[...].reshape(NH, WC).astype(jnp.float32)
    x = conv3x3(x, 0)                                  # stem conv1
    for b in range(n_blocks):                          # BasicBlocks (no downsample)
        residual = x
        h = bn_relu(x)                                 # bn1 + relu
        h = conv3x3(h, 1 + 2 * b)                      # conv1
        h = bn_relu(h)                                 # bn2 + relu
        x = conv3x3(h, 2 + 2 * b) + residual           # conv2, out += residual
    y = bn_relu(x)                                     # final BN (affine=False) + relu
    pooled_h = jnp.mean(y.reshape(N, H, WC), axis=1)   # (N, W*C): mean over H
    # wfc_ref already contains the 1/W width-average and the channel tiling,
    # so this single matmul is avgpool + fc.
    o_ref[...] = jnp.dot(pooled_h, wfc_ref[...],
                         preferred_element_type=jnp.float32).astype(o_ref.dtype)


# ------------------------------ host-side packing ----------------------------

def _banded_conv_weight(w, W, C):
    """(3,3,Cin,Cout) conv weight -> (3, W*C, W*C) banded matrices (one per dy).

    band[dy, wi*C + c, wo*C + o] = w[dy, wi - wo + 1, c, o] for |wi - wo| <= 1,
    which folds the width-direction zero padding and dx taps into the weight.
    """
    kh, kw, cin, cout = w.shape
    assert kh == 3 and kw == 3 and cin <= C and cout == C
    wfull = np.zeros((3, 3, C, C), np.float32)
    wfull[:, :, :cin, :] = np.asarray(w, np.float32)
    band = np.zeros((3, W * C, W * C), np.float32)
    for dy in range(3):
        for wo in range(W):
            for dx in range(3):
                wi = wo + dx - 1
                if 0 <= wi < W:
                    band[dy, wi * C:(wi + 1) * C, wo * C:(wo + 1) * C] = wfull[dy, dx]
    return band


def pack_params(params, H, W):
    C = params["conv1"].shape[-1]
    convs = [params["conv1"]]
    for blk in params["blocks"]:
        convs.append(blk["conv1"])
        convs.append(blk["conv2"])
    wconv = np.stack([_banded_conv_weight(w, W, C) for w in convs])     # (n,3,WC,WC)
    fc = np.asarray(params["fc"], np.float32)                           # (C, nc)
    wfc_eff = np.tile(fc, (W, 1)) / W                                   # (W*C, nc)
    pmat = np.kron(np.ones((W, W), np.float32),
                   np.eye(C, dtype=np.float32)) / W                     # (W*C, W*C)
    return jnp.asarray(wconv), jnp.asarray(wfc_eff), jnp.asarray(pmat)


def pack_input(x_nchw, C):
    N, cin, H, W = x_nchw.shape
    x = jnp.transpose(x_nchw, (0, 2, 3, 1)).astype(jnp.float32)         # NCHW -> NHWC
    x = jnp.pad(x, ((0, 0), (0, 0), (0, 0), (0, C - cin)))              # pad channels -> C
    return x.reshape(N, H, W * C)                                       # lane-dense


def v2preresnet_forward(x_nchw, params):
    N, _, H, W = x_nchw.shape
    C = params["conv1"].shape[-1]
    num_classes = params["fc"].shape[-1]
    x_pk = pack_input(x_nchw, C)
    wconv, wfc_eff, pmat = pack_params(params, H, W)
    return pl.pallas_call(
        _fused_forward_kernel,
        grid=(1,),
        in_specs=[_vmem_spec(x_pk.shape), _vmem_spec(wconv.shape),
                  _vmem_spec(wfc_eff.shape), _vmem_spec(pmat.shape)],
        out_specs=_vmem_spec((N, num_classes)),
        out_shape=jax.ShapeDtypeStruct((N, num_classes), jnp.float32),
        scratch_shapes=[pltpu.VMEM((N, H + 16, W * C), jnp.float32)],
        compiler_params=pltpu.CompilerParams(dimension_semantics=("arbitrary",)),
    )(x_pk, wconv, wfc_eff, pmat)


# --------------------------- parameter construction --------------------------

def init_params(key, depth=8, widths=(16, 16, 16), widen_factor=1,
                num_classes=10):
    assert (depth - 2) % 6 == 0, "BasicBlock depth must be 6n+2"
    n = (depth - 2) // 6
    chans = [w * widen_factor for w in widths]
    keys = iter(jax.random.split(key, 2 + 6 * n))

    def conv_w(k, cin, cout, ksize=3):
        # matches: weight ~ N(0, sqrt(2 / (k*k*out_channels)))
        std = math.sqrt(2.0 / (ksize * ksize * cout))
        return std * jax.random.normal(k, (ksize, ksize, cin, cout), jnp.float32)

    params = {"conv1": conv_w(next(keys), 3, chans[0])}
    blocks = []
    inplanes = chans[0]
    for planes in chans:
        for _ in range(n):
            # stride=1 and inplanes == planes*expansion -> no downsample conv
            blocks.append({
                "conv1": conv_w(next(keys), inplanes, planes),
                "conv2": conv_w(next(keys), planes, planes),
            })
            inplanes = planes
    params["blocks"] = blocks
    # TODO(synk): NTKLinear init not specified in the snippet; N(0, 1/sqrt(fan_in)).
    params["fc"] = jax.random.normal(next(keys), (inplanes, num_classes),
                                     jnp.float32) / math.sqrt(inplanes)
    return params


if __name__ == "__main__":
    key = jax.random.PRNGKey(0)
    kx, kp = jax.random.split(key)
    # small CIFAR-like input, NCHW as in PyTorch
    x = jax.random.normal(kx, (2, 3, 8, 8), jnp.float32)
    params = init_params(kp, depth=8, widths=(16, 16, 16), num_classes=10)

    out = v2preresnet_forward(x, params)
    jax.block_until_ready(out)
    assert out.shape == (2, 10) and out.dtype == jnp.float32
    assert bool(jnp.isfinite(out).all())
    print("KERNEL_OK")
</pallas_src>

<mosaic_0001>
module attributes {stable_mosaic.version = 11 : i64} {
  func.func @_fused_forward_kernel(%arg0: i32, %arg1: memref<2x8x128xf32, #tpu.memory_space<vmem>>, %arg2: memref<7x3x128x128xf32, #tpu.memory_space<vmem>>, %arg3: memref<128x10xf32, #tpu.memory_space<vmem>>, %arg4: memref<128x128xf32, #tpu.memory_space<vmem>>, %arg5: memref<2x10xf32, #tpu.memory_space<vmem>>, %arg6: memref<2x24x128xf32, #tpu.memory_space<vmem>>) attributes {dimension_semantics = [#tpu.dimension_semantics<arbitrary>], iteration_bounds = array<i64: 1>, scalar_prefetch = 0 : i64, scratch_operands = 1 : i64, tpu.core_type = #tpu.core_type<tc>, window_params = [{pipeline_mode = #tpu.pipeline_mode<synchronous>, transform_indices = @transform_0, window_bounds = array<i64: 2, 8, 128>}, {pipeline_mode = #tpu.pipeline_mode<synchronous>, transform_indices = @transform_1, window_bounds = array<i64: 7, 3, 128, 128>}, {pipeline_mode = #tpu.pipeline_mode<synchronous>, transform_indices = @transform_2, window_bounds = array<i64: 128, 10>}, {pipeline_mode = #tpu.pipeline_mode<synchronous>, transform_indices = @transform_3, window_bounds = array<i64: 128, 128>}, {pipeline_mode = #tpu.pipeline_mode<synchronous>, transform_indices = @transform_4, window_bounds = array<i64: 2, 10>}]} {
    %cst = arith.constant 0.000000e+00 : f32
    %0 = vector.broadcast %cst : f32 to vector<2x24x128xf32>
    %c0 = arith.constant 0 : index
    %c0_0 = arith.constant 0 : index
    %c0_1 = arith.constant 0 : index
    %1 = vector.load %arg6[%c0, %c0_0, %c0_1] : memref<2x24x128xf32, #tpu.memory_space<vmem>>, vector<2x24x128xf32>
    tpu.vector_store %arg6[%c0, %c0_0, %c0_1], %0 {strides = array<i32>} : memref<2x24x128xf32, #tpu.memory_space<vmem>>, vector<2x24x128xf32>,
    %c0_2 = arith.constant 0 : index
    %c0_3 = arith.constant 0 : index
    %2 = vector.load %arg4[%c0_2, %c0_3] : memref<128x128xf32, #tpu.memory_space<vmem>>, vector<128x128xf32>
    %c0_4 = arith.constant 0 : index
    %c0_5 = arith.constant 0 : index
    %c0_6 = arith.constant 0 : index
    %3 = vector.load %arg1[%c0_4, %c0_5, %c0_6] : memref<2x8x128xf32, #tpu.memory_space<vmem>>, vector<2x8x128xf32>
    %4 = vector.shape_cast %3 : vector<2x8x128xf32> to vector<16x128xf32>
    %5 = vector.shape_cast %4 : vector<16x128xf32> to vector<2x8x128xf32>
    %c0_7 = arith.constant 0 : index
    %c8 = arith.constant 8 : index
    %c0_8 = arith.constant 0 : index
    %6 = vector.load %arg6[%c0_7, %c8, %c0_8] : memref<2x24x128xf32, #tpu.memory_space<vmem>>, vector<2x8x128xf32>
    tpu.vector_store %arg6[%c0_7, %c8, %c0_8], %5 {strides = array<i32>} : memref<2x24x128xf32, #tpu.memory_space<vmem>>, vector<2x8x128xf32>,
    %c0_9 = arith.constant 0 : index
    %c0_10 = arith.constant 0 : index
    %c0_11 = arith.constant 0 : index
    %7 = vector.load %arg6[%c0_9, %c0_10, %c0_11] : memref<2x24x128xf32, #tpu.memory_space<vmem>>, vector<2x24x128xf32>
    %8 = vector.extract_strided_slice %7 {offsets = [0, 7, 0], sizes = [2, 8, 128], strides = [1, 1, 1]} : vector<2x24x128xf32> to vector<2x8x128xf32>
    %9 = vector.shape_cast %8 : vector<2x8x128xf32> to vector<16x128xf32>
    %c0_12 = arith.constant 0 : index
    %c0_13 = arith.constant 0 : index
    %c0_14 = arith.constant 0 : index
    %c0_15 = arith.constant 0 : index
    %10 = vector.load %arg2[%c0_12, %c0_13, %c0_14, %c0_15] : memref<7x3x128x128xf32, #tpu.memory_space<vmem>>, vector<1x1x128x128xf32>
    %11 = vector.shape_cast %10 : vector<1x1x128x128xf32> to vector<128x128xf32>
    %cst_16 = arith.constant dense<0.000000e+00> : vector<16x128xf32>
    %12 = tpu.matmul %9, %11, %cst_16 {dimension_numbers = #tpu.dot_dimension_numbers<[1], [0], [0], [1], [0, 0, 1, 1], [], []>} : vector<16x128xf32>, vector<128x128xf32>, vector<16x128xf32> -> vector<16x128xf32>
    %13 = vector.extract_strided_slice %7 {offsets = [0, 8, 0], sizes = [2, 8, 128], strides = [1, 1, 1]} : vector<2x24x128xf32> to vector<2x8x128xf32>
    %14 = vector.shape_cast %13 : vector<2x8x128xf32> to vector<16x128xf32>
    %c0_17 = arith.constant 0 : index
    %c1 = arith.constant 1 : index
    %c0_18 = arith.constant 0 : index
    %c0_19 = arith.constant 0 : index
    %15 = vector.load %arg2[%c0_17, %c1, %c0_18, %c0_19] : memref<7x3x128x128xf32, #tpu.memory_space<vmem>>, vector<1x1x128x128xf32>
    %16 = vector.shape_cast %15 : vector<1x1x128x128xf32> to vector<128x128xf32>
    %cst_20 = arith.constant dense<0.000000e+00> : vector<16x128xf32>
    %17 = tpu.matmul %14, %16, %cst_20 {dimension_numbers = #tpu.dot_dimension_numbers<[1], [0], [0], [1], [0, 0, 1, 1], [], []>} : vector<16x128xf32>, vector<128x128xf32>, vector<16x128xf32> -> vector<16x128xf32>
    %18 = arith.addf %12, %17 : vector<16x128xf32>
    %19 = vector.extract_strided_slice %7 {offsets = [0, 9, 0], sizes = [2, 8, 128], strides = [1, 1, 1]} : vector<2x24x128xf32> to vector<2x8x128xf32>
    %20 = vector.shape_cast %19 : vector<2x8x128xf32> to vector<16x128xf32>
    %c0_21 = arith.constant 0 : index
    %c2 = arith.constant 2 : index
    %c0_22 = arith.constant 0 : index
    %c0_23 = arith.constant 0 : index
    %21 = vector.load %arg2[%c0_21, %c2, %c0_22, %c0_23] : memref<7x3x128x128xf32, #tpu.memory_space<vmem>>, vector<1x1x128x128xf32>
    %22 = vector.shape_cast %21 : vector<1x1x128x128xf32> to vector<128x128xf32>
    %cst_24 = arith.constant dense<0.000000e+00> : vector<16x128xf32>
    %23 = tpu.matmul %20, %22, %cst_24 {dimension_numbers = #tpu.dot_dimension_numbers<[1], [0], [0], [1], [0, 0, 1, 1], [], []>} : vector<16x128xf32>, vector<128x128xf32>, vector<16x128xf32> -> vector<16x128xf32>
    %24 = arith.addf %18, %23 : vector<16x128xf32>
    %cst_25 = arith.constant dense<0.000000e+00> : vector<128xf32>
    %25 = vector.multi_reduction <add>, %24, %cst_25 [0] : vector<16x128xf32> to vector<128xf32>
    %26 = vector.shape_cast %25 : vector<128xf32> to vector<1x128xf32>
    %cst_26 = arith.constant 1.600000e+01 : f32
    %27 = vector.broadcast %cst_26 : f32 to vector<1x128xf32>
    %28 = arith.divf %26, %27 : vector<1x128xf32>
    %cst_27 = arith.constant dense<0.000000e+00> : vector<1x128xf32>
    %29 = tpu.matmul %28, %2, %cst_27 {dimension_numbers = #tpu.dot_dimension_numbers<[1], [0], [0], [1], [0, 0, 1, 1], [], []>} : vector<1x128xf32>, vector<128x128xf32>, vector<1x128xf32> -> vector<1x128xf32>
    %30 = vector.broadcast %29 : vector<1x128xf32> to vector<16x128xf32>
    %31 = arith.subf %24, %30 : vector<16x128xf32>
    %32 = arith.mulf %31, %31 : vector<16x128xf32>
    %cst_28 = arith.constant dense<0.000000e+00> : vector<128xf32>
    %33 = vector.multi_reduction <add>, %32, %cst_28 [0] : vector<16x128xf32> to vector<128xf32>
    %34 = vector.shape_cast %33 : vector<128xf32> to vector<1x128xf32>
    %cst_29 = arith.constant 1.600000e+01 : f32
    %35 = vector.broadcast %cst_29 : f32 to vector<1x128xf32>
    %36 = arith.divf %34, %35 : vector<1x128xf32>
    %cst_30 = arith.constant dense<0.000000e+00> : vector<1x128xf32>
    %37 = tpu.matmul %36, %2, %cst_30 {dimension_numbers = #tpu.dot_dimension_numbers<[1], [0], [0], [1], [0, 0, 1, 1], [], []>} : vector<1x128xf32>, vector<128x128xf32>, vector<1x128xf32> -> vector<1x128xf32>
    %cst_31 = arith.constant 0.000000e+00 : f32
    %38 = vector.broadcast %cst_31 : f32 to vector<1x128xf32>
    %39 = arith.addf %37, %38 : vector<1x128xf32>
    %40 = math.rsqrt %39 : vector<1x128xf32>
    %41 = vector.broadcast %40 : vector<1x128xf32> to vector<16x128xf32>
    %42 = arith.mulf %31, %41 : vector<16x128xf32>
    %cst_32 = arith.constant 0.000000e+00 : f32
    %43 = vector.broadcast %cst_32 : f32 to vector<16x128xf32>
    %44 = arith.maximumf %42, %43 : vector<16x128xf32>
    %45 = vector.shape_cast %44 : vector<16x128xf32> to vector<2x8x128xf32>
    %c0_33 = arith.constant 0 : index
    %c8_34 = arith.constant 8 : index
    %c0_35 = arith.constant 0 : index
    %46 = vector.load %arg6[%c0_33, %c8_34, %c0_35] : memref<2x24x128xf32, #tpu.memory_space<vmem>>, vector<2x8x128xf32>
    tpu.vector_store %arg6[%c0_33, %c8_34, %c0_35], %45 {strides = array<i32>} : memref<2x24x128xf32, #tpu.memory_space<vmem>>, vector<2x8x128xf32>,
    %c0_36 = arith.constant 0 : index
    %c0_37 = arith.constant 0 : index
    %c0_38 = arith.constant 0 : index
    %47 = vector.load %arg6[%c0_36, %c0_37, %c0_38] : memref<2x24x128xf32, #tpu.memory_space<vmem>>, vector<2x24x128xf32>
    %48 = vector.extract_strided_slice %47 {offsets = [0, 7, 0], sizes = [2, 8, 128], strides = [1, 1, 1]} : vector<2x24x128xf32> to vector<2x8x128xf32>
    %49 = vector.shape_cast %48 : vector<2x8x128xf32> to vector<16x128xf32>
    %c1_39 = arith.constant 1 : index
    %c0_40 = arith.constant 0 : index
    %c0_41 = arith.constant 0 : index
    %c0_42 = arith.constant 0 : index
    %50 = vector.load %arg2[%c1_39, %c0_40, %c0_41, %c0_42] : memref<7x3x128x128xf32, #tpu.memory_space<vmem>>, vector<1x1x128x128xf32>
    %51 = vector.shape_cast %50 : vector<1x1x128x128xf32> to vector<128x128xf32>
    %cst_43 = arith.constant dense<0.000000e+00> : vector<16x128xf32>
    %52 = tpu.matmul %49, %51, %cst_43 {dimension_numbers = #tpu.dot_dimension_numbers<[1], [0], [0], [1], [0, 0, 1, 1], [], []>} : vector<16x128xf32>, vector<128x128xf32>, vector<16x128xf32> -> vector<16x128xf32>
    %53 = vector.extract_strided_slice %47 {offsets = [0, 8, 0], sizes = [2, 8, 128], strides = [1, 1, 1]} : vector<2x24x128xf32> to vector<2x8x128xf32>
    %54 = vector.shape_cast %53 : vector<2x8x128xf32> to vector<16x128xf32>
    %c1_44 = arith.constant 1 : index
    %c1_45 = arith.constant 1 : index
    %c0_46 = arith.constant 0 : index
    %c0_47 = arith.constant 0 : index
    %55 = vector.load %arg2[%c1_44, %c1_45, %c0_46, %c0_47] : memref<7x3x128x128xf32, #tpu.memory_space<vmem>>, vector<1x1x128x128xf32>
    %56 = vector.shape_cast %55 : vector<1x1x128x128xf32> to vector<128x128xf32>
    %cst_48 = arith.constant dense<0.000000e+00> : vector<16x128xf32>
    %57 = tpu.matmul %54, %56, %cst_48 {dimension_numbers = #tpu.dot_dimension_numbers<[1], [0], [0], [1], [0, 0, 1, 1], [], []>} : vector<16x128xf32>, vector<128x128xf32>, vector<16x128xf32> -> vector<16x128xf32>
    %58 = arith.addf %52, %57 : vector<16x128xf32>
    %59 = vector.extract_strided_slice %47 {offsets = [0, 9, 0], sizes = [2, 8, 128], strides = [1, 1, 1]} : vector<2x24x128xf32> to vector<2x8x128xf32>
    %60 = vector.shape_cast %59 : vector<2x8x128xf32> to vector<16x128xf32>
    %c1_49 = arith.constant 1 : index
    %c2_50 = arith.constant 2 : index
    %c0_51 = arith.constant 0 : index
    %c0_52 = arith.constant 0 : index
    %61 = vector.load %arg2[%c1_49, %c2_50, %c0_51, %c0_52] : memref<7x3x128x128xf32, #tpu.memory_space<vmem>>, vector<1x1x128x128xf32>
    %62 = vector.shape_cast %61 : vector<1x1x128x128xf32> to vector<128x128xf32>
    %cst_53 = arith.constant dense<0.000000e+00> : vector<16x128xf32>
    %63 = tpu.matmul %60, %62, %cst_53 {dimension_numbers = #tpu.dot_dimension_numbers<[1], [0], [0], [1], [0, 0, 1, 1], [], []>} : vector<16x128xf32>, vector<128x128xf32>, vector<16x128xf32> -> vector<16x128xf32>
    %64 = arith.addf %58, %63 : vector<16x128xf32>
    %cst_54 = arith.constant dense<0.000000e+00> : vector<128xf32>
    %65 = vector.multi_reduction <add>, %64, %cst_54 [0] : vector<16x128xf32> to vector<128xf32>
    %66 = vector.shape_cast %65 : vector<128xf32> to vector<1x128xf32>
    %cst_55 = arith.constant 1.600000e+01 : f32
    %67 = vector.broadcast %cst_55 : f32 to vector<1x128xf32>
    %68 = arith.divf %66, %67 : vector<1x128xf32>
    %cst_56 = arith.constant dense<0.000000e+00> : vector<1x128xf32>
    %69 = tpu.matmul %68, %2, %cst_56 {dimension_numbers = #tpu.dot_dimension_numbers<[1], [0], [0], [1], [0, 0, 1, 1], [], []>} : vector<1x128xf32>, vector<128x128xf32>, vector<1x128xf32> -> vector<1x128xf32>
    %70 = vector.broadcast %69 : vector<1x128xf32> to vector<16x128xf32>
    %71 = arith.subf %64, %70 : vector<16x128xf32>
    %72 = arith.mulf %71, %71 : vector<16x128xf32>
    %cst_57 = arith.constant dense<0.000000e+00> : vector<128xf32>
    %73 = vector.multi_reduction <add>, %72, %cst_57 [0] : vector<16x128xf32> to vector<128xf32>
    %74 = vector.shape_cast %73 : vector<128xf32> to vector<1x128xf32>
    %cst_58 = arith.constant 1.600000e+01 : f32
    %75 = vector.broadcast %cst_58 : f32 to vector<1x128xf32>
    %76 = arith.divf %74, %75 : vector<1x128xf32>
    %cst_59 = arith.constant dense<0.000000e+00> : vector<1x128xf32>
    %77 = tpu.matmul %76, %2, %cst_59 {dimension_numbers = #tpu.dot_dimension_numbers<[1], [0], [0], [1], [0, 0, 1, 1], [], []>} : vector<1x128xf32>, vector<128x128xf32>, vector<1x128xf32> -> vector<1x128xf32>
    %cst_60 = arith.constant 0.000000e+00 : f32
    %78 = vector.broadcast %cst_60 : f32 to vector<1x128xf32>
    %79 = arith.addf %77, %78 : vector<1x128xf32>
    %80 = math.rsqrt %79 : vector<1x128xf32>
    %81 = vector.broadcast %80 : vector<1x128xf32> to vector<16x128xf32>
    %82 = arith.mulf %71, %81 : vector<16x128xf32>
    %cst_61 = arith.constant 0.000000e+00 : f32
    %83 = vector.broadcast %cst_61 : f32 to vector<16x128xf32>
    %84 = arith.maximumf %82, %83 : vector<16x128xf32>
    %85 = vector.shape_cast %84 : vector<16x128xf32> to vector<2x8x128xf32>
    %c0_62 = arith.constant 0 : index
    %c8_63 = arith.constant 8 : index
    %c0_64 = arith.constant 0 : index
    %86 = vector.load %arg6[%c0_62, %c8_63, %c0_64] : memref<2x24x128xf32, #tpu.memory_space<vmem>>, vector<2x8x128xf32>
    tpu.vector_store %arg6[%c0_62, %c8_63, %c0_64], %85 {strides = array<i32>} : memref<2x24x128xf32, #tpu.memory_space<vmem>>, vector<2x8x128xf32>,
    %c0_65 = arith.constant 0 : index
    %c0_66 = arith.constant 0 : index
    %c0_67 = arith.constant 0 : index
    %87 = vector.load %arg6[%c0_65, %c0_66, %c0_67] : memref<2x24x128xf32, #tpu.memory_space<vmem>>, vector<2x24x128xf32>
    %88 = vector.extract_strided_slice %87 {offsets = [0, 7, 0], sizes = [2, 8, 128], strides = [1, 1, 1]} : vector<2x24x128xf32> to vector<2x8x128xf32>
    %89 = vector.shape_cast %88 : vector<2x8x128xf32> to vector<16x128xf32>
    %c2_68 = arith.constant 2 : index
    %c0_69 = arith.constant 0 : index
    %c0_70 = arith.constant 0 : index
    %c0_71 = arith.constant 0 : index
    %90 = vector.load %arg2[%c2_68, %c0_69, %c0_70, %c0_71] : memref<7x3x128x128xf32, #tpu.memory_space<vmem>>, vector<1x1x128x128xf32>
    %91 = vector.shape_cast %90 : vector<1x1x128x128xf32> to vector<128x128xf32>
    %cst_72 = arith.constant dense<0.000000e+00> : vector<16x128xf32>
    %92 = tpu.matmul %89, %91, %cst_72 {dimension_numbers = #tpu.dot_dimension_numbers<[1], [0], [0], [1], [0, 0, 1, 1], [], []>} : vector<16x128xf32>, vector<128x128xf32>, vector<16x128xf32> -> vector<16x128xf32>
    %93 = vector.extract_strided_slice %87 {offsets = [0, 8, 0], sizes = [2, 8, 128], strides = [1, 1, 1]} : vector<2x24x128xf32> to vector<2x8x128xf32>
    %94 = vector.shape_cast %93 : vector<2x8x128xf32> to vector<16x128xf32>
    %c2_73 = arith.constant 2 : index
    %c1_74 = arith.constant 1 : index
    %c0_75 = arith.constant 0 : index
    %c0_76 = arith.constant 0 : index
    %95 = vector.load %arg2[%c2_73, %c1_74, %c0_75, %c0_76] : memref<7x3x128x128xf32, #tpu.memory_space<vmem>>, vector<1x1x128x128xf32>
    %96 = vector.shape_cast %95 : vector<1x1x128x128xf32> to vector<128x128xf32>
    %cst_77 = arith.constant dense<0.000000e+00> : vector<16x128xf32>
    %97 = tpu.matmul %94, %96, %cst_77 {dimension_numbers = #tpu.dot_dimension_numbers<[1], [0], [0], [1], [0, 0, 1, 1], [], []>} : vector<16x128xf32>, vector<128x128xf32>, vector<16x128xf32> -> vector<16x128xf32>
    %98 = arith.addf %92, %97 : vector<16x128xf32>
    %99 = vector.extract_strided_slice %87 {offsets = [0, 9, 0], sizes = [2, 8, 128], strides = [1, 1, 1]} : vector<2x24x128xf32> to vector<2x8x128xf32>
    %100 = vector.shape_cast %99 : vector<2x8x128xf32> to vector<16x128xf32>
    %c2_78 = arith.constant 2 : index
    %c2_79 = arith.constant 2 : index
    %c0_80 = arith.constant 0 : index
    %c0_81 = arith.constant 0 : index
    %101 = vector.load %arg2[%c2_78, %c2_79, %c0_80, %c0_81] : memref<7x3x128x128xf32, #tpu.memory_space<vmem>>, vector<1x1x128x128xf32>
    %102 = vector.shape_cast %101 : vector<1x1x128x128xf32> to vector<128x128xf32>
    %cst_82 = arith.constant dense<0.000000e+00> : vector<16x128xf32>
    %103 = tpu.matmul %100, %102, %cst_82 {dimension_numbers = #tpu.dot_dimension_numbers<[1], [0], [0], [1], [0, 0, 1, 1], [], []>} : vector<16x128xf32>, vector<128x128xf32>, vector<16x128xf32> -> vector<16x128xf32>
    %104 = arith.addf %98, %103 : vector<16x128xf32>
    %105 = arith.addf %104, %24 : vector<16x128xf32>
    %cst_83 = arith.constant dense<0.000000e+00> : vector<128xf32>
    %106 = vector.multi_reduction <add>, %105, %cst_83 [0] : vector<16x128xf32> to vector<128xf32>
    %107 = vector.shape_cast %106 : vector<128xf32> to vector<1x128xf32>
    %cst_84 = arith.constant 1.600000e+01 : f32
    %108 = vector.broadcast %cst_84 : f32 to vector<1x128xf32>
    %109 = arith.divf %107, %108 : vector<1x128xf32>
    %cst_85 = arith.constant dense<0.000000e+00> : vector<1x128xf32>
    %110 = tpu.matmul %109, %2, %cst_85 {dimension_numbers = #tpu.dot_dimension_numbers<[1], [0], [0], [1], [0, 0, 1, 1], [], []>} : vector<1x128xf32>, vector<128x128xf32>, vector<1x128xf32> -> vector<1x128xf32>
    %111 = vector.broadcast %110 : vector<1x128xf32> to vector<16x128xf32>
    %112 = arith.subf %105, %111 : vector<16x128xf32>
    %113 = arith.mulf %112, %112 : vector<16x128xf32>
    %cst_86 = arith.constant dense<0.000000e+00> : vector<128xf32>
    %114 = vector.multi_reduction <add>, %113, %cst_86 [0] : vector<16x128xf32> to vector<128xf32>
    %115 = vector.shape_cast %114 : vector<128xf32> to vector<1x128xf32>
    %cst_87 = arith.constant 1.600000e+01 : f32
    %116 = vector.broadcast %cst_87 : f32 to vector<1x128xf32>
    %117 = arith.divf %115, %116 : vector<1x128xf32>
    %cst_88 = arith.constant dense<0.000000e+00> : vector<1x128xf32>
    %118 = tpu.matmul %117, %2, %cst_88 {dimension_numbers = #tpu.dot_dimension_numbers<[1], [0], [0], [1], [0, 0, 1, 1], [], []>} : vector<1x128xf32>, vector<128x128xf32>, vector<1x128xf32> -> vector<1x128xf32>
    %cst_89 = arith.constant 0.000000e+00 : f32
    %119 = vector.broadcast %cst_89 : f32 to vector<1x128xf32>
    %120 = arith.addf %118, %119 : vector<1x128xf32>
    %121 = math.rsqrt %120 : vector<1x128xf32>
    %122 = vector.broadcast %121 : vector<1x128xf32> to vector<16x128xf32>
    %123 = arith.mulf %112, %122 : vector<16x128xf32>
    %cst_90 = arith.constant 0.000000e+00 : f32
    %124 = vector.broadcast %cst_90 : f32 to vector<16x128xf32>
    %125 = arith.maximumf %123, %124 : vector<16x128xf32>
    %126 = vector.shape_cast %125 : vector<16x128xf32> to vector<2x8x128xf32>
    %c0_91 = arith.constant 0 : index
    %c8_92 = arith.constant 8 : index
    %c0_93 = arith.constant 0 : index
    %127 = vector.load %arg6[%c0_91, %c8_92, %c0_93] : memref<2x24x128xf32, #tpu.memory_space<vmem>>, vector<2x8x128xf32>
    tpu.vector_store %arg6[%c0_91, %c8_92, %c0_93], %126 {strides = array<i32>} : memref<2x24x128xf32, #tpu.memory_space<vmem>>, vector<2x8x128xf32>,
    %c0_94 = arith.constant 0 : index
    %c0_95 = arith.constant 0 : index
    %c0_96 = arith.constant 0 : index
    %128 = vector.load %arg6[%c0_94, %c0_95, %c0_96] : memref<2x24x128xf32, #tpu.memory_space<vmem>>, vector<2x24x128xf32>
    %129 = vector.extract_strided_slice %128 {offsets = [0, 7, 0], sizes = [2, 8, 128], strides = [1, 1, 1]} : vector<2x24x128xf32> to vector<2x8x128xf32>
    %130 = vector.shape_cast %129 : vector<2x8x128xf32> to vector<16x128xf32>
    %c3 = arith.constant 3 : index
    %c0_97 = arith.constant 0 : index
    %c0_98 = arith.constant 0 : index
    %c0_99 = arith.constant 0 : index
    %131 = vector.load %arg2[%c3, %c0_97, %c0_98, %c0_99] : memref<7x3x128x128xf32, #tpu.memory_space<vmem>>, vector<1x1x128x128xf32>
    %132 = vector.shape_cast %131 : vector<1x1x128x128xf32> to vector<128x128xf32>
    %cst_100 = arith.constant dense<0.000000e+00> : vector<16x128xf32>
    %133 = tpu.matmul %130, %132, %cst_100 {dimension_numbers = #tpu.dot_dimension_numbers<[1], [0], [0], [1], [0, 0, 1, 1], [], []>} : vector<16x128xf32>, vector<128x128xf32>, vector<16x128xf32> -> vector<16x128xf32>
    %134 = vector.extract_strided_slice %128 {offsets = [0, 8, 0], sizes = [2, 8, 128], strides = [1, 1, 1]} : vector<2x24x128xf32> to vector<2x8x128xf32>
    %135 = vector.shape_cast %134 : vector<2x8x128xf32> to vector<16x128xf32>
    %c3_101 = arith.constant 3 : index
    %c1_102 = arith.constant 1 : index
    %c0_103 = arith.constant 0 : index
    %c0_104 = arith.constant 0 : index
    %136 = vector.load %arg2[%c3_101, %c1_102, %c0_103, %c0_104] : memref<7x3x128x128xf32, #tpu.memory_space<vmem>>, vector<1x1x128x128xf32>
    %137 = vector.shape_cast %136 : vector<1x1x128x128xf32> to vector<128x128xf32>
    %cst_105 = arith.constant dense<0.000000e+00> : vector<16x128xf32>
    %138 = tpu.matmul %135, %137, %cst_105 {dimension_numbers = #tpu.dot_dimension_numbers<[1], [0], [0], [1], [0, 0, 1, 1], [], []>} : vector<16x128xf32>, vector<128x128xf32>, vector<16x128xf32> -> vector<16x128xf32>
    %139 = arith.addf %133, %138 : vector<16x128xf32>
    %140 = vector.extract_strided_slice %128 {offsets = [0, 9, 0], sizes = [2, 8, 128], strides = [1, 1, 1]} : vector<2x24x128xf32> to vector<2x8x128xf32>
    %141 = vector.shape_cast %140 : vector<2x8x128xf32> to vector<16x128xf32>
    %c3_106 = arith.constant 3 : index
    %c2_107 = arith.constant 2 : index
    %c0_108 = arith.constant 0 : index
    %c0_109 = arith.constant 0 : index
    %142 = vector.load %arg2[%c3_106, %c2_107, %c0_108, %c0_109] : memref<7x3x128x128xf32, #tpu.memory_space<vmem>>, vector<1x1x128x128xf32>
    %143 = vector.shape_cast %142 : vector<1x1x128x128xf32> to vector<128x128xf32>
    %cst_110 = arith.constant dense<0.000000e+00> : vector<16x128xf32>
    %144 = tpu.matmul %141, %143, %cst_110 {dimension_numbers = #tpu.dot_dimension_numbers<[1], [0], [0], [1], [0, 0, 1, 1], [], []>} : vector<16x128xf32>, vector<128x128xf32>, vector<16x128xf32> -> vector<16x128xf32>
    %145 = arith.addf %139, %144 : vector<16x128xf32>
    %cst_111 = arith.constant dense<0.000000e+00> : vector<128xf32>
    %146 = vector.multi_reduction <add>, %145, %cst_111 [0] : vector<16x128xf32> to vector<128xf32>
    %147 = vector.shape_cast %146 : vector<128xf32> to vector<1x128xf32>
    %cst_112 = arith.constant 1.600000e+01 : f32
    %148 = vector.broadcast %cst_112 : f32 to vector<1x128xf32>
    %149 = arith.divf %147, %148 : vector<1x128xf32>
    %cst_113 = arith.constant dense<0.000000e+00> : vector<1x128xf32>
    %150 = tpu.matmul %149, %2, %cst_113 {dimension_numbers = #tpu.dot_dimension_numbers<[1], [0], [0], [1], [0, 0, 1, 1], [], []>} : vector<1x128xf32>, vector<128x128xf32>, vector<1x128xf32> -> vector<1x128xf32>
    %151 = vector.broadcast %150 : vector<1x128xf32> to vector<16x128xf32>
    %152 = arith.subf %145, %151 : vector<16x128xf32>
    %153 = arith.mulf %152, %152 : vector<16x128xf32>
    %cst_114 = arith.constant dense<0.000000e+00> : vector<128xf32>
    %154 = vector.multi_reduction <add>, %153, %cst_114 [0] : vector<16x128xf32> to vector<128xf32>
    %155 = vector.shape_cast %154 : vector<128xf32> to vector<1x128xf32>
    %cst_115 = arith.constant 1.600000e+01 : f32
    %156 = vector.broadcast %cst_115 : f32 to vector<1x128xf32>
    %157 = arith.divf %155, %156 : vector<1x128xf32>
    %cst_116 = arith.constant dense<0.000000e+00> : vector<1x128xf32>
    %158 = tpu.matmul %157, %2, %cst_116 {dimension_numbers = #tpu.dot_dimension_numbers<[1], [0], [0], [1], [0, 0, 1, 1], [], []>} : vector<1x128xf32>, vector<128x128xf32>, vector<1x128xf32> -> vector<1x128xf32>
    %cst_117 = arith.constant 0.000000e+00 : f32
    %159 = vector.broadcast %cst_117 : f32 to vector<1x128xf32>
    %160 = arith.addf %158, %159 : vector<1x128xf32>
    %161 = math.rsqrt %160 : vector<1x128xf32>
    %162 = vector.broadcast %161 : vector<1x128xf32> to vector<16x128xf32>
    %163 = arith.mulf %152, %162 : vector<16x128xf32>
    %cst_118 = arith.constant 0.000000e+00 : f32
    %164 = vector.broadcast %cst_118 : f32 to vector<16x128xf32>
    %165 = arith.maximumf %163, %164 : vector<16x128xf32>
    %166 = vector.shape_cast %165 : vector<16x128xf32> to vector<2x8x128xf32>
    %c0_119 = arith.constant 0 : index
    %c8_120 = arith.constant 8 : index
    %c0_121 = arith.constant 0 : index
    %167 = vector.load %arg6[%c0_119, %c8_120, %c0_121] : memref<2x24x128xf32, #tpu.memory_space<vmem>>, vector<2x8x128xf32>
    tpu.vector_store %arg6[%c0_119, %c8_120, %c0_121], %166 {strides = array<i32>} : memref<2x24x128xf32, #tpu.memory_space<vmem>>, vector<2x8x128xf32>,
    %c0_122 = arith.constant 0 : index
    %c0_123 = arith.constant 0 : index
    %c0_124 = arith.constant 0 : index
    %168 = vector.load %arg6[%c0_122, %c0_123, %c0_124] : memref<2x24x128xf32, #tpu.memory_space<vmem>>, vector<2x24x128xf32>
    %169 = vector.extract_strided_slice %168 {offsets = [0, 7, 0], sizes = [2, 8, 128], strides = [1, 1, 1]} : vector<2x24x128xf32> to vector<2x8x128xf32>
    %170 = vector.shape_cast %169 : vector<2x8x128xf32> to vector<16x128xf32>
    %c4 = arith.constant 4 : index
    %c0_125 = arith.constant 0 : index
    %c0_126 = arith.constant 0 : index
    %c0_127 = arith.constant 0 : index
    %171 = vector.load %arg2[%c4, %c0_125, %c0_126, %c0_127] : memref<7x3x128x128xf32, #tpu.memory_space<vmem>>, vector<1x1x128x128xf32>
    %172 = vector.shape_cast %171 : vector<1x1x128x128xf32> to vector<128x128xf32>
    %cst_128 = arith.constant dense<0.000000e+00> : vector<16x128xf32>
    %173 = tpu.matmul %170, %172, %cst_128 {dimension_numbers = #tpu.dot_dimension_numbers<[1], [0], [0], [1], [0, 0, 1, 1], [], []>} : vector<16x128xf32>, vector<128x128xf32>, vector<16x128xf32> -> vector<16x128xf32>
    %174 = vector.extract_strided_slice %168 {offsets = [0, 8, 0], sizes = [2, 8, 128], strides = [1, 1, 1]} : vector<2x24x128xf32> to vector<2x8x128xf32>
    %175 = vector.shape_cast %174 : vector<2x8x128xf32> to vector<16x128xf32>
    %c4_129 = arith.constant 4 : index
    %c1_130 = arith.constant 1 : index
    %c0_131 = arith.constant 0 : index
    %c0_132 = arith.constant 0 : index
    %176 = vector.load %arg2[%c4_129, %c1_130, %c0_131, %c0_132] : memref<7x3x128x128xf32, #tpu.memory_space<vmem>>, vector<1x1x128x128xf32>
    %177 = vector.shape_cast %176 : vector<1x1x128x128xf32> to vector<128x128xf32>
    %cst_133 = arith.constant dense<0.000000e+00> : vector<16x128xf32>
    %178 = tpu.matmul %175, %177, %cst_133 {dimension_numbers = #tpu.dot_dimension_numbers<[1], [0], [0], [1], [0, 0, 1, 1], [], []>} : vector<16x128xf32>, vector<128x128xf32>, vector<16x128xf32> -> vector<16x128xf32>
    %179 = arith.addf %173, %178 : vector<16x128xf32>
    %180 = vector.extract_strided_slice %168 {offsets = [0, 9, 0], sizes = [2, 8, 128], strides = [1, 1, 1]} : vector<2x24x128xf32> to vector<2x8x128xf32>
    %181 = vector.shape_cast %180 : vector<2x8x128xf32> to vector<16x128xf32>
    %c4_134 = arith.constant 4 : index
    %c2_135 = arith.constant 2 : index
    %c0_136 = arith.constant 0 : index
    %c0_137 = arith.constant 0 : index
    %182 = vector.load %arg2[%c4_134, %c2_135, %c0_136, %c0_137] : memref<7x3x128x128xf32, #tpu.memory_space<vmem>>, vector<1x1x128x128xf32>
    %183 = vector.shape_cast %182 : vector<1x1x128x128xf32> to vector<128x128xf32>
    %cst_138 = arith.constant dense<0.000000e+00> : vector<16x128xf32>
    %184 = tpu.matmul %181, %183, %cst_138 {dimension_numbers = #tpu.dot_dimension_numbers<[1], [0], [0], [1], [0, 0, 1, 1], [], []>} : vector<16x128xf32>, vector<128x128xf32>, vector<16x128xf32> -> vector<16x128xf32>
    %185 = arith.addf %179, %184 : vector<16x128xf32>
    %186 = arith.addf %185, %105 : vector<16x128xf32>
    %cst_139 = arith.constant dense<0.000000e+00> : vector<128xf32>
    %187 = vector.multi_reduction <add>, %186, %cst_139 [0] : vector<16x128xf32> to vector<128xf32>
    %188 = vector.shape_cast %187 : vector<128xf32> to vector<1x128xf32>
    %cst_140 = arith.constant 1.600000e+01 : f32
    %189 = vector.broadcast %cst_140 : f32 to vector<1x128xf32>
    %190 = arith.divf %188, %189 : vector<1x128xf32>
    %cst_141 = arith.constant dense<0.000000e+00> : vector<1x128xf32>
    %191 = tpu.matmul %190, %2, %cst_141 {dimension_numbers = #tpu.dot_dimension_numbers<[1], [0], [0], [1], [0, 0, 1, 1], [], []>} : vector<1x128xf32>, vector<128x128xf32>, vector<1x128xf32> -> vector<1x128xf32>
    %192 = vector.broadcast %191 : vector<1x128xf32> to vector<16x128xf32>
    %193 = arith.subf %186, %192 : vector<16x128xf32>
    %194 = arith.mulf %193, %193 : vector<16x128xf32>
    %cst_142 = arith.constant dense<0.000000e+00> : vector<128xf32>
    %195 = vector.multi_reduction <add>, %194, %cst_142 [0] : vector<16x128xf32> to vector<128xf32>
    %196 = vector.shape_cast %195 : vector<128xf32> to vector<1x128xf32>
    %cst_143 = arith.constant 1.600000e+01 : f32
    %197 = vector.broadcast %cst_143 : f32 to vector<1x128xf32>
    %198 = arith.divf %196, %197 : vector<1x128xf32>
    %cst_144 = arith.constant dense<0.000000e+00> : vector<1x128xf32>
    %199 = tpu.matmul %198, %2, %cst_144 {dimension_numbers = #tpu.dot_dimension_numbers<[1], [0], [0], [1], [0, 0, 1, 1], [], []>} : vector<1x128xf32>, vector<128x128xf32>, vector<1x128xf32> -> vector<1x128xf32>
    %cst_145 = arith.constant 0.000000e+00 : f32
    %200 = vector.broadcast %cst_145 : f32 to vector<1x128xf32>
    %201 = arith.addf %199, %200 : vector<1x128xf32>
    %202 = math.rsqrt %201 : vector<1x128xf32>
    %203 = vector.broadcast %202 : vector<1x128xf32> to vector<16x128xf32>
    %204 = arith.mulf %193, %203 : vector<16x128xf32>
    %cst_146 = arith.constant 0.000000e+00 : f32
    %205 = vector.broadcast %cst_146 : f32 to vector<16x128xf32>
    %206 = arith.maximumf %204, %205 : vector<16x128xf32>
    %207 = vector.shape_cast %206 : vector<16x128xf32> to vector<2x8x128xf32>
    %c0_147 = arith.constant 0 : index
    %c8_148 = arith.constant 8 : index
    %c0_149 = arith.constant 0 : index
    %208 = vector.load %arg6[%c0_147, %c8_148, %c0_149] : memref<2x24x128xf32, #tpu.memory_space<vmem>>, vector<2x8x128xf32>
    tpu.vector_store %arg6[%c0_147, %c8_148, %c0_149], %207 {strides = array<i32>} : memref<2x24x128xf32, #tpu.memory_space<vmem>>, vector<2x8x128xf32>,
    %c0_150 = arith.constant 0 : index
    %c0_151 = arith.constant 0 : index
    %c0_152 = arith.constant 0 : index
    %209 = vector.load %arg6[%c0_150, %c0_151, %c0_152] : memref<2x24x128xf32, #tpu.memory_space<vmem>>, vector<2x24x128xf32>
    %210 = vector.extract_strided_slice %209 {offsets = [0, 7, 0], sizes = [2, 8, 128], strides = [1, 1, 1]} : vector<2x24x128xf32> to vector<2x8x128xf32>
    %211 = vector.shape_cast %210 : vector<2x8x128xf32> to vector<16x128xf32>
    %c5 = arith.constant 5 : index
    %c0_153 = arith.constant 0 : index
    %c0_154 = arith.constant 0 : index
    %c0_155 = arith.constant 0 : index
    %212 = vector.load %arg2[%c5, %c0_153, %c0_154, %c0_155] : memref<7x3x128x128xf32, #tpu.memory_space<vmem>>, vector<1x1x128x128xf32>
    %213 = vector.shape_cast %212 : vector<1x1x128x128xf32> to vector<128x128xf32>
    %cst_156 = arith.constant dense<0.000000e+00> : vector<16x128xf32>
    %214 = tpu.matmul %211, %213, %cst_156 {dimension_numbers = #tpu.dot_dimension_numbers<[1], [0], [0], [1], [0, 0, 1, 1], [], []>} : vector<16x128xf32>, vector<128x128xf32>, vector<16x128xf32> -> vector<16x128xf32>
    %215 = vector.extract_strided_slice %209 {offsets = [0, 8, 0], sizes = [2, 8, 128], strides = [1, 1, 1]} : vector<2x24x128xf32> to vector<2x8x128xf32>
    %216 = vector.shape_cast %215 : vector<2x8x128xf32> to vector<16x128xf32>
    %c5_157 = arith.constant 5 : index
    %c1_158 = arith.constant 1 : index
    %c0_159 = arith.constant 0 : index
    %c0_160 = arith.constant 0 : index
    %217 = vector.load %arg2[%c5_157, %c1_158, %c0_159, %c0_160] : memref<7x3x128x128xf32, #tpu.memory_space<vmem>>, vector<1x1x128x128xf32>
    %218 = vector.shape_cast %217 : vector<1x1x128x128xf32> to vector<128x128xf32>
    %cst_161 = arith.constant dense<0.000000e+00> : vector<16x128xf32>
    %219 = tpu.matmul %216, %218, %cst_161 {dimension_numbers = #tpu.dot_dimension_numbers<[1], [0], [0], [1], [0, 0, 1, 1], [], []>} : vector<16x128xf32>, vector<128x128xf32>, vector<16x128xf32> -> vector<16x128xf32>
    %220 = arith.addf %214, %219 : vector<16x128xf32>
    %221 = vector.extract_strided_slice %209 {offsets = [0, 9, 0], sizes = [2, 8, 128], strides = [1, 1, 1]} : vector<2x24x128xf32> to vector<2x8x128xf32>
    %222 = vector.shape_cast %221 : vector<2x8x128xf32> to vector<16x128xf32>
    %c5_162 = arith.constant 5 : index
    %c2_163 = arith.constant 2 : index
    %c0_164 = arith.constant 0 : index
    %c0_165 = arith.constant 0 : index
    %223 = vector.load %arg2[%c5_162, %c2_163, %c0_164, %c0_165] : memref<7x3x128x128xf32, #tpu.memory_space<vmem>>, vector<1x1x128x128xf32>
    %224 = vector.shape_cast %223 : vector<1x1x128x128xf32> to vector<128x128xf32>
    %cst_166 = arith.constant dense<0.000000e+00> : vector<16x128xf32>
    %225 = tpu.matmul %222, %224, %cst_166 {dimension_numbers = #tpu.dot_dimension_numbers<[1], [0], [0], [1], [0, 0, 1, 1], [], []>} : vector<16x128xf32>, vector<128x128xf32>, vector<16x128xf32> -> vector<16x128xf32>
    %226 = arith.addf %220, %225 : vector<16x128xf32>
    %cst_167 = arith.constant dense<0.000000e+00> : vector<128xf32>
    %227 = vector.multi_reduction <add>, %226, %cst_167 [0] : vector<16x128xf32> to vector<128xf32>
    %228 = vector.shape_cast %227 : vector<128xf32> to vector<1x128xf32>
    %cst_168 = arith.constant 1.600000e+01 : f32
    %229 = vector.broadcast %cst_168 : f32 to vector<1x128xf32>
    %230 = arith.divf %228, %229 : vector<1x128xf32>
    %cst_169 = arith.constant dense<0.000000e+00> : vector<1x128xf32>
    %231 = tpu.matmul %230, %2, %cst_169 {dimension_numbers = #tpu.dot_dimension_numbers<[1], [0], [0], [1], [0, 0, 1, 1], [], []>} : vector<1x128xf32>, vector<128x128xf32>, vector<1x128xf32> -> vector<1x128xf32>
    %232 = vector.broadcast %231 : vector<1x128xf32> to vector<16x128xf32>
    %233 = arith.subf %226, %232 : vector<16x128xf32>
    %234 = arith.mulf %233, %233 : vector<16x128xf32>
    %cst_170 = arith.constant dense<0.000000e+00> : vector<128xf32>
    %235 = vector.multi_reduction <add>, %234, %cst_170 [0] : vector<16x128xf32> to vector<128xf32>
    %236 = vector.shape_cast %235 : vector<128xf32> to vector<1x128xf32>
    %cst_171 = arith.constant 1.600000e+01 : f32
    %237 = vector.broadcast %cst_171 : f32 to vector<1x128xf32>
    %238 = arith.divf %236, %237 : vector<1x128xf32>
    %cst_172 = arith.constant dense<0.000000e+00> : vector<1x128xf32>
    %239 = tpu.matmul %238, %2, %cst_172 {dimension_numbers = #tpu.dot_dimension_numbers<[1], [0], [0], [1], [0, 0, 1, 1], [], []>} : vector<1x128xf32>, vector<128x128xf32>, vector<1x128xf32> -> vector<1x128xf32>
    %cst_173 = arith.constant 0.000000e+00 : f32
    %240 = vector.broadcast %cst_173 : f32 to vector<1x128xf32>
    %241 = arith.addf %239, %240 : vector<1x128xf32>
    %242 = math.rsqrt %241 : vector<1x128xf32>
    %243 = vector.broadcast %242 : vector<1x128xf32> to vector<16x128xf32>
    %244 = arith.mulf %233, %243 : vector<16x128xf32>
    %cst_174 = arith.constant 0.000000e+00 : f32
    %245 = vector.broadcast %cst_174 : f32 to vector<16x128xf32>
    %246 = arith.maximumf %244, %245 : vector<16x128xf32>
    %247 = vector.shape_cast %246 : vector<16x128xf32> to vector<2x8x128xf32>
    %c0_175 = arith.constant 0 : index
    %c8_176 = arith.constant 8 : index
    %c0_177 = arith.constant 0 : index
    %248 = vector.load %arg6[%c0_175, %c8_176, %c0_177] : memref<2x24x128xf32, #tpu.memory_space<vmem>>, vector<2x8x128xf32>
    tpu.vector_store %arg6[%c0_175, %c8_176, %c0_177], %247 {strides = array<i32>} : memref<2x24x128xf32, #tpu.memory_space<vmem>>, vector<2x8x128xf32>,
    %c0_178 = arith.constant 0 : index
    %c0_179 = arith.constant 0 : index
    %c0_180 = arith.constant 0 : index
    %249 = vector.load %arg6[%c0_178, %c0_179, %c0_180] : memref<2x24x128xf32, #tpu.memory_space<vmem>>, vector<2x24x128xf32>
    %250 = vector.extract_strided_slice %249 {offsets = [0, 7, 0], sizes = [2, 8, 128], strides = [1, 1, 1]} : vector<2x24x128xf32> to vector<2x8x128xf32>
    %251 = vector.shape_cast %250 : vector<2x8x128xf32> to vector<16x128xf32>
    %c6 = arith.constant 6 : index
    %c0_181 = arith.constant 0 : index
    %c0_182 = arith.constant 0 : index
    %c0_183 = arith.constant 0 : index
    %252 = vector.load %arg2[%c6, %c0_181, %c0_182, %c0_183] : memref<7x3x128x128xf32, #tpu.memory_space<vmem>>, vector<1x1x128x128xf32>
    %253 = vector.shape_cast %252 : vector<1x1x128x128xf32> to vector<128x128xf32>
    %cst_184 = arith.constant dense<0.000000e+00> : vector<16x128xf32>
    %254 = tpu.matmul %251, %253, %cst_184 {dimension_numbers = #tpu.dot_dimension_numbers<[1], [0], [0], [1], [0, 0, 1, 1], [], []>} : vector<16x128xf32>, vector<128x128xf32>, vector<16x128xf32> -> vector<16x128xf32>
    %255 = vector.extract_strided_slice %249 {offsets = [0, 8, 0], sizes = [2, 8, 128], strides = [1, 1, 1]} : vector<2x24x128xf32> to vector<2x8x128xf32>
    %256 = vector.shape_cast %255 : vector<2x8x128xf32> to vector<16x128xf32>
    %c6_185 = arith.constant 6 : index
    %c1_186 = arith.constant 1 : index
    %c0_187 = arith.constant 0 : index
    %c0_188 = arith.constant 0 : index
    %257 = vector.load %arg2[%c6_185, %c1_186, %c0_187, %c0_188] : memref<7x3x128x128xf32, #tpu.memory_space<vmem>>, vector<1x1x128x128xf32>
    %258 = vector.shape_cast %257 : vector<1x1x128x128xf32> to vector<128x128xf32>
    %cst_189 = arith.constant dense<0.000000e+00> : vector<16x128xf32>
    %259 = tpu.matmul %256, %258, %cst_189 {dimension_numbers = #tpu.dot_dimension_numbers<[1], [0], [0], [1], [0, 0, 1, 1], [], []>} : vector<16x128xf32>, vector<128x128xf32>, vector<16x128xf32> -> vector<16x128xf32>
    %260 = arith.addf %254, %259 : vector<16x128xf32>
    %261 = vector.extract_strided_slice %249 {offsets = [0, 9, 0], sizes = [2, 8, 128], strides = [1, 1, 1]} : vector<2x24x128xf32> to vector<2x8x128xf32>
    %262 = vector.shape_cast %261 : vector<2x8x128xf32> to vector<16x128xf32>
    %c6_190 = arith.constant 6 : index
    %c2_191 = arith.constant 2 : index
    %c0_192 = arith.constant 0 : index
    %c0_193 = arith.constant 0 : index
    %263 = vector.load %arg2[%c6_190, %c2_191, %c0_192, %c0_193] : memref<7x3x128x128xf32, #tpu.memory_space<vmem>>, vector<1x1x128x128xf32>
    %264 = vector.shape_cast %263 : vector<1x1x128x128xf32> to vector<128x128xf32>
    %cst_194 = arith.constant dense<0.000000e+00> : vector<16x128xf32>
    %265 = tpu.matmul %262, %264, %cst_194 {dimension_numbers = #tpu.dot_dimension_numbers<[1], [0], [0], [1], [0, 0, 1, 1], [], []>} : vector<16x128xf32>, vector<128x128xf32>, vector<16x128xf32> -> vector<16x128xf32>
    %266 = arith.addf %260, %265 : vector<16x128xf32>
    %267 = arith.addf %266, %186 : vector<16x128xf32>
    %cst_195 = arith.constant dense<0.000000e+00> : vector<128xf32>
    %268 = vector.multi_reduction <add>, %267, %cst_195 [0] : vector<16x128xf32> to vector<128xf32>
    %269 = vector.shape_cast %268 : vector<128xf32> to vector<1x128xf32>
    %cst_196 = arith.constant 1.600000e+01 : f32
    %270 = vector.broadcast %cst_196 : f32 to vector<1x128xf32>
    %271 = arith.divf %269, %270 : vector<1x128xf32>
    %cst_197 = arith.constant dense<0.000000e+00> : vector<1x128xf32>
    %272 = tpu.matmul %271, %2, %cst_197 {dimension_numbers = #tpu.dot_dimension_numbers<[1], [0], [0], [1], [0, 0, 1, 1], [], []>} : vector<1x128xf32>, vector<128x128xf32>, vector<1x128xf32> -> vector<1x128xf32>
    %273 = vector.broadcast %272 : vector<1x128xf32> to vector<16x128xf32>
    %274 = arith.subf %267, %273 : vector<16x128xf32>
    %275 = arith.mulf %274, %274 : vector<16x128xf32>
    %cst_198 = arith.constant dense<0.000000e+00> : vector<128xf32>
    %276 = vector.multi_reduction <add>, %275, %cst_198 [0] : vector<16x128xf32> to vector<128xf32>
    %277 = vector.shape_cast %276 : vector<128xf32> to vector<1x128xf32>
    %cst_199 = arith.constant 1.600000e+01 : f32
    %278 = vector.broadcast %cst_199 : f32 to vector<1x128xf32>
    %279 = arith.divf %277, %278 : vector<1x128xf32>
    %cst_200 = arith.constant dense<0.000000e+00> : vector<1x128xf32>
    %280 = tpu.matmul %279, %2, %cst_200 {dimension_numbers = #tpu.dot_dimension_numbers<[1], [0], [0], [1], [0, 0, 1, 1], [], []>} : vector<1x128xf32>, vector<128x128xf32>, vector<1x128xf32> -> vector<1x128xf32>
    %cst_201 = arith.constant 0.000000e+00 : f32
    %281 = vector.broadcast %cst_201 : f32 to vector<1x128xf32>
    %282 = arith.addf %280, %281 : vector<1x128xf32>
    %283 = math.rsqrt %282 : vector<1x128xf32>
    %284 = vector.broadcast %283 : vector<1x128xf32> to vector<16x128xf32>
    %285 = arith.mulf %274, %284 : vector<16x128xf32>
    %cst_202 = arith.constant 0.000000e+00 : f32
    %286 = vector.broadcast %cst_202 : f32 to vector<16x128xf32>
    %287 = arith.maximumf %285, %286 : vector<16x128xf32>
    %288 = vector.shape_cast %287 : vector<16x128xf32> to vector<2x8x128xf32>
    %cst_203 = arith.constant dense<0.000000e+00> : vector<2x128xf32>
    %289 = vector.multi_reduction <add>, %288, %cst_203 [1] : vector<2x8x128xf32> to vector<2x128xf32>
    %cst_204 = arith.constant 8.000000e+00 : f32
    %290 = vector.broadcast %cst_204 : f32 to vector<2x128xf32>
    %291 = arith.divf %289, %290 : vector<2x128xf32>
    %c0_205 = arith.constant 0 : index
    %c0_206 = arith.constant 0 : index
    %292 = vector.load %arg3[%c0_205, %c0_206] : memref<128x10xf32, #tpu.memory_space<vmem>>, vector<128x10xf32>
    %cst_207 = arith.constant dense<0.000000e+00> : vector<2x10xf32>
    %293 = tpu.matmul %291, %292, %cst_207 {dimension_numbers = #tpu.dot_dimension_numbers<[1], [0], [0], [1], [0, 0, 1, 1], [], []>} : vector<2x128xf32>, vector<128x10xf32>, vector<2x10xf32> -> vector<2x10xf32>
    %c0_208 = arith.constant 0 : index
    %c0_209 = arith.constant 0 : index
    %294 = vector.load %arg5[%c0_208, %c0_209] : memref<2x10xf32, #tpu.memory_space<vmem>>, vector<2x10xf32>
    tpu.vector_store %arg5[%c0_208, %c0_209], %293 {strides = array<i32>} : memref<2x10xf32, #tpu.memory_space<vmem>>, vector<2x10xf32>,
    return
  }
  func.func @transform_0(%arg0: i32) -> (i32, i32, i32) {
    %c0_i32 = arith.constant 0 : i32
    %c0_i32_0 = arith.constant 0 : i32
    %c0_i32_1 = arith.constant 0 : i32
    %c0_i32_2 = arith.constant 0 : i32
    return %c0_i32, %c0_i32_0, %c0_i32_1 : i32, i32, i32
  }
  func.func @transform_1(%arg0: i32) -> (i32, i32, i32, i32) {
    %c0_i32 = arith.constant 0 : i32
    %c0_i32_0 = arith.constant 0 : i32
    %c0_i32_1 = arith.constant 0 : i32
    %c0_i32_2 = arith.constant 0 : i32
    %c0_i32_3 = arith.constant 0 : i32
    return %c0_i32, %c0_i32_0, %c0_i32_1, %c0_i32_2 : i32, i32, i32, i32
  }
  func.func @transform_2(%arg0: i32) -> (i32, i32) {
    %c0_i32 = arith.constant 0 : i32
    %c0_i32_0 = arith.constant 0 : i32
    %c0_i32_1 = arith.constant 0 : i32
    return %c0_i32, %c0_i32_0 : i32, i32
  }
  func.func @transform_3(%arg0: i32) -> (i32, i32) {
    %c0_i32 = arith.constant 0 : i32
    %c0_i32_0 = arith.constant 0 : i32
    %c0_i32_1 = arith.constant 0 : i32
    return %c0_i32, %c0_i32_0 : i32, i32
  }
  func.func @transform_4(%arg0: i32) -> (i32, i32) {
    %c0_i32 = arith.constant 0 : i32
    %c0_i32_0 = arith.constant 0 : i32
    %c0_i32_1 = arith.constant 0 : i32
    return %c0_i32, %c0_i32_0 : i32, i32
  }
}

</mosaic_0001>

<bundles_post_ra>
// kernel: tpu_custom_call.1
= control target key start
LH: loop header
LB: loop body
LE: loop exit
PB: predicated region body
PF: predicated region fallthrough
CT: control target
= control target key end

     0   :  { %9 = vsyncpa [#allocation4], 0  ;;  %s2474_s0 = inlined_call_operand.hbm [shape: f32[2,8,128], index: 0, kind: input, shape index: {}]   ;;  %s2475_s1 = inlined_call_operand.hbm [shape: f32[7,3,128,128], index: 1, kind: input, shape index: {}]   ;;  %s2476_s2 = inlined_call_operand.vmem [shape: f32[128,10], index: 2, kind: input, shape index: {}]   ;;  %s2477_s3 = inlined_call_operand.hbm [shape: f32[128,128], index: 3, kind: input, shape index: {}]   ;;  %s2478_s4 = inlined_call_operand.hbm [shape: f32[2,10], index: 4, kind: output, shape index: {}]  }
   0x1   :  { %10 = vsyncpa [#allocation7], 0 }
   0x2   :  { %11 = vsyncpa [#allocation5], 0  ;;  %s29_s17 = sshll.u32 %s2475_s1, 4  ;;  %s1942_s18 = smov [#allocation6]   ;;  %s30_s17 = int_to_ptr.hbm [resolvable:$true] %s29_s17 }
   0x3   :  { %s31_s19 = sshll.u32 %s1942_s18, 4  ;;  %s16_s22 = sshll.u32 %s2474_s0, 4  ;;  %s32_s19 = int_to_ptr.vmem [resolvable:$true] %s31_s19  ;;  %s17_s22 = int_to_ptr.hbm [resolvable:$true] %s16_s22 }
   0x4   :  { %s1943_s23 = smov 128   ;;  %s1944_s24 = smov 8  }
   0x5   :  { %37 = dma.hbm_to_vmem [thread:$0]  %s30_s17, 43008, %s32_s19, [#allocation7], %s1943_s23, %s1943_s23, %s1944_s24  }
   0x6   :  { %s1945_s25 = smov [#allocation3]   ;;  %s44_s29 = sshll.u32 %s2477_s3, 4  ;;  %s45_s29 = int_to_ptr.hbm [resolvable:$true] %s44_s29 }
   0x7   :  { %s18_s26 = sshll.u32 %s1945_s25, 4  ;;  %s1946_s1 = smov [#allocation8]   ;;  %s19_s26 = int_to_ptr.vmem [resolvable:$true] %s18_s26 }
   0x8   :  { %24 = dma.hbm_to_vmem [thread:$0]  %s17_s22, 256, %s19_s26, [#allocation4], %s1943_s23, %s1943_s23, %s1944_s24  }
   0x9   :  { %s46_s30 = sshll.u32 %s1946_s1, 4  ;;  %s47_s30 = int_to_ptr.vmem [resolvable:$true] %s46_s30 }
   0xa   :  { %52 = dma.hbm_to_vmem [thread:$0]  %s45_s29, 2048, %s47_s30, [#allocation7], %s1943_s23, %s1943_s23, %s1944_s24  }
   0xb   :  { %1936 = dma.done.wait [#allocation4], 256  }
   0xc   :  { %1937 = vsyncadd [#allocation4], 4294967040 }
   0xd   :  { %1938 = dma.done.wait [#allocation7], 45056  }
   0xe   :  { %1939 = vsyncadd [#allocation7], 4294922240  ;;  %v216_v0 = vld [vmem:[#allocation6 + $0x178] sm:$0xff]  ;;  %v215_v1 = vld [vmem:[#allocation6 + $0x170] sm:$0xff]  ;;  %v1947_v45 = vmov 0.0   ;;  %vm191_vm0 = vcmask 1046528  }
   0xf   :  { %v142_v2 = vld [vmem:[#allocation6 + $0xf8] sm:$0xff]  ;;  %217 = vmatpush.msra.mxu2 %v216_v0  ;;  %v141_v4 = vld [vmem:[#allocation6 + $0xf0] sm:$0xff]  ;;  %v214_v5 = vld [vmem:[#allocation6 + $0x168] sm:$0xff]  ;;  %v1988_v46 = vrot.slane %v1947_v45, 1  ;;  %v1990_v49 = vrot.slane %v1947_v45, 7  ;;  %vm101_vm1 = vcmask 1040384  }
  0x10   :  { %143 = vmatpush.msra.mxu0 %v142_v2  ;;  %v125_v3 = vld [vmem:[#allocation6 + $0x78] sm:$0xff]  ;;  %v124_v6 = vld [vmem:[#allocation6 + $0x70] sm:$0xff]  ;;  %v140_v7 = vld [vmem:[#allocation6 + $0xe8] sm:$0xff]  ;;  %s1770_s9 = sshll.u32 %s2478_s4, 4  ;;  %s1771_s9 = int_to_ptr.hbm [resolvable:$true] %s1770_s9 }
  0x11   :  { %166 = vmatpush.msra.mxu1 %v125_v3  ;;  %218 = vmatpush.msra.mxu2 %v215_v1  ;;  %v123_v8 = vld [vmem:[#allocation6 + $0x68] sm:$0xff]  ;;  %v213_v9 = vld [vmem:[#allocation6 + $0x160] sm:$0xff]  ;;  %v212_v12 = vld [vmem:[#allocation6 + $0x158] sm:$0xff] }
  0x12   :  { %144 = vmatpush.msra.mxu0 %v141_v4  ;;  %v139_v10 = vld [vmem:[#allocation6 + $0xe0] sm:$0xff]  ;;  %v138_v13 = vld [vmem:[#allocation6 + $0xd8] sm:$0xff]  ;;  %v211_v15 = vld [vmem:[#allocation6 + $0x150] sm:$0xff] }
  0x13   :  { %167 = vmatpush.msra.mxu1 %v124_v6  ;;  %219 = vmatpush.msra.mxu2 %v214_v5  ;;  %v122_v11 = vld [vmem:[#allocation6 + $0x60] sm:$0xff]  ;;  %v121_v14 = vld [vmem:[#allocation6 + $0x58] sm:$0xff]  ;;  %v137_v16 = vld [vmem:[#allocation6 + $0xd0] sm:$0xff] }
  0x14   :  { %145 = vmatpush.msra.mxu0 %v140_v7  ;;  %v120_v17 = vld [vmem:[#allocation6 + $0x50] sm:$0xff]  ;;  %v210_v18 = vld [vmem:[#allocation6 + $0x148] sm:$0xff]  ;;  %v209_v21 = vld [vmem:[#allocation6 + $0x140] sm:$0xff] }
  0x15   :  { %168 = vmatpush.msra.mxu1 %v123_v8  ;;  %220 = vmatpush.msra.mxu2 %v213_v9  ;;  %v136_v19 = vld [vmem:[#allocation6 + $0xc8] sm:$0xff]  ;;  %v135_v22 = vld [vmem:[#allocation6 + $0xc0] sm:$0xff]  ;;  %v208_v24 = vld [vmem:[#allocation6 + $0x138] sm:$0xff] }
  0x16   :  { %146 = vmatpush.msra.mxu0 %v139_v10  ;;  %v119_v20 = vld [vmem:[#allocation6 + $0x48] sm:$0xff]  ;;  %v118_v23 = vld [vmem:[#allocation6 + $0x40] sm:$0xff]  ;;  %v134_v25 = vld [vmem:[#allocation6 + $0xb8] sm:$0xff] }
  0x17   :  { %169 = vmatpush.msra.mxu1 %v122_v11  ;;  %221 = vmatpush.msra.mxu2 %v212_v12  ;;  %v117_v26 = vld [vmem:[#allocation6 + $0x38] sm:$0xff]  ;;  %v207_v27 = vld [vmem:[#allocation6 + $0x130] sm:$0xff]  ;;  %v206_v31 = vld [vmem:[#allocation6 + $0x128] sm:$0xff] }
  0x18   :  { %147 = vmatpush.msra.mxu0 %v138_v13  ;;  %v133_v28 = vld [vmem:[#allocation6 + $0xb0] sm:$0xff]  ;;  %v1985_v29 = vld [vmem:[#allocation8 + $0x78] sm:$0xff]  ;;  %v132_v32 = vld [vmem:[#allocation6 + $0xa8] sm:$0xff] }
  0x19   :  { %170 = vmatpush.msra.mxu1 %v121_v14  ;;  %222 = vmatpush.msra.mxu2 %v211_v15  ;;  %v116_v30 = vld [vmem:[#allocation6 + $0x30] sm:$0xff]  ;;  %v115_v33 = vld [vmem:[#allocation6 + $0x28] sm:$0xff]  ;;  %v205_v34 = vld [vmem:[#allocation6 + $0x120] sm:$0xff]  ;;  %v1948_v15 = vmov 16.0  }
  0x1a   :  { %148 = vmatpush.msra.mxu0 %v137_v16  ;;  %257 = vmatpush.msra.mxu3 %v1985_v29  ;;  %v131_v35 = vld [vmem:[#allocation6 + $0xa0] sm:$0xff]  ;;  %v204_v37 = vld [vmem:[#allocation6 + $0x118] sm:$0xff]  ;;  %v87_v39 = vld [vmem:[#allocation3] sm:$0xff]  ;;  %1790 = vrcp.f32 %v1948_v15 }
  0x1b   :  { %171 = vmatpush.msra.mxu1 %v120_v17  ;;  %223 = vmatpush.msra.mxu2 %v210_v18  ;;  %v114_v36 = vld [vmem:[#allocation6 + $0x20] sm:$0xff]  ;;  %v130_v38 = vld [vmem:[#allocation6 + $0x98] sm:$0xff]  ;;  %v203_v41 = vld [vmem:[#allocation6 + $0x110] sm:$0xff]  ;;  %v192_v44 = vrot.slane %v87_v39, 1  ;;  %v103_v50 = vrot.slane %v87_v39, 7 }
  0x1c   :  { %149 = vmatpush.msra.mxu0 %v136_v19  ;;  %v113_v40 = vld [vmem:[#allocation6 + $0x18] sm:$0xff]  ;;  %v129_v42 = vld [vmem:[#allocation6 + $0x90] sm:$0xff]  ;;  %v202_v47 = vld [vmem:[#allocation6 + $0x108] sm:$0xff] }
  0x1d   :  { %172 = vmatpush.msra.mxu1 %v119_v20  ;;  %224 = vmatpush.msra.mxu2 %v209_v21  ;;  %v112_v43 = vld [vmem:[#allocation6 + $0x10] sm:$0xff]  ;;  %v128_v48 = vld [vmem:[#allocation6 + $0x88] sm:$0xff]  ;;  %v201_v52 = vld [vmem:[#allocation6 + $0x100] sm:$0xff]  ;;  %v194_v54 = vsel %vm191_vm0, %v192_v44, %v1988_v46  ;;  %v104_v56 = vsel %vm101_vm1, %v1990_v49, %v103_v50 }
  0x1e   :  { %150 = vmatpush.msra.mxu0 %v135_v22  ;;  %v111_v51 = vld [vmem:[#allocation6 + $0x8] sm:$0xff]  ;;  %v127_v53 = vld [vmem:[#allocation6 + $0x80] sm:$0xff]  ;;  %v88_v57 = vld [vmem:[#allocation3 + $0x8] sm:$0xff] }
  0x1f   :  { %173 = vmatpush.msra.mxu1 %v118_v23  ;;  %225 = vmatpush.msra.mxu2 %v208_v24  ;;  %v110_v55 = vld [vmem:[#allocation6] sm:$0xff]  ;;  %v195_v58 = vrot.slane %v88_v57, 1  ;;  %v106_v59 = vrot.slane %v88_v57, 7  ;;  %v2001_v62 = vld [vmem:[#allocation8 + $0x70] sm:$0xff]  ;;  %v2005_v63 = vld [vmem:[#allocation8 + $0x68] sm:$0xff] }
  0x20   :  { %151 = vmatpush.msra.mxu0 %v134_v25  ;;  %258 = vmatpush.msra.mxu3 %v2001_v62  ;;  %v2009_v0 = vld [vmem:[#allocation8 + $0x60] sm:$0xff]  ;;  %v2011_v1 = vld [vmem:[#allocation8 + $0x58] sm:$0xff]  ;;  %v2016_v2 = vld [vmem:[#allocation8 + $0x50] sm:$0xff]  ;;  %v1791_v17 = vpop.eup %1790 }
  0x21   :  { %174 = vmatpush.msra.mxu1 %v117_v26  ;;  %226 = vmatpush.msra.mxu2 %v207_v27  ;;  %v197_v60 = vsel %vm191_vm0, %v195_v58, %v1988_v46  ;;  %v107_v61 = vsel %vm101_vm1, %v1990_v49, %v106_v59  ;;  %v2021_v3 = vld [vmem:[#allocation8 + $0x48] sm:$0xff]  ;;  %v2025_v4 = vld [vmem:[#allocation8 + $0x40] sm:$0xff]  ;;  %v2029_v5 = vld [vmem:[#allocation8 + $0x38] sm:$0xff]  ;;  %v250_v22 = vmul.f32 16.0, %v1791_v17  ;;  %vm254_vm2 = vweird.f32 %v1791_v17 }
  0x22   :  { %152 = vmatpush.msra.mxu0 %v133_v28  ;;  %259 = vmatpush.msra.mxu3 %v2005_v63  ;;  %v2033_v6 = vld [vmem:[#allocation8 + $0x30] sm:$0xff]  ;;  %v2037_v7 = vld [vmem:[#allocation8 + $0x28] sm:$0xff]  ;;  %v2039_v8 = vld [vmem:[#allocation8 + $0x20] sm:$0xff] }
  0x23   :  { %175 = vmatpush.msra.mxu1 %v116_v30  ;;  %227 = vmatpush.msra.mxu2 %v206_v31  ;;  %v2043_v9 = vld [vmem:[#allocation8 + $0x18] sm:$0xff]  ;;  %v2047_v10 = vld [vmem:[#allocation8 + $0x10] sm:$0xff]  ;;  %v2051_v11 = vld [vmem:[#allocation8 + $0x8] sm:$0xff]  ;;  %v251_v26 = vsub.f32 1.0, %v250_v22 }
  0x24   :  { %153 = vmatpush.msra.mxu0 %v132_v32  ;;  %260 = vmatpush.msra.mxu3 %v2009_v0  ;;  %v2055_v12 = vld [vmem:[#allocation8] sm:$0xff]  ;;  %v376_v44 = vld [vmem:[#allocation6 + $0x268] sm:$0xff]  ;;  %v450_v45 = vld [vmem:[#allocation6 + $0x2f0] sm:$0xff] }
  0x25   :  { %176 = vmatpush.msra.mxu1 %v115_v33  ;;  %228 = vmatpush.msra.mxu2 %v205_v34  ;;  %v252_v30 = vmul.f32 %v1791_v17, %v251_v26  ;;  %v449_v15 = vld [vmem:[#allocation6 + $0x2e8] sm:$0xff]  ;;  %v446_v26 = vld [vmem:[#allocation6 + $0x2d0] sm:$0xff] }
  0x26   :  { %154 = vmatpush.msra.mxu0 %v131_v35  ;;  %261 = vmatpush.msra.mxu3 %v2011_v1  ;;  %v372_v22 = vld [vmem:[#allocation6 + $0x248] sm:$0xff] }
  0x27   :  { %177 = vmatpush.msra.mxu1 %v114_v36  ;;  %229 = vmatpush.msra.mxu2 %v204_v37  ;;  %v253_v33 = vadd.f32 %v1791_v17, %v252_v30  ;;  %v445_v30 = vld [vmem:[#allocation6 + $0x2c8] sm:$0xff] }
  0x28   :  { %155 = vmatpush.msra.mxu0 %v130_v38  ;;  %262 = vmatpush.msra.mxu3 %v2016_v2 }
  0x29   :  { %178 = vmatpush.msra.mxu1 %v113_v40  ;;  %230 = vmatpush.msra.mxu2 %v203_v41  ;;  %v2081_v36 = vsel %vm254_vm2, %v1791_v17, %v253_v33  ;;  %v377_v40 = vld [vmem:[#allocation6 + $0x270] sm:$0xff]  ;;  %v361_v41 = vld [vmem:[#allocation6 + $0x1f8] sm:$0xff]  ;;  %v358_v17 = vld [vmem:[#allocation6 + $0x1e0] sm:$0xff] }
  0x2a   :  { %156 = vmatpush.msra.mxu0 %v129_v42  ;;  %263 = vmatpush.msra.mxu3 %v2021_v3  ;;  %v451_v42 = vld [vmem:[#allocation6 + $0x2f8] sm:$0xff]  ;;  %v444_v33 = vld [vmem:[#allocation6 + $0x2c0] sm:$0xff] }
  0x2b   :  { %179 = vmatpush.msra.mxu1 %v112_v43  ;;  %231 = vmatpush.msra.mxu2 %v202_v47  ;;  %v360_v43 = vld [vmem:[#allocation6 + $0x1f0] sm:$0xff] }
  0x2c   :  { %157 = vmatpush.msra.mxu0 %v128_v48  ;;  %264 = vmatpush.msra.mxu3 %v2025_v4 }
  0x2d   :  { %180 = vmatpush.msra.mxu1 %v111_v51  ;;  %232 = vmatpush.msra.mxu2 %v201_v52 }
  0x2e   :  { %158 = vmatpush.msra.mxu0 %v127_v53  ;;  %233 = vmatmul.f32.vlgmr.msra.gmra.mxu2 %v194_v54 }
  0x2f   :  { %181 = vmatpush.msra.mxu1 %v110_v55  ;;  %159 = vmatmul.f32.vlgmr.msra.gmra.mxu0 %v87_v39  ;;  %v378_v39 = vld [vmem:[#allocation6 + $0x278] sm:$0xff] }
  0x30   :  { %182 = vmatmul.f32.vlgmr.msra.gmra.mxu1 %v104_v56  ;;  %290 = vmatpush.msrb.mxu0 %v1985_v29 }
  0x31   :  { %265 = vmatpush.msra.mxu3 %v2029_v5  ;;  %379 = vmatpush.msrb.mxu1 %v378_v39  ;;  %v352_v39 = vld [vmem:[#allocation6 + $0x1b0] sm:$0xff] }
  0x32   :  { %291 = vmatpush.msrb.mxu0 %v2001_v62  ;;  %402 = vmatpush.msrb.mxu2 %v361_v41  ;;  %v367_v41 = vld [vmem:[#allocation6 + $0x220] sm:$0xff] }
  0x33   :  { %266 = vmatpush.msra.mxu3 %v2033_v6  ;;  %380 = vmatpush.msrb.mxu1 %v377_v40  ;;  %v442_v40 = vld [vmem:[#allocation6 + $0x2b0] sm:$0xff] }
  0x34   :  { %292 = vmatpush.msrb.mxu0 %v2005_v63  ;;  %403 = vmatpush.msrb.mxu2 %v360_v43  ;;  %v441_v43 = vld [vmem:[#allocation6 + $0x2a8] sm:$0xff] }
  0x35   :  { %267 = vmatpush.msra.mxu3 %v2037_v7  ;;  %381 = vmatpush.msrb.mxu1 %v376_v44  ;;  %v366_v44 = vld [vmem:[#allocation6 + $0x218] sm:$0xff] }
  0x36   :  { %236 = vmatmul.f32.gmra.mxu2 %v197_v60  ;;  %293 = vmatpush.msrb.mxu0 %v2009_v0 }
  0x37   :  { %162 = vmatmul.f32.gmra.mxu0 %v88_v57  ;;  %268 = vmatpush.msra.mxu3 %v2039_v8 }
  0x38   :  { %185 = vmatmul.f32.gmra.mxu1 %v107_v61  ;;  %294 = vmatpush.msrb.mxu0 %v2011_v1 }
  0x39   :  { %269 = vmatpush.msra.mxu3 %v2043_v9 }
  0x3a   :  { %295 = vmatpush.msrb.mxu0 %v2016_v2 }
  0x3b   :  { %270 = vmatpush.msra.mxu3 %v2047_v10 }
  0x3c   :  { %296 = vmatpush.msrb.mxu0 %v2021_v3 }
  0x3d   :  { %271 = vmatpush.msra.mxu3 %v2051_v11 }
  0x3e   :  { %297 = vmatpush.msrb.mxu0 %v2025_v4 }
  0x3f   :  { %272 = vmatpush.msra.mxu3 %v2055_v12 }
  0x40   :  { %298 = vmatpush.msrb.mxu0 %v2029_v5 }
  0x41   :  { %452 = vmatpush.msrb.mxu3 %v451_v42  ;;  %v351_v42 = vld [vmem:[#allocation6 + $0x1a8] sm:$0xff] }
  0x42   :  { %299 = vmatpush.msrb.mxu0 %v2033_v6 }
  0x43   :  { %453 = vmatpush.msrb.mxu3 %v450_v45  ;;  %v350_v45 = vld [vmem:[#allocation6 + $0x1a0] sm:$0xff] }
  0x44   :  { %300 = vmatpush.msrb.mxu0 %v2037_v7 }
  0x45   :  { %454 = vmatpush.msrb.mxu3 %v449_v15 }
  0x46   :  { %301 = vmatpush.msrb.mxu0 %v2039_v8 }
  0x48   :  { %302 = vmatpush.msrb.mxu0 %v2043_v9 }
  0x4a   :  { %303 = vmatpush.msrb.mxu0 %v2047_v10 }
  0x4c   :  { %304 = vmatpush.msrb.mxu0 %v2051_v11 }
  0x4e   :  { %305 = vmatpush.msrb.mxu0 %v2055_v12 }
  0x50   :  { %485 = vmatpush.msra.mxu0 %v1985_v29 }
  0x52   :  { %486 = vmatpush.msra.mxu0 %v2001_v62 }
  0x54   :  { %487 = vmatpush.msra.mxu0 %v2005_v63 }
  0x56   :  { %488 = vmatpush.msra.mxu0 %v2009_v0 }
  0x58   :  { %489 = vmatpush.msra.mxu0 %v2011_v1 }
  0x5a   :  { %490 = vmatpush.msra.mxu0 %v2016_v2 }
  0x5c   :  { %491 = vmatpush.msra.mxu0 %v2021_v3 }
  0x5e   :  { %492 = vmatpush.msra.mxu0 %v2025_v4 }
  0x60   :  { %493 = vmatpush.msra.mxu0 %v2029_v5 }
  0x62   :  { %494 = vmatpush.msra.mxu0 %v2033_v6 }
  0x64   :  { %495 = vmatpush.msra.mxu0 %v2037_v7 }
  0x66   :  { %496 = vmatpush.msra.mxu0 %v2039_v8 }
  0x68   :  { %497 = vmatpush.msra.mxu0 %v2043_v9 }
  0x6a   :  { %498 = vmatpush.msra.mxu0 %v2047_v10 }
  0x6c   :  { %499 = vmatpush.msra.mxu0 %v2051_v11 }
  0x6e   :  { %500 = vmatpush.msra.mxu0 %v2055_v12 }
  0xac   :  { %v160_v13 = vpop.f32.mrf.mxu0 }
  0xad   :  { %v183_v14 = vpop.f32.mrf.mxu1 }
  0xae   :  { %v184_v20 = vadd.f32 %v183_v14, %v160_v13  ;;  %v375_v13 = vld [vmem:[#allocation6 + $0x260] sm:$0xff]  ;;  %v359_v14 = vld [vmem:[#allocation6 + $0x1e8] sm:$0xff] }
  0xaf   :  { %382 = vmatpush.msrb.mxu1 %v375_v13  ;;  %404 = vmatpush.msrb.mxu2 %v359_v14 }
  0xb1   :  { %v234_v16 = vpop.f32.mrf.mxu2  ;;  %405 = vmatpush.msrb.mxu2 %v358_v17 }
  0xb2   :  { %v2068_v24 = vadd.f32 %v234_v16, %v184_v20  ;;  %v374_v16 = vld [vmem:[#allocation6 + $0x258] sm:$0xff] }
  0xb3   :  { %383 = vmatpush.msrb.mxu1 %v374_v16  ;;  %v357_v20 = vld [vmem:[#allocation6 + $0x1d8] sm:$0xff] }
  0xb4   :  { %v163_v18 = vpop.f32.mrf.mxu0  ;;  %406 = vmatpush.msrb.mxu2 %v357_v20 }
  0xb5   :  { %v186_v19 = vpop.f32.mrf.mxu1 }
  0xb6   :  { %v187_v21 = vadd.f32 %v186_v19, %v163_v18  ;;  %v448_v18 = vld [vmem:[#allocation6 + $0x2e0] sm:$0xff]  ;;  %v373_v19 = vld [vmem:[#allocation6 + $0x250] sm:$0xff] }
  0xb7   :  { %455 = vmatpush.msrb.mxu3 %v448_v18  ;;  %384 = vmatpush.msrb.mxu1 %v373_v19 }
  0xb9   :  { %v237_v23 = vpop.f32.mrf.mxu2  ;;  %385 = vmatpush.msrb.mxu1 %v372_v22 }
  0xba   :  { %v2070_v25 = vadd.f32 %v237_v23, %v187_v21  ;;  %v447_v21 = vld [vmem:[#allocation6 + $0x2d8] sm:$0xff]  ;;  %v356_v23 = vld [vmem:[#allocation6 + $0x1d0] sm:$0xff] }
  0xbb   :  { %456 = vmatpush.msrb.mxu3 %v447_v21  ;;  %407 = vmatpush.msrb.mxu2 %v356_v23 }
  0xbc   :  { %v242_v27 = vadd.f32 %v2070_v25, %v2068_v24 }
  0xbd   :  { %457 = vmatpush.msrb.mxu3 %v446_v26 }
  0xbe   :  { %v243_v28 = vrot.slane %v242_v27, 4 }
  0xbf   :  { %458 = vmatpush.msrb.mxu3 %v445_v30 }
  0xc0   :  { %v244_v31 = vadd.f32 %v243_v28, %v242_v27  ;;  %v371_v27 = vld [vmem:[#allocation6 + $0x240] sm:$0xff]  ;;  %v355_v28 = vld [vmem:[#allocation6 + $0x1c8] sm:$0xff] }
  0xc1   :  { %386 = vmatpush.msrb.mxu1 %v371_v27  ;;  %408 = vmatpush.msrb.mxu2 %v355_v28 }
  0xc2   :  { %v245_v32 = vrot.slane %v244_v31, 2  ;;  %459 = vmatpush.msrb.mxu3 %v444_v33 }
  0xc4   :  { %v246_v34 = vadd.f32 %v245_v32, %v244_v31  ;;  %v370_v31 = vld [vmem:[#allocation6 + $0x238] sm:$0xff]  ;;  %v354_v32 = vld [vmem:[#allocation6 + $0x1c0] sm:$0xff] }
  0xc5   :  { %387 = vmatpush.msrb.mxu1 %v370_v31  ;;  %409 = vmatpush.msrb.mxu2 %v354_v32 }
  0xc6   :  { %v247_v35 = vrot.slane %v246_v34, 1 }
  0xc8   :  { %v248_v37 = vadd.f32 %v247_v35, %v246_v34  ;;  %v369_v34 = vld [vmem:[#allocation6 + $0x230] sm:$0xff]  ;;  %v353_v35 = vld [vmem:[#allocation6 + $0x1b8] sm:$0xff] }
  0xc9   :  { %388 = vmatpush.msrb.mxu1 %v369_v34  ;;  %410 = vmatpush.msrb.mxu2 %v353_v35 }
  0xca   :  { %v256_v38 = vmul.f32 %v2081_v36, %v248_v37  ;;  %v443_v37 = vld [vmem:[#allocation6 + $0x2b8] sm:$0xff] }
  0xcb   :  { %460 = vmatpush.msrb.mxu3 %v443_v37  ;;  %411 = vmatpush.msrb.mxu2 %v352_v39 }
  0xcc   :  { %273 = vmatmul.f32.vlgmr.msra.gmra.mxu3 %v256_v38  ;;  %v368_v38 = vld [vmem:[#allocation6 + $0x228] sm:$0xff] }
  0xcd   :  { %389 = vmatpush.msrb.mxu1 %v368_v38  ;;  %461 = vmatpush.msrb.mxu3 %v442_v40 }
  0xce   :  { %412 = vmatpush.msrb.mxu2 %v351_v42 }
  0xcf   :  { %390 = vmatpush.msrb.mxu1 %v367_v41  ;;  %462 = vmatpush.msrb.mxu3 %v441_v43 }
  0xd0   :  { %413 = vmatpush.msrb.mxu2 %v350_v45 }
  0xd1   :  { %391 = vmatpush.msrb.mxu1 %v366_v44 }
 0x14f   :  { %v274_v47 = vpop.f32.mrf.mxu3 }
 0x150   :  { %v277_v48 = vperm.slane %v274_v47, 0  ;;  %v440_v47 = vld [vmem:[#allocation6 + $0x2a0] sm:$0xff] }
 0x151   :  { %463 = vmatpush.msrb.mxu3 %v440_v47 }
 0x152   :  { %v2087_v50 = vsub.f32 %v2068_v24, %v277_v48  ;;  %v2090_v51 = vsub.f32 %v2070_v25, %v277_v48  ;;  %v365_v48 = vld [vmem:[#allocation6 + $0x210] sm:$0xff] }
 0x153   :  { %392 = vmatpush.msrb.mxu1 %v365_v48 }
 0x154   :  { %v280_v52 = vmul.f32 %v2087_v50, %v2087_v50  ;;  %v281_v53 = vmul.f32 %v2090_v51, %v2090_v51 }
 0x156   :  { %v282_v54 = vadd.f32 %v281_v53, %v280_v52  ;;  %v349_v52 = vld [vmem:[#allocation6 + $0x198] sm:$0xff] }
 0x157   :  { %v439_v53 = vld [vmem:[#allocation6 + $0x298] sm:$0xff]  ;;  %414 = vmatpush.msrb.mxu2 %v349_v52 }
 0x158   :  { %v283_v55 = vrot.slane %v282_v54, 4  ;;  %464 = vmatpush.msrb.mxu3 %v439_v53 }
 0x15a   :  { %v284_v56 = vadd.f32 %v283_v55, %v282_v54  ;;  %v364_v54 = vld [vmem:[#allocation6 + $0x208] sm:$0xff]  ;;  %v348_v55 = vld [vmem:[#allocation6 + $0x190] sm:$0xff] }
 0x15b   :  { %393 = vmatpush.msrb.mxu1 %v364_v54  ;;  %415 = vmatpush.msrb.mxu2 %v348_v55 }
 0x15c   :  { %v285_v57 = vrot.slane %v284_v56, 2 }
 0x15e   :  { %v286_v58 = vadd.f32 %v285_v57, %v284_v56  ;;  %v438_v56 = vld [vmem:[#allocation6 + $0x290] sm:$0xff]  ;;  %v363_v57 = vld [vmem:[#allocation6 + $0x200] sm:$0xff] }
 0x15f   :  { %465 = vmatpush.msrb.mxu3 %v438_v56  ;;  %394 = vmatpush.msrb.mxu1 %v363_v57 }
 0x160   :  { %v287_v59 = vrot.slane %v286_v58, 1 }
 0x161   :  { %518 = vmatpush.msra.mxu1 %v1985_v29 }
 0x162   :  { %v288_v60 = vadd.f32 %v287_v59, %v286_v58  ;;  %v347_v58 = vld [vmem:[#allocation6 + $0x188] sm:$0xff] }
 0x163   :  { %v437_v59 = vld [vmem:[#allocation6 + $0x288] sm:$0xff]  ;;  %416 = vmatpush.msrb.mxu2 %v347_v58  ;;  %519 = vmatpush.msra.mxu1 %v2001_v62  ;;  %v606_v58 = vld [vmem:[#allocation6 + $0x3f8] sm:$0xff] }
 0x164   :  { %v289_v61 = vmul.f32 %v288_v60, %v2081_v36  ;;  %466 = vmatpush.msrb.mxu3 %v437_v59  ;;  %v346_v60 = vld [vmem:[#allocation6 + $0x180] sm:$0xff]  ;;  %v605_v59 = vld [vmem:[#allocation6 + $0x3f0] sm:$0xff] }
 0x165   :  { %417 = vmatpush.msrb.mxu2 %v346_v60  ;;  %520 = vmatpush.msra.mxu1 %v2005_v63  ;;  %v589_v60 = vld [vmem:[#allocation6 + $0x378] sm:$0xff] }
 0x166   :  { %306 = vmatmul.f32.vlgmr.msrb.gmra.mxu0 %v289_v61  ;;  %v436_v61 = vld [vmem:[#allocation6 + $0x280] sm:$0xff] }
 0x167   :  { %467 = vmatpush.msrb.mxu3 %v436_v61  ;;  %521 = vmatpush.msra.mxu1 %v2009_v0  ;;  %v679_v61 = vld [vmem:[#allocation6 + $0x478] sm:$0xff] }
 0x168   :  { %607 = vmatpush.msra.mxu2 %v606_v58  ;;  %680 = vmatpush.msrb.mxu0 %v679_v61  ;;  %v580_v58 = vld [vmem:[#allocation6 + $0x330] sm:$0xff]  ;;  %v579_v61 = vld [vmem:[#allocation6 + $0x328] sm:$0xff] }
 0x169   :  { %522 = vmatpush.msra.mxu1 %v2011_v1  ;;  %630 = vmatpush.msra.mxu3 %v589_v60  ;;  %v595_v60 = vld [vmem:[#allocation6 + $0x3a0] sm:$0xff] }
 0x16a   :  { %608 = vmatpush.msra.mxu2 %v605_v59  ;;  %v670_v59 = vld [vmem:[#allocation6 + $0x430] sm:$0xff] }
 0x16b   :  { %523 = vmatpush.msra.mxu1 %v2016_v2 }
 0x16d   :  { %524 = vmatpush.msra.mxu1 %v2021_v3 }
 0x16f   :  { %525 = vmatpush.msra.mxu1 %v2025_v4 }
 0x171   :  { %526 = vmatpush.msra.mxu1 %v2029_v5 }
 0x173   :  { %527 = vmatpush.msra.mxu1 %v2033_v6 }
 0x175   :  { %528 = vmatpush.msra.mxu1 %v2037_v7 }
 0x177   :  { %529 = vmatpush.msra.mxu1 %v2039_v8 }
 0x179   :  { %530 = vmatpush.msra.mxu1 %v2043_v9 }
 0x17b   :  { %531 = vmatpush.msra.mxu1 %v2047_v10 }
 0x17d   :  { %532 = vmatpush.msra.mxu1 %v2051_v11 }
 0x17f   :  { %533 = vmatpush.msra.mxu1 %v2055_v12 }
 0x1e3   :  { %v307_v13 = vpop.f32.mrf.mxu0 }
 0x1e4   :  { %1792 = vrsqrt.f32 %v307_v13  ;;  %vm316_vm4 = vweird.f32 %v307_v13 }
 0x1ea   :  { %v1793_v14 = vpop.eup %1792 }
 0x1eb   :  { %v311_v15 = vmul.f32 %v1793_v14, %v307_v13  ;;  %vm317_vm3 = vweird.f32 %v1793_v14  ;;  %v588_v13 = vld [vmem:[#allocation6 + $0x370] sm:$0xff] }
 0x1ec   :  { %vm318_vm5 = vmor %vm316_vm4, %vm317_vm3  ;;  %631 = vmatpush.msra.mxu3 %v588_v13  ;;  %v669_v13 = vld [vmem:[#allocation6 + $0x428] sm:$0xff] }
 0x1ed   :  { %v312_v16 = vmul.f32 %v1793_v14, %v311_v15  ;;  %v678_v15 = vld [vmem:[#allocation6 + $0x470] sm:$0xff] }
 0x1ee   :  { %681 = vmatpush.msrb.mxu0 %v678_v15  ;;  %v578_v15 = vld [vmem:[#allocation6 + $0x320] sm:$0xff] }
 0x1ef   :  { %v313_v17 = vmul.f32 0.5, %v312_v16 }
 0x1f1   :  { %v314_v18 = vsub.f32 1.5, %v313_v17 }
 0x1f3   :  { %v315_v19 = vmul.f32 %v1793_v14, %v314_v18 }
 0x1f5   :  { %v319_v20 = vsel %vm318_vm5, %v1793_v14, %v315_v19  ;;  %v604_v14 = vld [vmem:[#allocation6 + $0x3e8] sm:$0xff] }
 0x1f6   :  { %v320_v21 = vperm.slane %v319_v20, 0  ;;  %609 = vmatpush.msra.mxu2 %v604_v14  ;;  %v594_v14 = vld [vmem:[#allocation6 + $0x398] sm:$0xff] }
 0x1f8   :  { %v321_v22 = vmul.f32 %v320_v21, %v2087_v50  ;;  %v322_v26 = vmul.f32 %v320_v21, %v2090_v51 }
 0x1fa   :  { %v323_v23 = vmax.f32 %v321_v22, 0.0  ;;  %v324_v32 = vmax.f32 %v322_v26, 0.0 }
 0x1fc   :  { %395 = vmatmul.f32.vlgmr.msrb.gmra.mxu1 %v323_v23  ;;  %v338_v27 = vrot.slane %v323_v23, 7  ;;  %v427_v28 = vrot.slane %v323_v23, 1  ;;  %v341_v50 = vrot.slane %v324_v32, 7  ;;  %v430_v51 = vrot.slane %v324_v32, 1 }
 0x1fd   :  { %715 = vmatpush.msrb.mxu1 %v1985_v29 }
 0x1fe   :  { %v339_v30 = vsel %vm101_vm1, %v1990_v49, %v338_v27  ;;  %v429_v31 = vsel %vm191_vm0, %v427_v28, %v1988_v46  ;;  %v342_v33 = vsel %vm101_vm1, %v1990_v49, %v341_v50  ;;  %v432_v34 = vsel %vm191_vm0, %v430_v51, %v1988_v46  ;;  %v603_v50 = vld [vmem:[#allocation6 + $0x3e0] sm:$0xff]  ;;  %v587_v51 = vld [vmem:[#allocation6 + $0x368] sm:$0xff] }
 0x1ff   :  { %418 = vmatmul.f32.vlgmr.msrb.gmra.mxu2 %v339_v30  ;;  %468 = vmatmul.f32.vlgmr.msrb.gmra.mxu3 %v429_v31 }
 0x200   :  { %716 = vmatpush.msrb.mxu1 %v2001_v62  ;;  %610 = vmatpush.msra.mxu2 %v603_v50 }
 0x201   :  { %632 = vmatpush.msra.mxu3 %v587_v51 }
 0x202   :  { %717 = vmatpush.msrb.mxu1 %v2005_v63 }
 0x204   :  { %398 = vmatmul.f32.gmra.mxu1 %v324_v32 }
 0x205   :  { %718 = vmatpush.msrb.mxu1 %v2009_v0 }
 0x207   :  { %421 = vmatmul.f32.gmra.mxu2 %v342_v33  ;;  %471 = vmatmul.f32.gmra.mxu3 %v432_v34  ;;  %v677_v33 = vld [vmem:[#allocation6 + $0x468] sm:$0xff]  ;;  %v602_v34 = vld [vmem:[#allocation6 + $0x3d8] sm:$0xff] }
 0x208   :  { %719 = vmatpush.msrb.mxu1 %v2011_v1  ;;  %682 = vmatpush.msrb.mxu0 %v677_v33 }
 0x209   :  { %611 = vmatpush.msra.mxu2 %v602_v34 }
 0x20a   :  { %720 = vmatpush.msrb.mxu1 %v2016_v2 }
 0x20c   :  { %721 = vmatpush.msrb.mxu1 %v2021_v3 }
 0x20e   :  { %722 = vmatpush.msrb.mxu1 %v2025_v4 }
 0x210   :  { %723 = vmatpush.msrb.mxu1 %v2029_v5 }
 0x212   :  { %724 = vmatpush.msrb.mxu1 %v2033_v6 }
 0x214   :  { %725 = vmatpush.msrb.mxu1 %v2037_v7 }
 0x216   :  { %726 = vmatpush.msrb.mxu1 %v2039_v8 }
 0x218   :  { %727 = vmatpush.msrb.mxu1 %v2043_v9 }
 0x21a   :  { %728 = vmatpush.msrb.mxu1 %v2047_v10 }
 0x21c   :  { %729 = vmatpush.msrb.mxu1 %v2051_v11 }
 0x21e   :  { %730 = vmatpush.msrb.mxu1 %v2055_v12 }
 0x279   :  { %v396_v35 = vpop.f32.mrf.mxu1 }
 0x281   :  { %v399_v40 = vpop.f32.mrf.mxu1 }
 0x282   :  { %v419_v37 = vpop.f32.mrf.mxu2  ;;  %v469_v38 = vpop.f32.mrf.mxu3 }
 0x283   :  { %v420_v39 = vadd.f32 %v419_v37, %v396_v35  ;;  %v586_v35 = vld [vmem:[#allocation6 + $0x360] sm:$0xff] }
 0x284   :  { %v676_v37 = vld [vmem:[#allocation6 + $0x460] sm:$0xff]  ;;  %633 = vmatpush.msra.mxu3 %v586_v35 }
 0x285   :  { %v475_v44 = vadd.f32 %v469_v38, %v420_v39  ;;  %683 = vmatpush.msrb.mxu0 %v676_v37  ;;  %v601_v38 = vld [vmem:[#allocation6 + $0x3d0] sm:$0xff]  ;;  %v585_v39 = vld [vmem:[#allocation6 + $0x358] sm:$0xff] }
 0x286   :  { %612 = vmatpush.msra.mxu2 %v601_v38  ;;  %634 = vmatpush.msra.mxu3 %v585_v39 }
 0x28a   :  { %v422_v41 = vpop.f32.mrf.mxu2  ;;  %v472_v43 = vpop.f32.mrf.mxu3 }
 0x28b   :  { %v423_v42 = vadd.f32 %v422_v41, %v399_v40  ;;  %v675_v40 = vld [vmem:[#allocation6 + $0x458] sm:$0xff]  ;;  %v600_v41 = vld [vmem:[#allocation6 + $0x3c8] sm:$0xff] }
 0x28c   :  { %684 = vmatpush.msrb.mxu0 %v675_v40  ;;  %613 = vmatpush.msra.mxu2 %v600_v41 }
 0x28d   :  { %v476_v45 = vadd.f32 %v472_v43, %v423_v42  ;;  %v584_v42 = vld [vmem:[#allocation6 + $0x350] sm:$0xff] }
 0x28e   :  { %v674_v43 = vld [vmem:[#allocation6 + $0x450] sm:$0xff]  ;;  %635 = vmatpush.msra.mxu3 %v584_v42 }
 0x28f   :  { %v477_v47 = vadd.f32 %v476_v45, %v475_v44  ;;  %685 = vmatpush.msrb.mxu0 %v674_v43 }
 0x291   :  { %v478_v48 = vrot.slane %v477_v47, 4 }
 0x293   :  { %v479_v52 = vadd.f32 %v478_v48, %v477_v47  ;;  %v673_v47 = vld [vmem:[#allocation6 + $0x448] sm:$0xff]  ;;  %v598_v48 = vld [vmem:[#allocation6 + $0x3b8] sm:$0xff] }
 0x294   :  { %686 = vmatpush.msrb.mxu0 %v673_v47 }
 0x295   :  { %v480_v53 = vrot.slane %v479_v52, 2 }
 0x297   :  { %v481_v54 = vadd.f32 %v480_v53, %v479_v52  ;;  %v582_v52 = vld [vmem:[#allocation6 + $0x340] sm:$0xff] }
 0x298   :  { %v672_v53 = vld [vmem:[#allocation6 + $0x440] sm:$0xff] }
 0x299   :  { %v482_v55 = vrot.slane %v481_v54, 1  ;;  %687 = vmatpush.msrb.mxu0 %v672_v53 }
 0x29b   :  { %v483_v56 = vadd.f32 %v482_v55, %v481_v54  ;;  %v597_v54 = vld [vmem:[#allocation6 + $0x3b0] sm:$0xff]  ;;  %v581_v55 = vld [vmem:[#allocation6 + $0x338] sm:$0xff] }
 0x29d   :  { %v484_v57 = vmul.f32 %v483_v56, %v2081_v36  ;;  %v671_v56 = vld [vmem:[#allocation6 + $0x438] sm:$0xff] }
 0x29e   :  { %688 = vmatpush.msrb.mxu0 %v671_v56 }
 0x29f   :  { %501 = vmatmul.f32.vlgmr.msra.gmra.mxu0 %v484_v57  ;;  %v596_v57 = vld [vmem:[#allocation6 + $0x3a8] sm:$0xff] }
 0x2a0   :  { %689 = vmatpush.msrb.mxu0 %v670_v59  ;;  %v836_v59 = vld [vmem:[#allocation6 + $0x578] sm:$0xff] }
 0x2a2   :  { %690 = vmatpush.msrb.mxu0 %v669_v13  ;;  %v834_v13 = vld [vmem:[#allocation6 + $0x568] sm:$0xff] }
 0x31c   :  { %v502_v16 = vpop.f32.mrf.mxu0 }
 0x31d   :  { %v505_v17 = vperm.slane %v502_v16, 0  ;;  %v668_v16 = vld [vmem:[#allocation6 + $0x420] sm:$0xff] }
 0x31e   :  { %691 = vmatpush.msrb.mxu0 %v668_v16 }
 0x31f   :  { %v2140_v18 = vsub.f32 %v475_v44, %v505_v17  ;;  %v2142_v19 = vsub.f32 %v476_v45, %v505_v17  ;;  %v599_v44 = vld [vmem:[#allocation6 + $0x3c0] sm:$0xff]  ;;  %v583_v45 = vld [vmem:[#allocation6 + $0x348] sm:$0xff]  ;;  %v593_v17 = vld [vmem:[#allocation6 + $0x390] sm:$0xff] }
 0x320   :  { %614 = vmatpush.msra.mxu2 %v599_v44  ;;  %636 = vmatpush.msra.mxu3 %v583_v45 }
 0x321   :  { %v508_v20 = vmul.f32 %v2140_v18, %v2140_v18  ;;  %v509_v21 = vmul.f32 %v2142_v19, %v2142_v19 }
 0x322   :  { %615 = vmatpush.msra.mxu2 %v598_v48  ;;  %637 = vmatpush.msra.mxu3 %v582_v52 }
 0x323   :  { %v510_v22 = vadd.f32 %v509_v21, %v508_v20  ;;  %v577_v20 = vld [vmem:[#allocation6 + $0x318] sm:$0xff] }
 0x324   :  { %616 = vmatpush.msra.mxu2 %v597_v54  ;;  %638 = vmatpush.msra.mxu3 %v581_v55  ;;  %v667_v21 = vld [vmem:[#allocation6 + $0x418] sm:$0xff] }
 0x325   :  { %v511_v23 = vrot.slane %v510_v22, 4  ;;  %692 = vmatpush.msrb.mxu0 %v667_v21 }
 0x326   :  { %617 = vmatpush.msra.mxu2 %v596_v57  ;;  %639 = vmatpush.msra.mxu3 %v580_v58 }
 0x327   :  { %v512_v26 = vadd.f32 %v511_v23, %v510_v22  ;;  %v592_v22 = vld [vmem:[#allocation6 + $0x388] sm:$0xff]  ;;  %v576_v23 = vld [vmem:[#allocation6 + $0x310] sm:$0xff] }
 0x328   :  { %618 = vmatpush.msra.mxu2 %v595_v60  ;;  %640 = vmatpush.msra.mxu3 %v579_v61  ;;  %v835_v60 = vld [vmem:[#allocation6 + $0x570] sm:$0xff]  ;;  %v819_v61 = vld [vmem:[#allocation6 + $0x4f8] sm:$0xff] }
 0x329   :  { %v513_v27 = vrot.slane %v512_v26, 2 }
 0x32a   :  { %619 = vmatpush.msra.mxu2 %v594_v14  ;;  %641 = vmatpush.msra.mxu3 %v578_v15  ;;  %v908_v14 = vld [vmem:[#allocation6 + $0x5f0] sm:$0xff] }
 0x32b   :  { %v514_v28 = vadd.f32 %v513_v27, %v512_v26  ;;  %v666_v26 = vld [vmem:[#allocation6 + $0x410] sm:$0xff]  ;;  %v591_v27 = vld [vmem:[#allocation6 + $0x380] sm:$0xff] }
 0x32c   :  { %620 = vmatpush.msra.mxu2 %v593_v17  ;;  %642 = vmatpush.msra.mxu3 %v577_v20 }
 0x32d   :  { %v515_v30 = vrot.slane %v514_v28, 1  ;;  %693 = vmatpush.msrb.mxu0 %v666_v26 }
 0x32e   :  { %621 = vmatpush.msra.mxu2 %v592_v22  ;;  %643 = vmatpush.msra.mxu3 %v576_v23 }
 0x32f   :  { %v516_v31 = vadd.f32 %v515_v30, %v514_v28  ;;  %v575_v28 = vld [vmem:[#allocation6 + $0x308] sm:$0xff] }
 0x330   :  { %622 = vmatpush.msra.mxu2 %v591_v27  ;;  %v665_v30 = vld [vmem:[#allocation6 + $0x408] sm:$0xff]  ;;  %644 = vmatpush.msra.mxu3 %v575_v28 }
 0x331   :  { %v517_v32 = vmul.f32 %v516_v31, %v2081_v36  ;;  %694 = vmatpush.msrb.mxu0 %v665_v30  ;;  %v574_v31 = vld [vmem:[#allocation6 + $0x300] sm:$0xff] }
 0x332   :  { %748 = vmatpush.msrb.mxu2 %v1985_v29  ;;  %645 = vmatpush.msra.mxu3 %v574_v31 }
 0x333   :  { %534 = vmatmul.f32.vlgmr.msra.gmra.mxu1 %v517_v32  ;;  %v664_v32 = vld [vmem:[#allocation6 + $0x400] sm:$0xff] }
 0x334   :  { %695 = vmatpush.msrb.mxu0 %v664_v32  ;;  %749 = vmatpush.msrb.mxu2 %v2001_v62 }
 0x335   :  { %837 = vmatpush.msrb.mxu3 %v836_v59  ;;  %v895_v59 = vld [vmem:[#allocation6 + $0x588] sm:$0xff] }
 0x336   :  { %750 = vmatpush.msrb.mxu2 %v2005_v63  ;;  %860 = vmatpush.msra.mxu0 %v819_v61  ;;  %v894_v61 = vld [vmem:[#allocation6 + $0x580] sm:$0xff] }
 0x337   :  { %838 = vmatpush.msrb.mxu3 %v835_v60  ;;  %v804_v60 = vld [vmem:[#allocation6 + $0x480] sm:$0xff] }
 0x338   :  { %751 = vmatpush.msrb.mxu2 %v2009_v0 }
 0x339   :  { %839 = vmatpush.msrb.mxu3 %v834_v13  ;;  %v2217_v13 = vld [vmem:[#allocation8 + $0x68] sm:$0xff] }
 0x33a   :  { %752 = vmatpush.msrb.mxu2 %v2011_v1 }
 0x33c   :  { %753 = vmatpush.msrb.mxu2 %v2016_v2 }
 0x33e   :  { %754 = vmatpush.msrb.mxu2 %v2021_v3 }
 0x340   :  { %755 = vmatpush.msrb.mxu2 %v2025_v4 }
 0x342   :  { %756 = vmatpush.msrb.mxu2 %v2029_v5 }
 0x344   :  { %757 = vmatpush.msrb.mxu2 %v2033_v6 }
 0x346   :  { %758 = vmatpush.msrb.mxu2 %v2037_v7 }
 0x348   :  { %759 = vmatpush.msrb.mxu2 %v2039_v8 }
 0x34a   :  { %760 = vmatpush.msrb.mxu2 %v2043_v9 }
 0x34c   :  { %761 = vmatpush.msrb.mxu2 %v2047_v10 }
 0x34e   :  { %762 = vmatpush.msrb.mxu2 %v2051_v11 }
 0x350   :  { %763 = vmatpush.msrb.mxu2 %v2055_v12 }
 0x3b0   :  { %v535_v50 = vpop.f32.mrf.mxu1 }
 0x3b1   :  { %1794 = vrsqrt.f32 %v535_v50  ;;  %vm544_vm7 = vweird.f32 %v535_v50 }
 0x3b7   :  { %v1795_v51 = vpop.eup %1794 }
 0x3b8   :  { %v539_v33 = vmul.f32 %v1795_v51, %v535_v50  ;;  %vm545_vm6 = vweird.f32 %v1795_v51 }
 0x3b9   :  { %vm546_vm8 = vmor %vm544_vm7, %vm545_vm6 }
 0x3ba   :  { %v540_v34 = vmul.f32 %v1795_v51, %v539_v33  ;;  %v817_v33 = vld [vmem:[#allocation6 + $0x4e8] sm:$0xff] }
 0x3bc   :  { %v541_v35 = vmul.f32 0.5, %v540_v34  ;;  %v907_v34 = vld [vmem:[#allocation6 + $0x5e8] sm:$0xff] }
 0x3be   :  { %v542_v37 = vsub.f32 1.5, %v541_v35  ;;  %v832_v35 = vld [vmem:[#allocation6 + $0x558] sm:$0xff] }
 0x3c0   :  { %v543_v38 = vmul.f32 %v1795_v51, %v542_v37  ;;  %v816_v37 = vld [vmem:[#allocation6 + $0x4e0] sm:$0xff] }
 0x3c2   :  { %v547_v39 = vsel %vm546_vm8, %v1795_v51, %v543_v38  ;;  %v833_v51 = vld [vmem:[#allocation6 + $0x560] sm:$0xff] }
 0x3c3   :  { %v548_v40 = vperm.slane %v547_v39, 0  ;;  %840 = vmatpush.msrb.mxu3 %v833_v51  ;;  %v906_v38 = vld [vmem:[#allocation6 + $0x5e0] sm:$0xff]  ;;  %v831_v39 = vld [vmem:[#allocation6 + $0x550] sm:$0xff]  ;;  %v2241_v51 = vld [vmem:[#allocation8 + $0x28] sm:$0xff] }
 0x3c5   :  { %v549_v41 = vmul.f32 %v548_v40, %v2140_v18  ;;  %v550_v43 = vmul.f32 %v548_v40, %v2142_v19  ;;  %841 = vmatpush.msrb.mxu3 %v832_v35  ;;  %v815_v40 = vld [vmem:[#allocation6 + $0x4d8] sm:$0xff] }
 0x3c7   :  { %v551_v42 = vmax.f32 %v549_v41, 0.0  ;;  %v552_v52 = vmax.f32 %v550_v43, 0.0  ;;  %842 = vmatpush.msrb.mxu3 %v831_v39  ;;  %v905_v41 = vld [vmem:[#allocation6 + $0x5d8] sm:$0xff]  ;;  %v814_v43 = vld [vmem:[#allocation6 + $0x4d0] sm:$0xff] }
 0x3c8   :  { %v2250_v39 = vld [vmem:[#allocation8 + $0x10] sm:$0xff] }
 0x3c9   :  { %623 = vmatmul.f32.vlgmr.msra.gmra.mxu2 %v551_v42  ;;  %v566_v44 = vrot.slane %v551_v42, 7  ;;  %v655_v45 = vrot.slane %v551_v42, 1  ;;  %v569_v18 = vrot.slane %v552_v52, 7  ;;  %v658_v19 = vrot.slane %v552_v52, 1  ;;  %v830_v42 = vld [vmem:[#allocation6 + $0x548] sm:$0xff] }
 0x3ca   :  { %943 = vmatpush.msra.mxu2 %v1985_v29  ;;  %843 = vmatpush.msrb.mxu3 %v830_v42 }
 0x3cb   :  { %v567_v47 = vsel %vm101_vm1, %v1990_v49, %v566_v44  ;;  %v657_v48 = vsel %vm191_vm0, %v655_v45, %v1988_v46  ;;  %v570_v29 = vsel %vm101_vm1, %v1990_v49, %v569_v18  ;;  %v660_v53 = vsel %vm191_vm0, %v658_v19, %v1988_v46  ;;  %v904_v44 = vld [vmem:[#allocation6 + $0x5d0] sm:$0xff]  ;;  %v829_v45 = vld [vmem:[#allocation6 + $0x540] sm:$0xff] }
 0x3cc   :  { %646 = vmatmul.f32.vlgmr.msra.gmra.mxu3 %v567_v47  ;;  %696 = vmatmul.f32.vlgmr.msrb.gmra.mxu0 %v657_v48  ;;  %v813_v47 = vld [vmem:[#allocation6 + $0x4c8] sm:$0xff]  ;;  %v812_v18 = vld [vmem:[#allocation6 + $0x4c0] sm:$0xff] }
 0x3cd   :  { %944 = vmatpush.msra.mxu2 %v2001_v62  ;;  %844 = vmatpush.msrb.mxu3 %v829_v45  ;;  %v903_v48 = vld [vmem:[#allocation6 + $0x5c8] sm:$0xff]  ;;  %v902_v19 = vld [vmem:[#allocation6 + $0x5c0] sm:$0xff] }
 0x3cf   :  { %945 = vmatpush.msra.mxu2 %v2005_v63 }
 0x3d1   :  { %626 = vmatmul.f32.gmra.mxu2 %v552_v52  ;;  %v828_v52 = vld [vmem:[#allocation6 + $0x538] sm:$0xff] }
 0x3d2   :  { %946 = vmatpush.msra.mxu2 %v2009_v0  ;;  %845 = vmatpush.msrb.mxu3 %v828_v52 }
 0x3d4   :  { %649 = vmatmul.f32.gmra.mxu3 %v570_v29  ;;  %699 = vmatmul.f32.gmra.mxu0 %v660_v53  ;;  %v827_v29 = vld [vmem:[#allocation6 + $0x530] sm:$0xff]  ;;  %v811_v53 = vld [vmem:[#allocation6 + $0x4b8] sm:$0xff] }
 0x3d5   :  { %947 = vmatpush.msra.mxu2 %v2011_v1  ;;  %846 = vmatpush.msrb.mxu3 %v827_v29 }
 0x3d7   :  { %948 = vmatpush.msra.mxu2 %v2016_v2 }
 0x3d9   :  { %949 = vmatpush.msra.mxu2 %v2021_v3 }
 0x3db   :  { %950 = vmatpush.msra.mxu2 %v2025_v4 }
 0x3dd   :  { %951 = vmatpush.msra.mxu2 %v2029_v5 }
 0x3df   :  { %952 = vmatpush.msra.mxu2 %v2033_v6 }
 0x3e1   :  { %953 = vmatpush.msra.mxu2 %v2037_v7 }
 0x3e3   :  { %954 = vmatpush.msra.mxu2 %v2039_v8 }
 0x3e5   :  { %955 = vmatpush.msra.mxu2 %v2043_v9 }
 0x3e7   :  { %956 = vmatpush.msra.mxu2 %v2047_v10 }
 0x3e9   :  { %957 = vmatpush.msra.mxu2 %v2051_v11 }
 0x3eb   :  { %958 = vmatpush.msra.mxu2 %v2055_v12 }
 0x449   :  { %v697_v63 = vpop.f32.mrf.mxu0 }
 0x44c   :  { %v624_v62 = vpop.f32.mrf.mxu2 }
 0x44f   :  { %v647_v0 = vpop.f32.mrf.mxu3 }
 0x450   :  { %v648_v1 = vadd.f32 %v647_v0, %v624_v62  ;;  %v901_v62 = vld [vmem:[#allocation6 + $0x5b8] sm:$0xff]  ;;  %v810_v0 = vld [vmem:[#allocation6 + $0x4b0] sm:$0xff] }
 0x451   :  { %v700_v6 = vpop.f32.mrf.mxu0 }
 0x452   :  { %v703_v4 = vadd.f32 %v697_v63, %v648_v1  ;;  %v826_v63 = vld [vmem:[#allocation6 + $0x528] sm:$0xff]  ;;  %v900_v1 = vld [vmem:[#allocation6 + $0x5b0] sm:$0xff] }
 0x453   :  { %847 = vmatpush.msrb.mxu3 %v826_v63 }
 0x454   :  { %v627_v2 = vpop.f32.mrf.mxu2  ;;  %v2192_v8 = vadd.f32 %v703_v4, %v2068_v24  ;;  %v909_v24 = vld [vmem:[#allocation6 + $0x5f8] sm:$0xff]  ;;  %v899_v4 = vld [vmem:[#allocation6 + $0x5a8] sm:$0xff] }
 0x455   :  { %910 = vmatpush.msra.mxu1 %v909_v24  ;;  %v2211_v24 = vld [vmem:[#allocation8 + $0x78] sm:$0xff] }
 0x457   :  { %v650_v3 = vpop.f32.mrf.mxu3  ;;  %911 = vmatpush.msra.mxu1 %v908_v14 }
 0x458   :  { %v651_v5 = vadd.f32 %v650_v3, %v627_v2  ;;  %v825_v2 = vld [vmem:[#allocation6 + $0x520] sm:$0xff]  ;;  %v809_v3 = vld [vmem:[#allocation6 + $0x4a8] sm:$0xff] }
 0x459   :  { %912 = vmatpush.msra.mxu1 %v907_v34  ;;  %848 = vmatpush.msrb.mxu3 %v825_v2  ;;  %v2244_v34 = vld [vmem:[#allocation8 + $0x20] sm:$0xff] }
 0x45a   :  { %v704_v7 = vadd.f32 %v700_v6, %v651_v5  ;;  %v824_v5 = vld [vmem:[#allocation6 + $0x518] sm:$0xff]  ;;  %v808_v6 = vld [vmem:[#allocation6 + $0x4a0] sm:$0xff] }
 0x45b   :  { %913 = vmatpush.msra.mxu1 %v906_v38  ;;  %849 = vmatpush.msrb.mxu3 %v824_v5 }
 0x45c   :  { %v2195_v9 = vadd.f32 %v704_v7, %v2070_v25  ;;  %v818_v25 = vld [vmem:[#allocation6 + $0x4f0] sm:$0xff]  ;;  %v898_v7 = vld [vmem:[#allocation6 + $0x5a0] sm:$0xff] }
 0x45d   :  { %861 = vmatpush.msra.mxu0 %v818_v25  ;;  %914 = vmatpush.msra.mxu1 %v905_v41  ;;  %v2214_v25 = vld [vmem:[#allocation8 + $0x70] sm:$0xff]  ;;  %v2254_v41 = vld [vmem:[#allocation8 + $0x8] sm:$0xff] }
 0x45e   :  { %v707_v10 = vadd.f32 %v2195_v9, %v2192_v8 }
 0x45f   :  { %862 = vmatpush.msra.mxu0 %v817_v33  ;;  %915 = vmatpush.msra.mxu1 %v904_v44  ;;  %v2258_v44 = vld [vmem:[#allocation8] sm:$0xff] }
 0x460   :  { %v708_v11 = vrot.slane %v707_v10, 4 }
 0x461   :  { %863 = vmatpush.msra.mxu0 %v816_v37  ;;  %916 = vmatpush.msra.mxu1 %v903_v48  ;;  %v2247_v37 = vld [vmem:[#allocation8 + $0x18] sm:$0xff] }
 0x462   :  { %v709_v12 = vadd.f32 %v708_v11, %v707_v10  ;;  %v823_v10 = vld [vmem:[#allocation6 + $0x510] sm:$0xff]  ;;  %v807_v11 = vld [vmem:[#allocation6 + $0x498] sm:$0xff] }
 0x463   :  { %864 = vmatpush.msra.mxu0 %v815_v40  ;;  %917 = vmatpush.msra.mxu1 %v902_v19 }
 0x464   :  { %v710_v54 = vrot.slane %v709_v12, 2  ;;  %850 = vmatpush.msrb.mxu3 %v823_v10 }
 0x465   :  { %865 = vmatpush.msra.mxu0 %v814_v43  ;;  %918 = vmatpush.msra.mxu1 %v901_v62 }
 0x466   :  { %v711_v55 = vadd.f32 %v710_v54, %v709_v12  ;;  %v897_v12 = vld [vmem:[#allocation6 + $0x598] sm:$0xff]  ;;  %v822_v54 = vld [vmem:[#allocation6 + $0x508] sm:$0xff] }
 0x467   :  { %866 = vmatpush.msra.mxu0 %v813_v47  ;;  %919 = vmatpush.msra.mxu1 %v900_v1 }
 0x468   :  { %v712_v56 = vrot.slane %v711_v55, 1  ;;  %851 = vmatpush.msrb.mxu3 %v822_v54 }
 0x469   :  { %867 = vmatpush.msra.mxu0 %v812_v18  ;;  %920 = vmatpush.msra.mxu1 %v899_v4 }
 0x46a   :  { %v713_v57 = vadd.f32 %v712_v56, %v711_v55  ;;  %v806_v55 = vld [vmem:[#allocation6 + $0x490] sm:$0xff] }
 0x46b   :  { %868 = vmatpush.msra.mxu0 %v811_v53  ;;  %921 = vmatpush.msra.mxu1 %v898_v7  ;;  %v896_v56 = vld [vmem:[#allocation6 + $0x590] sm:$0xff] }
 0x46c   :  { %v714_v58 = vmul.f32 %v713_v57, %v2081_v36  ;;  %v821_v57 = vld [vmem:[#allocation6 + $0x500] sm:$0xff] }
 0x46d   :  { %869 = vmatpush.msra.mxu0 %v810_v0  ;;  %922 = vmatpush.msra.mxu1 %v897_v12 }
 0x46e   :  { %731 = vmatmul.f32.vlgmr.msrb.gmra.mxu1 %v714_v58  ;;  %852 = vmatpush.msrb.mxu3 %v821_v57  ;;  %v805_v58 = vld [vmem:[#allocation6 + $0x488] sm:$0xff] }
 0x46f   :  { %870 = vmatpush.msra.mxu0 %v809_v3  ;;  %923 = vmatpush.msra.mxu1 %v896_v56 }
 0x470   :  { %976 = vmatpush.msra.mxu3 %v2211_v24 }
 0x471   :  { %871 = vmatpush.msra.mxu0 %v808_v6  ;;  %924 = vmatpush.msra.mxu1 %v895_v59  ;;  %v1063_v59 = vld [vmem:[#allocation6 + $0x6f0] sm:$0xff] }
 0x472   :  { %977 = vmatpush.msra.mxu3 %v2214_v25 }
 0x473   :  { %872 = vmatpush.msra.mxu0 %v807_v11  ;;  %925 = vmatpush.msra.mxu1 %v894_v61  ;;  %v1137_v61 = vld [vmem:[#allocation6 + $0x778] sm:$0xff] }
 0x474   :  { %978 = vmatpush.msra.mxu3 %v2217_v13 }
 0x475   :  { %873 = vmatpush.msra.mxu0 %v806_v55 }
 0x477   :  { %874 = vmatpush.msra.mxu0 %v805_v58  ;;  %v1064_v58 = vld [vmem:[#allocation6 + $0x6f8] sm:$0xff] }
 0x479   :  { %875 = vmatpush.msra.mxu0 %v804_v60  ;;  %v1047_v60 = vld [vmem:[#allocation6 + $0x678] sm:$0xff] }
 0x47a   :  { %1088 = vmatpush.msrb.mxu1 %v1047_v60  ;;  %v1053_v60 = vld [vmem:[#allocation6 + $0x6a0] sm:$0xff] }
 0x47b   :  { %1065 = vmatpush.msrb.mxu0 %v1064_v58  ;;  %v1038_v58 = vld [vmem:[#allocation6 + $0x630] sm:$0xff] }
 0x47d   :  { %1066 = vmatpush.msrb.mxu0 %v1063_v59  ;;  %v1128_v59 = vld [vmem:[#allocation6 + $0x730] sm:$0xff] }
 0x4eb   :  { %v732_v15 = vpop.f32.mrf.mxu1 }
 0x4ec   :  { %v735_v16 = vperm.slane %v732_v15, 0  ;;  %v2220_v15 = vld [vmem:[#allocation8 + $0x60] sm:$0xff] }
 0x4ed   :  { %979 = vmatpush.msra.mxu3 %v2220_v15 }
 0x4ee   :  { %v2201_v17 = vsub.f32 %v2192_v8, %v735_v16  ;;  %v2204_v20 = vsub.f32 %v2195_v9, %v735_v16  ;;  %v2223_v16 = vld [vmem:[#allocation8 + $0x58] sm:$0xff] }
 0x4ef   :  { %980 = vmatpush.msra.mxu3 %v2223_v16 }
 0x4f0   :  { %v738_v21 = vmul.f32 %v2201_v17, %v2201_v17  ;;  %v739_v22 = vmul.f32 %v2204_v20, %v2204_v20 }
 0x4f2   :  { %v740_v23 = vadd.f32 %v739_v22, %v738_v21  ;;  %v2226_v21 = vld [vmem:[#allocation8 + $0x50] sm:$0xff]  ;;  %v2229_v22 = vld [vmem:[#allocation8 + $0x48] sm:$0xff] }
 0x4f3   :  { %981 = vmatpush.msra.mxu3 %v2226_v21 }
 0x4f4   :  { %v741_v26 = vrot.slane %v740_v23, 4 }
 0x4f5   :  { %982 = vmatpush.msra.mxu3 %v2229_v22 }
 0x4f6   :  { %v742_v27 = vadd.f32 %v741_v26, %v740_v23 }
 0x4f8   :  { %v743_v28 = vrot.slane %v742_v27, 2 }
 0x4fa   :  { %v744_v30 = vadd.f32 %v743_v28, %v742_v27  ;;  %v2232_v27 = vld [vmem:[#allocation8 + $0x40] sm:$0xff] }
 0x4fb   :  { %983 = vmatpush.msra.mxu3 %v2232_v27 }
 0x4fc   :  { %v745_v31 = vrot.slane %v744_v30, 1 }
 0x4fe   :  { %v746_v32 = vadd.f32 %v745_v31, %v744_v30  ;;  %v2235_v30 = vld [vmem:[#allocation8 + $0x38] sm:$0xff] }
 0x4ff   :  { %984 = vmatpush.msra.mxu3 %v2235_v30 }
 0x500   :  { %v747_v50 = vmul.f32 %v746_v32, %v2081_v36  ;;  %v2238_v32 = vld [vmem:[#allocation8 + $0x30] sm:$0xff] }
 0x501   :  { %985 = vmatpush.msra.mxu3 %v2238_v32 }
 0x502   :  { %764 = vmatmul.f32.vlgmr.msrb.gmra.mxu2 %v747_v50 }
 0x503   :  { %986 = vmatpush.msra.mxu3 %v2241_v51  ;;  %1138 = vmatpush.msrb.mxu2 %v1137_v61  ;;  %v1037_v61 = vld [vmem:[#allocation6 + $0x628] sm:$0xff] }
 0x505   :  { %987 = vmatpush.msra.mxu3 %v2244_v34 }
 0x507   :  { %988 = vmatpush.msra.mxu3 %v2247_v37 }
 0x509   :  { %989 = vmatpush.msra.mxu3 %v2250_v39 }
 0x50b   :  { %990 = vmatpush.msra.mxu3 %v2254_v41 }
 0x50d   :  { %991 = vmatpush.msra.mxu3 %v2258_v44 }
 0x585   :  { %v765_v14 = vpop.f32.mrf.mxu2 }
 0x586   :  { %1796 = vrsqrt.f32 %v765_v14  ;;  %vm774_vm10 = vweird.f32 %v765_v14 }
 0x58c   :  { %v1797_v23 = vpop.eup %1796 }
 0x58d   :  { %v769_v26 = vmul.f32 %v1797_v23, %v765_v14  ;;  %vm775_vm9 = vweird.f32 %v1797_v23  ;;  %v1046_v14 = vld [vmem:[#allocation6 + $0x670] sm:$0xff] }
 0x58e   :  { %vm776_vm11 = vmor %vm774_vm10, %vm775_vm9  ;;  %1089 = vmatpush.msrb.mxu1 %v1046_v14  ;;  %v1127_v14 = vld [vmem:[#allocation6 + $0x728] sm:$0xff]  ;;  %vm1738_vm9 = vcmask 1041409   ;;  %vm1761_vm10 = vcmask 74752  }
 0x58f   :  { %v770_v28 = vmul.f32 %v1797_v23, %v769_v26  ;;  %v1136_v26 = vld [vmem:[#allocation6 + $0x770] sm:$0xff] }
 0x590   :  { %1139 = vmatpush.msrb.mxu2 %v1136_v26  ;;  %v1036_v26 = vld [vmem:[#allocation6 + $0x620] sm:$0xff] }
 0x591   :  { %v771_v31 = vmul.f32 0.5, %v770_v28 }
 0x593   :  { %v772_v50 = vsub.f32 1.5, %v771_v31 }
 0x595   :  { %v773_v33 = vmul.f32 %v1797_v23, %v772_v50 }
 0x597   :  { %v777_v35 = vsel %vm776_vm11, %v1797_v23, %v773_v33  ;;  %v1062_v23 = vld [vmem:[#allocation6 + $0x6e8] sm:$0xff] }
 0x598   :  { %v778_v38 = vperm.slane %v777_v35, 0  ;;  %1067 = vmatpush.msrb.mxu0 %v1062_v23  ;;  %v1052_v23 = vld [vmem:[#allocation6 + $0x698] sm:$0xff] }
 0x59a   :  { %v779_v40 = vmul.f32 %v778_v38, %v2201_v17  ;;  %v780_v43 = vmul.f32 %v778_v38, %v2204_v20 }
 0x59c   :  { %v781_v42 = vmax.f32 %v779_v40, 0.0  ;;  %v782_v52 = vmax.f32 %v780_v43, 0.0 }
 0x59e   :  { %853 = vmatmul.f32.vlgmr.msrb.gmra.mxu3 %v781_v42  ;;  %v796_v45 = vrot.slane %v781_v42, 7  ;;  %v885_v47 = vrot.slane %v781_v42, 1  ;;  %v799_v20 = vrot.slane %v782_v52, 7  ;;  %v888_v18 = vrot.slane %v782_v52, 1 }
 0x59f   :  { %1173 = vmatpush.msrb.mxu3 %v2211_v24 }
 0x5a0   :  { %v797_v48 = vsel %vm101_vm1, %v1990_v49, %v796_v45  ;;  %v887_v17 = vsel %vm191_vm0, %v885_v47, %v1988_v46  ;;  %v800_v19 = vsel %vm101_vm1, %v1990_v49, %v799_v20  ;;  %v890_v29 = vsel %vm191_vm0, %v888_v18, %v1988_v46  ;;  %v1061_v20 = vld [vmem:[#allocation6 + $0x6e0] sm:$0xff]  ;;  %v1045_v18 = vld [vmem:[#allocation6 + $0x668] sm:$0xff] }
 0x5a1   :  { %876 = vmatmul.f32.vlgmr.msra.gmra.mxu0 %v797_v48  ;;  %926 = vmatmul.f32.vlgmr.msra.gmra.mxu1 %v887_v17 }
 0x5a2   :  { %1174 = vmatpush.msrb.mxu3 %v2214_v25  ;;  %1068 = vmatpush.msrb.mxu0 %v1061_v20 }
 0x5a3   :  { %1090 = vmatpush.msrb.mxu1 %v1045_v18 }
 0x5a4   :  { %1175 = vmatpush.msrb.mxu3 %v2217_v13 }
 0x5a6   :  { %856 = vmatmul.f32.gmra.mxu3 %v782_v52 }
 0x5a7   :  { %1176 = vmatpush.msrb.mxu3 %v2220_v15 }
 0x5a9   :  { %879 = vmatmul.f32.gmra.mxu0 %v800_v19  ;;  %929 = vmatmul.f32.gmra.mxu1 %v890_v29  ;;  %v1135_v19 = vld [vmem:[#allocation6 + $0x768] sm:$0xff]  ;;  %v1060_v29 = vld [vmem:[#allocation6 + $0x6d8] sm:$0xff] }
 0x5aa   :  { %1177 = vmatpush.msrb.mxu3 %v2223_v16  ;;  %1140 = vmatpush.msrb.mxu2 %v1135_v19 }
 0x5ab   :  { %1069 = vmatpush.msrb.mxu0 %v1060_v29 }
 0x5ac   :  { %1178 = vmatpush.msrb.mxu3 %v2226_v21 }
 0x5ae   :  { %1179 = vmatpush.msrb.mxu3 %v2229_v22 }
 0x5b0   :  { %1180 = vmatpush.msrb.mxu3 %v2232_v27 }
 0x5b2   :  { %1181 = vmatpush.msrb.mxu3 %v2235_v30 }
 0x5b4   :  { %1182 = vmatpush.msrb.mxu3 %v2238_v32 }
 0x5b6   :  { %1183 = vmatpush.msrb.mxu3 %v2241_v51 }
 0x5b8   :  { %1184 = vmatpush.msrb.mxu3 %v2244_v34 }
 0x5ba   :  { %1185 = vmatpush.msrb.mxu3 %v2247_v37 }
 0x5bc   :  { %1186 = vmatpush.msrb.mxu3 %v2250_v39 }
 0x5be   :  { %1187 = vmatpush.msrb.mxu3 %v2254_v41 }
 0x5c0   :  { %1188 = vmatpush.msrb.mxu3 %v2258_v44 }
 0x61e   :  { %v877_v53 = vpop.f32.mrf.mxu0  ;;  %v927_v62 = vpop.f32.mrf.mxu1 }
 0x621   :  { %v854_v63 = vpop.f32.mrf.mxu3 }
 0x622   :  { %v878_v0 = vadd.f32 %v877_v53, %v854_v63  ;;  %v1044_v53 = vld [vmem:[#allocation6 + $0x660] sm:$0xff]  ;;  %v1059_v63 = vld [vmem:[#allocation6 + $0x6d0] sm:$0xff] }
 0x623   :  { %1091 = vmatpush.msrb.mxu1 %v1044_v53  ;;  %1070 = vmatpush.msrb.mxu0 %v1059_v63 }
 0x624   :  { %v933_v5 = vadd.f32 %v927_v62, %v878_v0  ;;  %v1134_v62 = vld [vmem:[#allocation6 + $0x760] sm:$0xff]  ;;  %v1043_v0 = vld [vmem:[#allocation6 + $0x658] sm:$0xff] }
 0x625   :  { %1141 = vmatpush.msrb.mxu2 %v1134_v62  ;;  %1092 = vmatpush.msrb.mxu1 %v1043_v0 }
 0x626   :  { %v880_v1 = vpop.f32.mrf.mxu0  ;;  %v930_v4 = vpop.f32.mrf.mxu1 }
 0x629   :  { %v857_v2 = vpop.f32.mrf.mxu3 }
 0x62a   :  { %v881_v3 = vadd.f32 %v880_v1, %v857_v2  ;;  %v1133_v1 = vld [vmem:[#allocation6 + $0x758] sm:$0xff]  ;;  %v1058_v2 = vld [vmem:[#allocation6 + $0x6c8] sm:$0xff] }
 0x62b   :  { %1142 = vmatpush.msrb.mxu2 %v1133_v1  ;;  %1071 = vmatpush.msrb.mxu0 %v1058_v2 }
 0x62c   :  { %v934_v6 = vadd.f32 %v930_v4, %v881_v3  ;;  %v1042_v3 = vld [vmem:[#allocation6 + $0x650] sm:$0xff] }
 0x62d   :  { %v1132_v4 = vld [vmem:[#allocation6 + $0x750] sm:$0xff]  ;;  %1093 = vmatpush.msrb.mxu1 %v1042_v3 }
 0x62e   :  { %v935_v7 = vadd.f32 %v934_v6, %v933_v5  ;;  %1143 = vmatpush.msrb.mxu2 %v1132_v4 }
 0x630   :  { %v936_v10 = vrot.slane %v935_v7, 4 }
 0x632   :  { %v937_v11 = vadd.f32 %v936_v10, %v935_v7  ;;  %v1131_v7 = vld [vmem:[#allocation6 + $0x748] sm:$0xff]  ;;  %v1056_v10 = vld [vmem:[#allocation6 + $0x6b8] sm:$0xff] }
 0x633   :  { %1144 = vmatpush.msrb.mxu2 %v1131_v7 }
 0x634   :  { %v938_v12 = vrot.slane %v937_v11, 2 }
 0x636   :  { %v939_v54 = vadd.f32 %v938_v12, %v937_v11  ;;  %v1040_v11 = vld [vmem:[#allocation6 + $0x640] sm:$0xff] }
 0x637   :  { %v1130_v12 = vld [vmem:[#allocation6 + $0x740] sm:$0xff] }
 0x638   :  { %v940_v55 = vrot.slane %v939_v54, 1  ;;  %1145 = vmatpush.msrb.mxu2 %v1130_v12 }
 0x63a   :  { %v941_v56 = vadd.f32 %v940_v55, %v939_v54  ;;  %v1055_v54 = vld [vmem:[#allocation6 + $0x6b0] sm:$0xff]  ;;  %v1039_v55 = vld [vmem:[#allocation6 + $0x638] sm:$0xff] }
 0x63c   :  { %v942_v57 = vmul.f32 %v941_v56, %v2081_v36  ;;  %v1129_v56 = vld [vmem:[#allocation6 + $0x738] sm:$0xff] }
 0x63d   :  { %1146 = vmatpush.msrb.mxu2 %v1129_v56 }
 0x63e   :  { %959 = vmatmul.f32.vlgmr.msra.gmra.mxu2 %v942_v57  ;;  %v1054_v57 = vld [vmem:[#allocation6 + $0x6a8] sm:$0xff] }
 0x63f   :  { %1147 = vmatpush.msrb.mxu2 %v1128_v59 }
 0x641   :  { %1148 = vmatpush.msrb.mxu2 %v1127_v14 }
 0x6c1   :  { %v960_v28 = vpop.f32.mrf.mxu2 }
 0x6c2   :  { %v963_v31 = vperm.slane %v960_v28, 0  ;;  %v1126_v28 = vld [vmem:[#allocation6 + $0x720] sm:$0xff] }
 0x6c3   :  { %1149 = vmatpush.msrb.mxu2 %v1126_v28 }
 0x6c4   :  { %v2286_v50 = vsub.f32 %v933_v5, %v963_v31  ;;  %v2288_v33 = vsub.f32 %v934_v6, %v963_v31  ;;  %v1057_v5 = vld [vmem:[#allocation6 + $0x6c0] sm:$0xff]  ;;  %v1041_v6 = vld [vmem:[#allocation6 + $0x648] sm:$0xff]  ;;  %v1051_v31 = vld [vmem:[#allocation6 + $0x690] sm:$0xff] }
 0x6c5   :  { %1072 = vmatpush.msrb.mxu0 %v1057_v5  ;;  %1094 = vmatpush.msrb.mxu1 %v1041_v6 }
 0x6c6   :  { %v966_v35 = vmul.f32 %v2286_v50, %v2286_v50  ;;  %v967_v38 = vmul.f32 %v2288_v33, %v2288_v33 }
 0x6c7   :  { %1073 = vmatpush.msrb.mxu0 %v1056_v10  ;;  %1095 = vmatpush.msrb.mxu1 %v1040_v11 }
 0x6c8   :  { %v968_v40 = vadd.f32 %v967_v38, %v966_v35  ;;  %v1035_v35 = vld [vmem:[#allocation6 + $0x618] sm:$0xff] }
 0x6c9   :  { %1074 = vmatpush.msrb.mxu0 %v1055_v54  ;;  %1096 = vmatpush.msrb.mxu1 %v1039_v55  ;;  %v1125_v38 = vld [vmem:[#allocation6 + $0x718] sm:$0xff] }
 0x6ca   :  { %v969_v42 = vrot.slane %v968_v40, 4  ;;  %1150 = vmatpush.msrb.mxu2 %v1125_v38 }
 0x6cb   :  { %1075 = vmatpush.msrb.mxu0 %v1054_v57  ;;  %1097 = vmatpush.msrb.mxu1 %v1038_v58 }
 0x6cc   :  { %v970_v43 = vadd.f32 %v969_v42, %v968_v40  ;;  %v1050_v40 = vld [vmem:[#allocation6 + $0x688] sm:$0xff]  ;;  %v1034_v42 = vld [vmem:[#allocation6 + $0x610] sm:$0xff] }
 0x6cd   :  { %1076 = vmatpush.msrb.mxu0 %v1053_v60  ;;  %1098 = vmatpush.msrb.mxu1 %v1037_v61 }
 0x6ce   :  { %v971_v45 = vrot.slane %v970_v43, 2 }
 0x6cf   :  { %1077 = vmatpush.msrb.mxu0 %v1052_v23  ;;  %1099 = vmatpush.msrb.mxu1 %v1036_v26 }
 0x6d0   :  { %v972_v47 = vadd.f32 %v971_v45, %v970_v43  ;;  %v1124_v43 = vld [vmem:[#allocation6 + $0x710] sm:$0xff]  ;;  %v1049_v45 = vld [vmem:[#allocation6 + $0x680] sm:$0xff] }
 0x6d1   :  { %1078 = vmatpush.msrb.mxu0 %v1051_v31  ;;  %1100 = vmatpush.msrb.mxu1 %v1035_v35 }
 0x6d2   :  { %v973_v48 = vrot.slane %v972_v47, 1  ;;  %1151 = vmatpush.msrb.mxu2 %v1124_v43 }
 0x6d3   :  { %1079 = vmatpush.msrb.mxu0 %v1050_v40  ;;  %1101 = vmatpush.msrb.mxu1 %v1034_v42 }
 0x6d4   :  { %v974_v17 = vadd.f32 %v973_v48, %v972_v47  ;;  %v1033_v47 = vld [vmem:[#allocation6 + $0x608] sm:$0xff] }
 0x6d5   :  { %1080 = vmatpush.msrb.mxu0 %v1049_v45  ;;  %v1123_v48 = vld [vmem:[#allocation6 + $0x708] sm:$0xff]  ;;  %1102 = vmatpush.msrb.mxu1 %v1033_v47 }
 0x6d6   :  { %v975_v52 = vmul.f32 %v974_v17, %v2081_v36  ;;  %1152 = vmatpush.msrb.mxu2 %v1123_v48  ;;  %v1032_v17 = vld [vmem:[#allocation6 + $0x600] sm:$0xff] }
 0x6d7   :  { %1206 = vmatpush.msra.mxu0 %v2211_v24  ;;  %1103 = vmatpush.msrb.mxu1 %v1032_v17  ;;  %v1294_v17 = vld [vmem:[#allocation6 + $0x878] sm:$0xff] }
 0x6d8   :  { %992 = vmatmul.f32.vlgmr.msra.gmra.mxu3 %v975_v52  ;;  %v1122_v52 = vld [vmem:[#allocation6 + $0x700] sm:$0xff] }
 0x6d9   :  { %1153 = vmatpush.msrb.mxu2 %v1122_v52  ;;  %1207 = vmatpush.msra.mxu0 %v2214_v25  ;;  %v1293_v52 = vld [vmem:[#allocation6 + $0x870] sm:$0xff] }
 0x6da   :  { %1295 = vmatpush.msra.mxu1 %v1294_v17  ;;  %v1268_v17 = vld [vmem:[#allocation6 + $0x7b0] sm:$0xff] }
 0x6db   :  { %1208 = vmatpush.msra.mxu0 %v2217_v13 }
 0x6dc   :  { %1296 = vmatpush.msra.mxu1 %v1293_v52  ;;  %v1358_v52 = vld [vmem:[#allocation6 + $0x8b0] sm:$0xff] }
 0x6dd   :  { %1209 = vmatpush.msra.mxu0 %v2220_v15 }
 0x6df   :  { %1210 = vmatpush.msra.mxu0 %v2223_v16 }
 0x6e1   :  { %1211 = vmatpush.msra.mxu0 %v2226_v21 }
 0x6e3   :  { %1212 = vmatpush.msra.mxu0 %v2229_v22 }
 0x6e5   :  { %1213 = vmatpush.msra.mxu0 %v2232_v27 }
 0x6e7   :  { %1214 = vmatpush.msra.mxu0 %v2235_v30 }
 0x6e9   :  { %1215 = vmatpush.msra.mxu0 %v2238_v32 }
 0x6eb   :  { %1216 = vmatpush.msra.mxu0 %v2241_v51 }
 0x6ed   :  { %1217 = vmatpush.msra.mxu0 %v2244_v34 }
 0x6ef   :  { %1218 = vmatpush.msra.mxu0 %v2247_v37 }
 0x6f1   :  { %1219 = vmatpush.msra.mxu0 %v2250_v39 }
 0x6f3   :  { %1220 = vmatpush.msra.mxu0 %v2254_v41 }
 0x6f5   :  { %1221 = vmatpush.msra.mxu0 %v2258_v44 }
 0x75b   :  { %v993_v20 = vpop.f32.mrf.mxu3 }
 0x75c   :  { %1798 = vrsqrt.f32 %v993_v20  ;;  %vm1002_vm13 = vweird.f32 %v993_v20 }
 0x762   :  { %v1799_v18 = vpop.eup %1798 }
 0x763   :  { %v997_v19 = vmul.f32 %v1799_v18, %v993_v20  ;;  %vm1003_vm12 = vweird.f32 %v1799_v18  ;;  %v1277_v20 = vld [vmem:[#allocation6 + $0x7f8] sm:$0xff] }
 0x764   :  { %vm1004_vm14 = vmor %vm1002_vm13, %vm1003_vm12  ;;  %1318 = vmatpush.msra.mxu2 %v1277_v20  ;;  %v1283_v20 = vld [vmem:[#allocation6 + $0x820] sm:$0xff] }
 0x765   :  { %v998_v29 = vmul.f32 %v1799_v18, %v997_v19  ;;  %v1366_v19 = vld [vmem:[#allocation6 + $0x8f0] sm:$0xff] }
 0x767   :  { %v999_v53 = vmul.f32 0.5, %v998_v29 }
 0x769   :  { %v1000_v62 = vsub.f32 1.5, %v999_v53 }
 0x76b   :  { %v1001_v63 = vmul.f32 %v1799_v18, %v1000_v62 }
 0x76d   :  { %v1005_v0 = vsel %vm1004_vm14, %v1799_v18, %v1001_v63  ;;  %v1292_v18 = vld [vmem:[#allocation6 + $0x868] sm:$0xff] }
 0x76e   :  { %v1006_v1 = vperm.slane %v1005_v0, 0  ;;  %1297 = vmatpush.msra.mxu1 %v1292_v18  ;;  %v1282_v18 = vld [vmem:[#allocation6 + $0x818] sm:$0xff] }
 0x770   :  { %v1007_v2 = vmul.f32 %v1006_v1, %v2286_v50  ;;  %v1008_v4 = vmul.f32 %v1006_v1, %v2288_v33 }
 0x772   :  { %v1009_v3 = vmax.f32 %v1007_v2, 0.0  ;;  %v1010_v11 = vmax.f32 %v1008_v4, 0.0 }
 0x774   :  { %1081 = vmatmul.f32.vlgmr.msrb.gmra.mxu0 %v1009_v3  ;;  %v1024_v5 = vrot.slane %v1009_v3, 7  ;;  %v1113_v6 = vrot.slane %v1009_v3, 1  ;;  %v1027_v50 = vrot.slane %v1010_v11, 7  ;;  %v1116_v33 = vrot.slane %v1010_v11, 1 }
 0x775   :  { %1401 = vmatpush.msrb.mxu0 %v2211_v24 }
 0x776   :  { %v1025_v7 = vsel %vm101_vm1, %v1990_v49, %v1024_v5  ;;  %v1115_v10 = vsel %vm191_vm0, %v1113_v6, %v1988_v46  ;;  %v1028_v12 = vsel %vm101_vm1, %v1990_v49, %v1027_v50  ;;  %v1118_v54 = vsel %vm191_vm0, %v1116_v33, %v1988_v46  ;;  %v1291_v50 = vld [vmem:[#allocation6 + $0x860] sm:$0xff]  ;;  %v1275_v33 = vld [vmem:[#allocation6 + $0x7e8] sm:$0xff] }
 0x777   :  { %1104 = vmatmul.f32.vlgmr.msrb.gmra.mxu1 %v1025_v7  ;;  %1154 = vmatmul.f32.vlgmr.msrb.gmra.mxu2 %v1115_v10 }
 0x778   :  { %1402 = vmatpush.msrb.mxu0 %v2214_v25  ;;  %1298 = vmatpush.msra.mxu1 %v1291_v50 }
 0x77a   :  { %1403 = vmatpush.msrb.mxu0 %v2217_v13 }
 0x77c   :  { %1084 = vmatmul.f32.gmra.mxu0 %v1010_v11 }
 0x77d   :  { %1404 = vmatpush.msrb.mxu0 %v2220_v15 }
 0x77f   :  { %1107 = vmatmul.f32.gmra.mxu1 %v1028_v12  ;;  %1157 = vmatmul.f32.gmra.mxu2 %v1118_v54  ;;  %v1365_v12 = vld [vmem:[#allocation6 + $0x8e8] sm:$0xff]  ;;  %v1290_v54 = vld [vmem:[#allocation6 + $0x858] sm:$0xff] }
 0x780   :  { %1405 = vmatpush.msrb.mxu0 %v2223_v16  ;;  %1299 = vmatpush.msra.mxu1 %v1290_v54 }
 0x782   :  { %1406 = vmatpush.msrb.mxu0 %v2226_v21 }
 0x784   :  { %1407 = vmatpush.msrb.mxu0 %v2229_v22 }
 0x786   :  { %1408 = vmatpush.msrb.mxu0 %v2232_v27 }
 0x788   :  { %1409 = vmatpush.msrb.mxu0 %v2235_v30 }
 0x78a   :  { %1410 = vmatpush.msrb.mxu0 %v2238_v32 }
 0x78c   :  { %1411 = vmatpush.msrb.mxu0 %v2241_v51 }
 0x78e   :  { %1412 = vmatpush.msrb.mxu0 %v2244_v34 }
 0x790   :  { %1413 = vmatpush.msrb.mxu0 %v2247_v37 }
 0x792   :  { %1414 = vmatpush.msrb.mxu0 %v2250_v39 }
 0x794   :  { %1415 = vmatpush.msrb.mxu0 %v2254_v41 }
 0x796   :  { %1416 = vmatpush.msrb.mxu0 %v2258_v44 }
 0x7f1   :  { %v1082_v56 = vpop.f32.mrf.mxu0 }
 0x7f4   :  { %v1105_v55 = vpop.f32.mrf.mxu1 }
 0x7f5   :  { %v1106_v59 = vadd.f32 %v1105_v55, %v1082_v56  ;;  %v1274_v55 = vld [vmem:[#allocation6 + $0x7e0] sm:$0xff] }
 0x7f6   :  { %v1364_v56 = vld [vmem:[#allocation6 + $0x8e0] sm:$0xff] }
 0x7f9   :  { %v1085_v60 = vpop.f32.mrf.mxu0 }
 0x7fa   :  { %v1155_v57 = vpop.f32.mrf.mxu2 }
 0x7fb   :  { %v1161_v61 = vadd.f32 %v1155_v57, %v1106_v59  ;;  %v1289_v57 = vld [vmem:[#allocation6 + $0x850] sm:$0xff]  ;;  %v1363_v59 = vld [vmem:[#allocation6 + $0x8d8] sm:$0xff] }
 0x7fc   :  { %v1108_v58 = vpop.f32.mrf.mxu1  ;;  %1300 = vmatpush.msra.mxu1 %v1289_v57 }
 0x7fd   :  { %v1109_v14 = vadd.f32 %v1108_v58, %v1085_v60  ;;  %v2338_v28 = vadd.f32 %v1161_v61, %v2192_v8  ;;  %v1367_v8 = vld [vmem:[#allocation6 + $0x8f8] sm:$0xff]  ;;  %v1288_v60 = vld [vmem:[#allocation6 + $0x848] sm:$0xff]  ;;  %v1272_v61 = vld [vmem:[#allocation6 + $0x7d0] sm:$0xff] }
 0x7fe   :  { %1368 = vmatpush.msra.mxu3 %v1367_v8  ;;  %v1273_v58 = vld [vmem:[#allocation6 + $0x7d8] sm:$0xff]  ;;  %1301 = vmatpush.msra.mxu1 %v1288_v60  ;;  %v1267_v8 = vld [vmem:[#allocation6 + $0x7a8] sm:$0xff] }
 0x800   :  { %1369 = vmatpush.msra.mxu3 %v1366_v19  ;;  %v1266_v19 = vld [vmem:[#allocation6 + $0x7a0] sm:$0xff] }
 0x802   :  { %v1158_v23 = vpop.f32.mrf.mxu2  ;;  %1370 = vmatpush.msra.mxu3 %v1365_v12 }
 0x803   :  { %v1162_v26 = vadd.f32 %v1158_v23, %v1109_v14  ;;  %v1362_v14 = vld [vmem:[#allocation6 + $0x8d0] sm:$0xff]  ;;  %v1287_v23 = vld [vmem:[#allocation6 + $0x840] sm:$0xff] }
 0x804   :  { %1371 = vmatpush.msra.mxu3 %v1364_v56  ;;  %1302 = vmatpush.msra.mxu1 %v1287_v23 }
 0x805   :  { %v2341_v31 = vadd.f32 %v1162_v26, %v2195_v9  ;;  %v1276_v9 = vld [vmem:[#allocation6 + $0x7f0] sm:$0xff]  ;;  %v1271_v26 = vld [vmem:[#allocation6 + $0x7c8] sm:$0xff] }
 0x806   :  { %1319 = vmatpush.msra.mxu2 %v1276_v9  ;;  %1372 = vmatpush.msra.mxu3 %v1363_v59  ;;  %v1357_v9 = vld [vmem:[#allocation6 + $0x8a8] sm:$0xff] }
 0x807   :  { %v1165_v35 = vadd.f32 %v2341_v31, %v2338_v28 }
 0x808   :  { %1320 = vmatpush.msra.mxu2 %v1275_v33  ;;  %1373 = vmatpush.msra.mxu3 %v1362_v14 }
 0x809   :  { %v1166_v38 = vrot.slane %v1165_v35, 4 }
 0x80a   :  { %1321 = vmatpush.msra.mxu2 %v1274_v55 }
 0x80b   :  { %v1167_v40 = vadd.f32 %v1166_v38, %v1165_v35  ;;  %v1361_v35 = vld [vmem:[#allocation6 + $0x8c8] sm:$0xff]  ;;  %v1286_v38 = vld [vmem:[#allocation6 + $0x838] sm:$0xff] }
 0x80c   :  { %1322 = vmatpush.msra.mxu2 %v1273_v58  ;;  %1374 = vmatpush.msra.mxu3 %v1361_v35 }
 0x80d   :  { %v1168_v42 = vrot.slane %v1167_v40, 2  ;;  %1303 = vmatpush.msra.mxu1 %v1286_v38 }
 0x80e   :  { %1323 = vmatpush.msra.mxu2 %v1272_v61 }
 0x80f   :  { %v1169_v43 = vadd.f32 %v1168_v42, %v1167_v40  ;;  %v1270_v40 = vld [vmem:[#allocation6 + $0x7c0] sm:$0xff] }
 0x810   :  { %1324 = vmatpush.msra.mxu2 %v1271_v26  ;;  %v1360_v42 = vld [vmem:[#allocation6 + $0x8c0] sm:$0xff] }
 0x811   :  { %v1170_v45 = vrot.slane %v1169_v43, 1  ;;  %1375 = vmatpush.msra.mxu3 %v1360_v42 }
 0x812   :  { %1325 = vmatpush.msra.mxu2 %v1270_v40 }
 0x813   :  { %v1171_v47 = vadd.f32 %v1170_v45, %v1169_v43  ;;  %v1285_v43 = vld [vmem:[#allocation6 + $0x830] sm:$0xff]  ;;  %v1269_v45 = vld [vmem:[#allocation6 + $0x7b8] sm:$0xff] }
 0x814   :  { %1304 = vmatpush.msra.mxu1 %v1285_v43  ;;  %1326 = vmatpush.msra.mxu2 %v1269_v45 }
 0x815   :  { %v1172_v48 = vmul.f32 %v1171_v47, %v2081_v36  ;;  %v1359_v47 = vld [vmem:[#allocation6 + $0x8b8] sm:$0xff] }
 0x816   :  { %1376 = vmatpush.msra.mxu3 %v1359_v47  ;;  %1327 = vmatpush.msra.mxu2 %v1268_v17  ;;  %v1521_v17 = vld [vmem:[#allocation6 + $0x9f0] sm:$0xff] }
 0x817   :  { %1189 = vmatmul.f32.vlgmr.msrb.gmra.mxu3 %v1172_v48  ;;  %v1284_v48 = vld [vmem:[#allocation6 + $0x828] sm:$0xff] }
 0x818   :  { %1305 = vmatpush.msra.mxu1 %v1284_v48  ;;  %1377 = vmatpush.msra.mxu3 %v1358_v52  ;;  %v1505_v52 = vld [vmem:[#allocation6 + $0x978] sm:$0xff] }
 0x819   :  { %1328 = vmatpush.msra.mxu2 %v1267_v8  ;;  %v1504_v8 = vld [vmem:[#allocation6 + $0x970] sm:$0xff] }
 0x81a   :  { %1306 = vmatpush.msra.mxu1 %v1283_v20  ;;  %1378 = vmatpush.msra.mxu3 %v1357_v9  ;;  %v1595_v20 = vld [vmem:[#allocation6 + $0xa78] sm:$0xff]  ;;  %v1520_v9 = vld [vmem:[#allocation6 + $0x9e8] sm:$0xff] }
 0x81b   :  { %1329 = vmatpush.msra.mxu2 %v1266_v19 }
 0x81c   :  { %1307 = vmatpush.msra.mxu1 %v1282_v18  ;;  %v1594_v18 = vld [vmem:[#allocation6 + $0xa70] sm:$0xff] }
 0x89a   :  { %v1190_v29 = vpop.f32.mrf.mxu3 }
 0x89b   :  { %v1193_v53 = vperm.slane %v1190_v29, 0  ;;  %v1356_v29 = vld [vmem:[#allocation6 + $0x8a0] sm:$0xff] }
 0x89c   :  { %1379 = vmatpush.msra.mxu3 %v1356_v29 }
 0x89d   :  { %v2347_v62 = vsub.f32 %v2338_v28, %v1193_v53  ;;  %v2350_v63 = vsub.f32 %v2341_v31, %v1193_v53  ;;  %v1281_v53 = vld [vmem:[#allocation6 + $0x810] sm:$0xff] }
 0x89e   :  { %1308 = vmatpush.msra.mxu1 %v1281_v53 }
 0x89f   :  { %v1196_v0 = vmul.f32 %v2347_v62, %v2347_v62  ;;  %v1197_v1 = vmul.f32 %v2350_v63, %v2350_v63 }
 0x8a1   :  { %v1198_v2 = vadd.f32 %v1197_v1, %v1196_v0  ;;  %v1265_v0 = vld [vmem:[#allocation6 + $0x798] sm:$0xff] }
 0x8a2   :  { %v1355_v1 = vld [vmem:[#allocation6 + $0x898] sm:$0xff]  ;;  %1330 = vmatpush.msra.mxu2 %v1265_v0 }
 0x8a3   :  { %v1199_v3 = vrot.slane %v1198_v2, 4  ;;  %1380 = vmatpush.msra.mxu3 %v1355_v1 }
 0x8a5   :  { %v1200_v4 = vadd.f32 %v1199_v3, %v1198_v2  ;;  %v1280_v2 = vld [vmem:[#allocation6 + $0x808] sm:$0xff]  ;;  %v1264_v3 = vld [vmem:[#allocation6 + $0x790] sm:$0xff] }
 0x8a6   :  { %1309 = vmatpush.msra.mxu1 %v1280_v2  ;;  %1331 = vmatpush.msra.mxu2 %v1264_v3 }
 0x8a7   :  { %v1201_v5 = vrot.slane %v1200_v4, 2 }
 0x8a9   :  { %v1202_v6 = vadd.f32 %v1201_v5, %v1200_v4  ;;  %v1354_v4 = vld [vmem:[#allocation6 + $0x890] sm:$0xff]  ;;  %v1279_v5 = vld [vmem:[#allocation6 + $0x800] sm:$0xff] }
 0x8aa   :  { %1381 = vmatpush.msra.mxu3 %v1354_v4  ;;  %1310 = vmatpush.msra.mxu1 %v1279_v5 }
 0x8ab   :  { %v1203_v7 = vrot.slane %v1202_v6, 1 }
 0x8ac   :  { %1434 = vmatpush.msrb.mxu1 %v2211_v24 }
 0x8ad   :  { %v1204_v10 = vadd.f32 %v1203_v7, %v1202_v6  ;;  %v1263_v6 = vld [vmem:[#allocation6 + $0x788] sm:$0xff] }
 0x8ae   :  { %v1353_v7 = vld [vmem:[#allocation6 + $0x888] sm:$0xff]  ;;  %1332 = vmatpush.msra.mxu2 %v1263_v6  ;;  %1435 = vmatpush.msrb.mxu1 %v2214_v25 }
 0x8af   :  { %v1205_v11 = vmul.f32 %v1204_v10, %v2081_v36  ;;  %1382 = vmatpush.msra.mxu3 %v1353_v7  ;;  %v1262_v10 = vld [vmem:[#allocation6 + $0x780] sm:$0xff] }
 0x8b0   :  { %1333 = vmatpush.msra.mxu2 %v1262_v10  ;;  %1436 = vmatpush.msrb.mxu1 %v2217_v13 }
 0x8b1   :  { %1222 = vmatmul.f32.vlgmr.msra.gmra.mxu0 %v1205_v11  ;;  %v1352_v11 = vld [vmem:[#allocation6 + $0x880] sm:$0xff] }
 0x8b2   :  { %1383 = vmatpush.msra.mxu3 %v1352_v11  ;;  %1437 = vmatpush.msrb.mxu1 %v2220_v15 }
 0x8b3   :  { %1596 = vmatpush.msra.mxu0 %v1595_v20  ;;  %v1824_v20 = vld [vmem:[#allocation8 + $0x78] sm:$0xff] }
 0x8b4   :  { %1438 = vmatpush.msrb.mxu1 %v2223_v16  ;;  %1546 = vmatpush.msrb.mxu3 %v1505_v52  ;;  %v1580_v52 = vld [vmem:[#allocation6 + $0xa00] sm:$0xff] }
 0x8b5   :  { %1597 = vmatpush.msra.mxu0 %v1594_v18 }
 0x8b6   :  { %1439 = vmatpush.msrb.mxu1 %v2226_v21  ;;  %1547 = vmatpush.msrb.mxu3 %v1504_v8  ;;  %v1825_v8 = vld [vmem:[#allocation8 + $0x70] sm:$0xff] }
 0x8b8   :  { %1440 = vmatpush.msrb.mxu1 %v2229_v22 }
 0x8ba   :  { %1441 = vmatpush.msrb.mxu1 %v2232_v27 }
 0x8bc   :  { %1442 = vmatpush.msrb.mxu1 %v2235_v30 }
 0x8be   :  { %1443 = vmatpush.msrb.mxu1 %v2238_v32 }
 0x8c0   :  { %1444 = vmatpush.msrb.mxu1 %v2241_v51 }
 0x8c2   :  { %1445 = vmatpush.msrb.mxu1 %v2244_v34 }
 0x8c4   :  { %1446 = vmatpush.msrb.mxu1 %v2247_v37 }
 0x8c6   :  { %1447 = vmatpush.msrb.mxu1 %v2250_v39 }
 0x8c8   :  { %1448 = vmatpush.msrb.mxu1 %v2254_v41 }
 0x8ca   :  { %1449 = vmatpush.msrb.mxu1 %v2258_v44 }
 0x92e   :  { %v1223_v50 = vpop.f32.mrf.mxu0 }
 0x92f   :  { %1800 = vrsqrt.f32 %v1223_v50  ;;  %vm1232_vm2 = vweird.f32 %v1223_v50 }
 0x935   :  { %v1801_v33 = vpop.eup %1800 }
 0x936   :  { %v1227_v12 = vmul.f32 %v1801_v33, %v1223_v50  ;;  %vm1233_vm15 = vweird.f32 %v1801_v33 }
 0x937   :  { %vm1234_vm3 = vmor %vm1232_vm2, %vm1233_vm15 }
 0x938   :  { %v1228_v54 = vmul.f32 %v1801_v33, %v1227_v12  ;;  %v1503_v12 = vld [vmem:[#allocation6 + $0x968] sm:$0xff] }
 0x939   :  { %1548 = vmatpush.msrb.mxu3 %v1503_v12 }
 0x93a   :  { %v1229_v55 = vmul.f32 0.5, %v1228_v54  ;;  %v1593_v54 = vld [vmem:[#allocation6 + $0xa68] sm:$0xff] }
 0x93b   :  { %1598 = vmatpush.msra.mxu0 %v1593_v54  ;;  %v1835_v54 = vld [vmem:[#allocation8 + $0x20] sm:$0xff] }
 0x93c   :  { %v1230_v56 = vsub.f32 1.5, %v1229_v55  ;;  %v1518_v55 = vld [vmem:[#allocation6 + $0x9d8] sm:$0xff] }
 0x93e   :  { %v1231_v57 = vmul.f32 %v1801_v33, %v1230_v56  ;;  %v1502_v56 = vld [vmem:[#allocation6 + $0x960] sm:$0xff] }
 0x93f   :  { %1549 = vmatpush.msrb.mxu3 %v1502_v56  ;;  %v1836_v56 = vld [vmem:[#allocation8 + $0x18] sm:$0xff] }
 0x940   :  { %v1235_v58 = vsel %vm1234_vm3, %v1801_v33, %v1231_v57  ;;  %v1519_v33 = vld [vmem:[#allocation6 + $0x9e0] sm:$0xff] }
 0x941   :  { %v1236_v59 = vperm.slane %v1235_v58, 0  ;;  %v1592_v57 = vld [vmem:[#allocation6 + $0xa60] sm:$0xff]  ;;  %v1517_v58 = vld [vmem:[#allocation6 + $0x9d0] sm:$0xff] }
 0x942   :  { %1599 = vmatpush.msra.mxu0 %v1592_v57 }
 0x943   :  { %v1237_v60 = vmul.f32 %v1236_v59, %v2347_v62  ;;  %v1238_v14 = vmul.f32 %v1236_v59, %v2350_v63  ;;  %v1501_v59 = vld [vmem:[#allocation6 + $0x958] sm:$0xff] }
 0x944   :  { %1550 = vmatpush.msrb.mxu3 %v1501_v59 }
 0x945   :  { %v1239_v61 = vmax.f32 %v1237_v60, 0.0  ;;  %v1240_v40 = vmax.f32 %v1238_v14, 0.0  ;;  %v1591_v60 = vld [vmem:[#allocation6 + $0xa58] sm:$0xff]  ;;  %v1500_v14 = vld [vmem:[#allocation6 + $0x950] sm:$0xff] }
 0x946   :  { %1600 = vmatpush.msra.mxu0 %v1591_v60  ;;  %1551 = vmatpush.msrb.mxu3 %v1500_v14  ;;  %v1838_v60 = vld [vmem:[#allocation8 + $0x8] sm:$0xff] }
 0x947   :  { %1311 = vmatmul.f32.vlgmr.msra.gmra.mxu1 %v1239_v61  ;;  %v1254_v23 = vrot.slane %v1239_v61, 7  ;;  %v1343_v26 = vrot.slane %v1239_v61, 1  ;;  %v1257_v62 = vrot.slane %v1240_v40, 7  ;;  %v1346_v63 = vrot.slane %v1240_v40, 1  ;;  %v1516_v61 = vld [vmem:[#allocation6 + $0x9c8] sm:$0xff] }
 0x948   :  { %1631 = vmatpush.msra.mxu1 %v2211_v24 }
 0x949   :  { %v1255_v35 = vsel %vm101_vm1, %v1990_v49, %v1254_v23  ;;  %v1345_v38 = vsel %vm191_vm0, %v1343_v26, %v1988_v46  ;;  %v1258_v24 = vsel %vm101_vm1, %v1990_v49, %v1257_v62  ;;  %v1348_v42 = vsel %vm191_vm0, %v1346_v63, %v1988_v46  ;;  %v1590_v23 = vld [vmem:[#allocation6 + $0xa50] sm:$0xff]  ;;  %v1515_v26 = vld [vmem:[#allocation6 + $0x9c0] sm:$0xff] }
 0x94a   :  { %1334 = vmatmul.f32.vlgmr.msra.gmra.mxu2 %v1255_v35  ;;  %1384 = vmatmul.f32.vlgmr.msra.gmra.mxu3 %v1345_v38  ;;  %v1499_v35 = vld [vmem:[#allocation6 + $0x948] sm:$0xff]  ;;  %v1498_v62 = vld [vmem:[#allocation6 + $0x940] sm:$0xff] }
 0x94b   :  { %1632 = vmatpush.msra.mxu1 %v2214_v25  ;;  %1601 = vmatpush.msra.mxu0 %v1590_v23  ;;  %v1589_v38 = vld [vmem:[#allocation6 + $0xa48] sm:$0xff]  ;;  %v1588_v63 = vld [vmem:[#allocation6 + $0xa40] sm:$0xff] }
 0x94c   :  { %1552 = vmatpush.msrb.mxu3 %v1499_v35  ;;  %v1839_v23 = vld [vmem:[#allocation8] sm:$0xff] }
 0x94d   :  { %1633 = vmatpush.msra.mxu1 %v2217_v13  ;;  %1602 = vmatpush.msra.mxu0 %v1589_v38 }
 0x94e   :  { %1553 = vmatpush.msrb.mxu3 %v1498_v62 }
 0x94f   :  { %1314 = vmatmul.f32.gmra.mxu1 %v1240_v40  ;;  %v1514_v40 = vld [vmem:[#allocation6 + $0x9b8] sm:$0xff]  ;;  %1603 = vmatpush.msra.mxu0 %v1588_v63 }
 0x950   :  { %1634 = vmatpush.msra.mxu1 %v2220_v15 }
 0x952   :  { %1337 = vmatmul.f32.gmra.mxu2 %v1258_v24  ;;  %1387 = vmatmul.f32.gmra.mxu3 %v1348_v42  ;;  %v1513_v24 = vld [vmem:[#allocation6 + $0x9b0] sm:$0xff]  ;;  %v1497_v42 = vld [vmem:[#allocation6 + $0x938] sm:$0xff] }
 0x953   :  { %1635 = vmatpush.msra.mxu1 %v2223_v16  ;;  %1554 = vmatpush.msrb.mxu3 %v1497_v42 }
 0x955   :  { %1636 = vmatpush.msra.mxu1 %v2226_v21 }
 0x957   :  { %1637 = vmatpush.msra.mxu1 %v2229_v22 }
 0x959   :  { %1638 = vmatpush.msra.mxu1 %v2232_v27 }
 0x95b   :  { %1639 = vmatpush.msra.mxu1 %v2235_v30 }
 0x95d   :  { %1640 = vmatpush.msra.mxu1 %v2238_v32 }
 0x95f   :  { %1641 = vmatpush.msra.mxu1 %v2241_v51 }
 0x961   :  { %1642 = vmatpush.msra.mxu1 %v2244_v34 }
 0x963   :  { %1643 = vmatpush.msra.mxu1 %v2247_v37 }
 0x965   :  { %1644 = vmatpush.msra.mxu1 %v2250_v39 }
 0x967   :  { %1645 = vmatpush.msra.mxu1 %v2254_v41 }
 0x969   :  { %1646 = vmatpush.msra.mxu1 %v2258_v44  ;;  %v1522_v44 = vld [vmem:[#allocation6 + $0x9f8] sm:$0xff] }
 0x96a   :  { %1523 = vmatpush.msrb.mxu2 %v1522_v44  ;;  %v1581_v44 = vld [vmem:[#allocation6 + $0xa08] sm:$0xff] }
 0x96c   :  { %1524 = vmatpush.msrb.mxu2 %v1521_v17  ;;  %v1490_v17 = vld [vmem:[#allocation6 + $0x900] sm:$0xff] }
 0x96e   :  { %1525 = vmatpush.msrb.mxu2 %v1520_v9  ;;  %v1826_v9 = vld [vmem:[#allocation8 + $0x68] sm:$0xff] }
 0x970   :  { %1526 = vmatpush.msrb.mxu2 %v1519_v33  ;;  %v1834_v33 = vld [vmem:[#allocation8 + $0x28] sm:$0xff] }
 0x972   :  { %1527 = vmatpush.msrb.mxu2 %v1518_v55 }
 0x974   :  { %1528 = vmatpush.msrb.mxu2 %v1517_v58  ;;  %v1837_v58 = vld [vmem:[#allocation8 + $0x10] sm:$0xff] }
 0x976   :  { %1529 = vmatpush.msrb.mxu2 %v1516_v61 }
 0x978   :  { %1530 = vmatpush.msrb.mxu2 %v1515_v26 }
 0x97a   :  { %1531 = vmatpush.msrb.mxu2 %v1514_v40 }
 0x97c   :  { %1532 = vmatpush.msrb.mxu2 %v1513_v24 }
 0x9c4   :  { %v1312_v25 = vpop.f32.mrf.mxu1 }
 0x9cc   :  { %v1315_v21 = vpop.f32.mrf.mxu1 }
 0x9cd   :  { %v1335_v13 = vpop.f32.mrf.mxu2  ;;  %v1385_v15 = vpop.f32.mrf.mxu3 }
 0x9ce   :  { %v1336_v16 = vadd.f32 %v1335_v13, %v1312_v25  ;;  %v1587_v25 = vld [vmem:[#allocation6 + $0xa38] sm:$0xff]  ;;  %v1512_v13 = vld [vmem:[#allocation6 + $0x9a8] sm:$0xff] }
 0x9cf   :  { %1604 = vmatpush.msra.mxu0 %v1587_v25  ;;  %1533 = vmatpush.msrb.mxu2 %v1512_v13 }
 0x9d0   :  { %v1391_v32 = vadd.f32 %v1385_v15, %v1336_v16  ;;  %v1496_v15 = vld [vmem:[#allocation6 + $0x930] sm:$0xff] }
 0x9d1   :  { %v1586_v16 = vld [vmem:[#allocation6 + $0xa30] sm:$0xff]  ;;  %1555 = vmatpush.msrb.mxu3 %v1496_v15 }
 0x9d2   :  { %1605 = vmatpush.msra.mxu0 %v1586_v16 }
 0x9d5   :  { %v1338_v22 = vpop.f32.mrf.mxu2  ;;  %v1388_v30 = vpop.f32.mrf.mxu3 }
 0x9d6   :  { %v1339_v27 = vadd.f32 %v1338_v22, %v1315_v21  ;;  %v1511_v21 = vld [vmem:[#allocation6 + $0x9a0] sm:$0xff]  ;;  %v1495_v22 = vld [vmem:[#allocation6 + $0x928] sm:$0xff] }
 0x9d7   :  { %1534 = vmatpush.msrb.mxu2 %v1511_v21  ;;  %1556 = vmatpush.msrb.mxu3 %v1495_v22 }
 0x9d8   :  { %v1392_v51 = vadd.f32 %v1388_v30, %v1339_v27  ;;  %v1585_v27 = vld [vmem:[#allocation6 + $0xa28] sm:$0xff]  ;;  %v1510_v30 = vld [vmem:[#allocation6 + $0x998] sm:$0xff] }
 0x9d9   :  { %1606 = vmatpush.msra.mxu0 %v1585_v27  ;;  %1535 = vmatpush.msrb.mxu2 %v1510_v30 }
 0x9da   :  { %v1393_v43 = vadd.f32 %v1392_v51, %v1391_v32 }
 0x9dc   :  { %v1394_v34 = vrot.slane %v1393_v43, 4 }
 0x9de   :  { %v1395_v45 = vadd.f32 %v1394_v34, %v1393_v43  ;;  %v1509_v43 = vld [vmem:[#allocation6 + $0x990] sm:$0xff]  ;;  %v1493_v34 = vld [vmem:[#allocation6 + $0x918] sm:$0xff] }
 0x9df   :  { %1536 = vmatpush.msrb.mxu2 %v1509_v43 }
 0x9e0   :  { %v1396_v37 = vrot.slane %v1395_v45, 2 }
 0x9e2   :  { %v1397_v47 = vadd.f32 %v1396_v37, %v1395_v45  ;;  %v1583_v45 = vld [vmem:[#allocation6 + $0xa18] sm:$0xff]  ;;  %v1508_v37 = vld [vmem:[#allocation6 + $0x988] sm:$0xff] }
 0x9e3   :  { %1537 = vmatpush.msrb.mxu2 %v1508_v37 }
 0x9e4   :  { %v1398_v39 = vrot.slane %v1397_v47, 1 }
 0x9e6   :  { %v1399_v48 = vadd.f32 %v1398_v39, %v1397_v47  ;;  %v1492_v47 = vld [vmem:[#allocation6 + $0x910] sm:$0xff] }
 0x9e7   :  { %v1582_v39 = vld [vmem:[#allocation6 + $0xa10] sm:$0xff] }
 0x9e8   :  { %v1400_v41 = vmul.f32 %v1399_v48, %v2081_v36  ;;  %v1507_v48 = vld [vmem:[#allocation6 + $0x980] sm:$0xff] }
 0x9e9   :  { %1538 = vmatpush.msrb.mxu2 %v1507_v48 }
 0x9ea   :  { %1417 = vmatmul.f32.vlgmr.msrb.gmra.mxu0 %v1400_v41  ;;  %v1491_v41 = vld [vmem:[#allocation6 + $0x908] sm:$0xff] }
 0x9eb   :  { %1664 = vmatpush.msra.mxu2 %v1824_v20 }
 0x9ed   :  { %1665 = vmatpush.msra.mxu2 %v1825_v8 }
 0x9ef   :  { %1666 = vmatpush.msra.mxu2 %v1826_v9 }
 0xa67   :  { %v1418_v19 = vpop.f32.mrf.mxu0 }
 0xa68   :  { %v1421_v29 = vperm.slane %v1418_v19, 0  ;;  %v1827_v19 = vld [vmem:[#allocation8 + $0x60] sm:$0xff] }
 0xa69   :  { %1667 = vmatpush.msra.mxu2 %v1827_v19 }
 0xa6a   :  { %v2400_v53 = vsub.f32 %v1391_v32, %v1421_v29  ;;  %v2402_v0 = vsub.f32 %v1392_v51, %v1421_v29  ;;  %v1494_v32 = vld [vmem:[#allocation6 + $0x920] sm:$0xff]  ;;  %v1828_v29 = vld [vmem:[#allocation8 + $0x58] sm:$0xff] }
 0xa6b   :  { %v1584_v51 = vld [vmem:[#allocation6 + $0xa20] sm:$0xff]  ;;  %1557 = vmatpush.msrb.mxu3 %v1494_v32  ;;  %1668 = vmatpush.msra.mxu2 %v1828_v29 }
 0xa6c   :  { %v1424_v1 = vmul.f32 %v2400_v53, %v2400_v53  ;;  %v1425_v2 = vmul.f32 %v2402_v0, %v2402_v0  ;;  %1607 = vmatpush.msra.mxu0 %v1584_v51 }
 0xa6d   :  { %1558 = vmatpush.msrb.mxu3 %v1493_v34 }
 0xa6e   :  { %v1426_v3 = vadd.f32 %v1425_v2, %v1424_v1  ;;  %1608 = vmatpush.msra.mxu0 %v1583_v45  ;;  %v1829_v1 = vld [vmem:[#allocation8 + $0x50] sm:$0xff]  ;;  %v1830_v2 = vld [vmem:[#allocation8 + $0x48] sm:$0xff] }
 0xa6f   :  { %1559 = vmatpush.msrb.mxu3 %v1492_v47  ;;  %1669 = vmatpush.msra.mxu2 %v1829_v1 }
 0xa70   :  { %v1427_v4 = vrot.slane %v1426_v3, 4  ;;  %1609 = vmatpush.msra.mxu0 %v1582_v39 }
 0xa71   :  { %1560 = vmatpush.msrb.mxu3 %v1491_v41  ;;  %1670 = vmatpush.msra.mxu2 %v1830_v2 }
 0xa72   :  { %v1428_v5 = vadd.f32 %v1427_v4, %v1426_v3  ;;  %1610 = vmatpush.msra.mxu0 %v1581_v44 }
 0xa73   :  { %1561 = vmatpush.msrb.mxu3 %v1490_v17 }
 0xa74   :  { %v1429_v6 = vrot.slane %v1428_v5, 2  ;;  %1611 = vmatpush.msra.mxu0 %v1580_v52 }
 0xa76   :  { %v1430_v7 = vadd.f32 %v1429_v6, %v1428_v5  ;;  %v1831_v5 = vld [vmem:[#allocation8 + $0x40] sm:$0xff] }
 0xa77   :  { %1671 = vmatpush.msra.mxu2 %v1831_v5  ;;  %v1733_v5 = vld [vmem:[%s2476_s2 + $0x68] sm:$0xff] }
 0xa78   :  { %v1431_v10 = vrot.slane %v1430_v7, 1 }
 0xa7a   :  { %v1432_v11 = vadd.f32 %v1431_v10, %v1430_v7  ;;  %v1832_v7 = vld [vmem:[#allocation8 + $0x38] sm:$0xff] }
 0xa7b   :  { %1672 = vmatpush.msra.mxu2 %v1832_v7  ;;  %v1730_v7 = vld [vmem:[%s2476_s2 + $0x50] sm:$0xff] }
 0xa7c   :  { %v1433_v50 = vmul.f32 %v1432_v11, %v2081_v36  ;;  %v1833_v11 = vld [vmem:[#allocation8 + $0x30] sm:$0xff] }
 0xa7d   :  { %1673 = vmatpush.msra.mxu2 %v1833_v11  ;;  %v1728_v11 = vld [vmem:[%s2476_s2 + $0x40] sm:$0xff] }
 0xa7e   :  { %1450 = vmatmul.f32.vlgmr.msrb.gmra.mxu1 %v1433_v50 }
 0xa7f   :  { %1674 = vmatpush.msra.mxu2 %v1834_v33  ;;  %v1726_v33 = vld [vmem:[%s2476_s2 + $0x30] sm:$0xff] }
 0xa81   :  { %1675 = vmatpush.msra.mxu2 %v1835_v54  ;;  %v1724_v54 = vld [vmem:[%s2476_s2 + $0x20] sm:$0xff] }
 0xa83   :  { %1676 = vmatpush.msra.mxu2 %v1836_v56 }
 0xa85   :  { %1677 = vmatpush.msra.mxu2 %v1837_v58  ;;  %v1721_v58 = vld [vmem:[%s2476_s2 + $0x8] sm:$0xff] }
 0xa87   :  { %1678 = vmatpush.msra.mxu2 %v1838_v60 }
 0xa89   :  { %1679 = vmatpush.msra.mxu2 %v1839_v23 }
 0xafb   :  { %v1451_v18 = vpop.f32.mrf.mxu1 }
 0xafc   :  { %1802 = vrsqrt.f32 %v1451_v18  ;;  %vm1460_vm5 = vweird.f32 %v1451_v18 }
 0xb02   :  { %v1803_v3 = vpop.eup %1802 }
 0xb03   :  { %v1455_v4 = vmul.f32 %v1803_v3, %v1451_v18  ;;  %vm1461_vm4 = vweird.f32 %v1803_v3 }
 0xb04   :  { %vm1462_vm6 = vmor %vm1460_vm5, %vm1461_vm4 }
 0xb05   :  { %v1456_v6 = vmul.f32 %v1803_v3, %v1455_v4  ;;  %v1734_v4 = vld [vmem:[%s2476_s2 + $0x70] sm:$0xff] }
 0xb07   :  { %v1457_v10 = vmul.f32 0.5, %v1456_v6  ;;  %v1731_v6 = vld [vmem:[%s2476_s2 + $0x58] sm:$0xff] }
 0xb09   :  { %v1458_v50 = vsub.f32 1.5, %v1457_v10  ;;  %v1729_v10 = vld [vmem:[%s2476_s2 + $0x48] sm:$0xff] }
 0xb0b   :  { %v1459_v12 = vmul.f32 %v1803_v3, %v1458_v50  ;;  %v1727_v50 = vld [vmem:[%s2476_s2 + $0x38] sm:$0xff] }
 0xb0d   :  { %v1463_v55 = vsel %vm1462_vm6, %v1803_v3, %v1459_v12  ;;  %v1735_v3 = vld [vmem:[%s2476_s2 + $0x78] sm:$0xff]  ;;  %v1725_v12 = vld [vmem:[%s2476_s2 + $0x28] sm:$0xff] }
 0xb0e   :  { %v1464_v57 = vperm.slane %v1463_v55, 0  ;;  %1741 = vmatpush.msra.mxu3 %v1735_v3  ;;  %v1723_v55 = vld [vmem:[%s2476_s2 + $0x18] sm:$0xff] }
 0xb10   :  { %v1465_v59 = vmul.f32 %v1464_v57, %v2400_v53  ;;  %v1466_v14 = vmul.f32 %v1464_v57, %v2402_v0  ;;  %1742 = vmatpush.msra.mxu3 %v1734_v4  ;;  %v1722_v57 = vld [vmem:[%s2476_s2 + $0x10] sm:$0xff] }
 0xb12   :  { %v1467_v61 = vmax.f32 %v1465_v59, 0.0  ;;  %v1468_v62 = vmax.f32 %v1466_v14, 0.0  ;;  %1743 = vmatpush.msra.mxu3 %v1733_v5  ;;  %v1720_v59 = vld [vmem:[%s2476_s2] sm:$0xff]  ;;  %v1949_v14 = vmov 8.0  }
 0xb14   :  { %1539 = vmatmul.f32.vlgmr.msrb.gmra.mxu2 %v1467_v61  ;;  %v1482_v26 = vrot.slane %v1467_v61, 7  ;;  %v1571_v35 = vrot.slane %v1467_v61, 1  ;;  %v1485_v53 = vrot.slane %v1468_v62, 7  ;;  %v1574_v63 = vrot.slane %v1468_v62, 1 }
 0xb16   :  { %v1483_v38 = vsel %vm101_vm1, %v1990_v49, %v1482_v26  ;;  %v1573_v40 = vsel %vm191_vm0, %v1571_v35, %v1988_v46  ;;  %v1486_v0 = vsel %vm101_vm1, %v1990_v49, %v1485_v53  ;;  %v1576_v24 = vsel %vm191_vm0, %v1574_v63, %v1988_v46 }
 0xb17   :  { %1562 = vmatmul.f32.vlgmr.msrb.gmra.mxu3 %v1483_v38  ;;  %1612 = vmatmul.f32.vlgmr.msra.gmra.mxu0 %v1573_v40 }
 0xb1c   :  { %1542 = vmatmul.f32.gmra.mxu2 %v1468_v62 }
 0xb1f   :  { %1565 = vmatmul.f32.gmra.mxu3 %v1486_v0  ;;  %1615 = vmatmul.f32.gmra.mxu0 %v1576_v24 }
 0xb94   :  { %v1613_v25 = vpop.f32.mrf.mxu0 }
 0xb97   :  { %v1540_v42 = vpop.f32.mrf.mxu2 }
 0xb9a   :  { %v1563_v13 = vpop.f32.mrf.mxu3 }
 0xb9b   :  { %v1564_v15 = vadd.f32 %v1563_v13, %v1540_v42 }
 0xb9c   :  { %v1616_v30 = vpop.f32.mrf.mxu0 }
 0xb9d   :  { %v1619_v22 = vadd.f32 %v1613_v25, %v1564_v15 }
 0xb9f   :  { %v1543_v16 = vpop.f32.mrf.mxu2  ;;  %v1621_v51 = vadd.f32 %v1619_v22, %v2338_v28 }
 0xba2   :  { %v1566_v21 = vpop.f32.mrf.mxu3 }
 0xba3   :  { %v1567_v27 = vadd.f32 %v1566_v21, %v1543_v16 }
 0xba5   :  { %v1620_v32 = vadd.f32 %v1616_v30, %v1567_v27 }
 0xba7   :  { %v1622_v43 = vadd.f32 %v1620_v32, %v2341_v31 }
 0xba9   :  { %v1623_v49 = vadd.f32 %v1622_v43, %v1621_v51 }
 0xbab   :  { %v1624_v34 = vrot.slane %v1623_v49, 4 }
 0xbad   :  { %v1625_v45 = vadd.f32 %v1624_v34, %v1623_v49 }
 0xbaf   :  { %v1626_v46 = vrot.slane %v1625_v45, 2 }
 0xbb1   :  { %v1627_v37 = vadd.f32 %v1626_v46, %v1625_v45 }
 0xbb3   :  { %v1628_v47 = vrot.slane %v1627_v37, 1 }
 0xbb5   :  { %v1629_v39 = vadd.f32 %v1628_v47, %v1627_v37 }
 0xbb7   :  { %v1630_v48 = vmul.f32 %v1629_v39, %v2081_v36 }
 0xbb9   :  { %1647 = vmatmul.f32.vlgmr.msra.gmra.mxu1 %v1630_v48 }
 0xc36   :  { %v1648_v41 = vpop.f32.mrf.mxu1 }
 0xc37   :  { %v1651_v44 = vperm.slane %v1648_v41, 0 }
 0xc39   :  { %v1652_v17 = vsub.f32 %v1621_v51, %v1651_v44  ;;  %v1653_v52 = vsub.f32 %v1622_v43, %v1651_v44 }
 0xc3b   :  { %v1654_v20 = vmul.f32 %v1652_v17, %v1652_v17  ;;  %v1655_v8 = vmul.f32 %v1653_v52, %v1653_v52 }
 0xc3d   :  { %v1656_v9 = vadd.f32 %v1655_v8, %v1654_v20 }
 0xc3f   :  { %v1657_v28 = vrot.slane %v1656_v9, 4 }
 0xc41   :  { %v1658_v18 = vadd.f32 %v1657_v28, %v1656_v9 }
 0xc43   :  { %v1659_v31 = vrot.slane %v1658_v18, 2 }
 0xc45   :  { %v1660_v19 = vadd.f32 %v1659_v31, %v1658_v18 }
 0xc47   :  { %v1661_v29 = vrot.slane %v1660_v19, 1 }
 0xc49   :  { %v1662_v1 = vadd.f32 %v1661_v29, %v1660_v19 }
 0xc4b   :  { %v1663_v2 = vmul.f32 %v1662_v1, %v2081_v36  ;;  %v1732_v36 = vld [vmem:[%s2476_s2 + $0x60] sm:$0xff]  ;;  %s1950_s2 = smov [#allocation9]  }
 0xc4c   :  { %1744 = vmatpush.msra.mxu3 %v1732_v36  ;;  %s1768_s6 = sshll.u32 %s1950_s2, 4  ;;  %s1769_s6 = int_to_ptr.vmem [resolvable:$true] %s1768_s6 }
 0xc4d   :  { %1680 = vmatmul.f32.vlgmr.msra.gmra.mxu2 %v1663_v2 }
 0xc4e   :  { %1745 = vmatpush.msra.mxu3 %v1731_v6 }
 0xc50   :  { %1746 = vmatpush.msra.mxu3 %v1730_v7 }
 0xc52   :  { %1747 = vmatpush.msra.mxu3 %v1729_v10 }
 0xc54   :  { %1748 = vmatpush.msra.mxu3 %v1728_v11 }
 0xc56   :  { %1749 = vmatpush.msra.mxu3 %v1727_v50 }
 0xc58   :  { %1750 = vmatpush.msra.mxu3 %v1726_v33 }
 0xc5a   :  { %1751 = vmatpush.msra.mxu3 %v1725_v12 }
 0xc5c   :  { %1752 = vmatpush.msra.mxu3 %v1724_v54 }
 0xc5e   :  { %1753 = vmatpush.msra.mxu3 %v1723_v55 }
 0xc60   :  { %1754 = vmatpush.msra.mxu3 %v1722_v57 }
 0xc62   :  { %1755 = vmatpush.msra.mxu3 %v1721_v58 }
 0xc64   :  { %1756 = vmatpush.msra.mxu3 %v1720_v59 }
 0xcd0   :  { %v1681_v56 = vpop.f32.mrf.mxu2 }
 0xcd1   :  { %1804 = vrsqrt.f32 %v1681_v56  ;;  %vm1690_vm1 = vweird.f32 %v1681_v56 }
 0xcd2   :  { %1806 = vrcp.f32 %v1949_v14 }
 0xcd7   :  { %v1805_v60 = vpop.eup %1804 }
 0xcd8   :  { %v1685_v61 = vmul.f32 %v1805_v60, %v1681_v56  ;;  %vm1691_vm0 = vweird.f32 %v1805_v60  ;;  %v1807_v38 = vpop.eup %1806 }
 0xcd9   :  { %vm1692_vm7 = vmor %vm1690_vm1, %vm1691_vm0  ;;  %v1712_v53 = vmul.f32 8.0, %v1807_v38  ;;  %vm1716_vm8 = vweird.f32 %v1807_v38 }
 0xcda   :  { %v1686_v23 = vmul.f32 %v1805_v60, %v1685_v61 }
 0xcdb   :  { %v1713_v42 = vsub.f32 1.0, %v1712_v53 }
 0xcdc   :  { %v1687_v26 = vmul.f32 0.5, %v1686_v23 }
 0xcdd   :  { %v1714_v21 = vmul.f32 %v1807_v38, %v1713_v42 }
 0xcde   :  { %v1688_v35 = vsub.f32 1.5, %v1687_v26 }
 0xcdf   :  { %v1715_v51 = vadd.f32 %v1807_v38, %v1714_v21 }
 0xce0   :  { %v1689_v40 = vmul.f32 %v1805_v60, %v1688_v35 }
 0xce1   :  { %v1717_v46 = vsel %vm1716_vm8, %v1807_v38, %v1715_v51 }
 0xce2   :  { %v1693_v62 = vsel %vm1692_vm7, %v1805_v60, %v1689_v40 }
 0xce3   :  { %v1694_v63 = vperm.slane %v1693_v62, 0 }
 0xce5   :  { %v1695_v0 = vmul.f32 %v1694_v63, %v1652_v17  ;;  %v1696_v24 = vmul.f32 %v1694_v63, %v1653_v52 }
 0xce7   :  { %v1697_v25 = vmax.f32 %v1695_v0, 0.0  ;;  %v1698_v13 = vmax.f32 %v1696_v24, 0.0 }
 0xce9   :  { %v1699_v15 = vrot.slane %v1697_v25, 4  ;;  %v1705_v16 = vrot.slane %v1698_v13, 4 }
 0xceb   :  { %v1700_v22 = vadd.f32 %v1699_v15, %v1697_v25  ;;  %v1706_v27 = vadd.f32 %v1705_v16, %v1698_v13 }
 0xced   :  { %v1701_v30 = vrot.slane %v1700_v22, 2  ;;  %v1707_v32 = vrot.slane %v1706_v27, 2 }
 0xcef   :  { %v1702_v43 = vadd.f32 %v1701_v30, %v1700_v22  ;;  %v1708_v49 = vadd.f32 %v1707_v32, %v1706_v27 }
 0xcf1   :  { %v1703_v34 = vrot.slane %v1702_v43, 1  ;;  %v1709_v45 = vrot.slane %v1708_v49, 1 }
 0xcf3   :  { %v1704_v37 = vadd.f32 %v1703_v34, %v1702_v43  ;;  %v1710_v47 = vadd.f32 %v1709_v45, %v1708_v49 }
 0xcf5   :  { %v1718_v39 = vmul.f32 %v1717_v46, %v1704_v37  ;;  %v1719_v48 = vmul.f32 %v1717_v46, %v1710_v47 }
 0xcf7   :  { %v1739_v41 = vsel %vm1738_vm9, %v1719_v48, %v1718_v39 }
 0xcf8   :  { %1757 = vmatmul.f32.vlgmr.msra.gmra.mxu3 %v1739_v41 }
 0xd7b   :  { %v1758_v44 = vpop.f32.mrf.mxu3 }
 0xd7c   :  { %1762 = vst.msk [vmem:[#allocation9] sm:$0x3] %vm1761_vm10, %v1758_v44 }
 0xd7d   :  { %1773 = dma.vmem_to_hbm [thread:$0]  %s1769_s6, 32, %s1771_s9, [#allocation5]  }
 0xd7e   :  { %1940 = dma.done.wait [#allocation5], 32  }
 0xd7f   :  { %1941 = vsyncadd [#allocation5], 4294967264 }
 0xd80   :  { %1778 = vsyncpa [#allocation4], 1 }
 0xd81   :  { %1779 = vsyncpa [#allocation7], 1 }
 0xd82   :  { %1780 = vsyncpa [#allocation5], 1 }

</bundles_post_ra>
